<compile_context>
chip_gen: v7x
topology: tpu7x:2x2x1
jax: 0.10.0
libtpu: 0.0.40
codegen_flags: <defaults>
</compile_context>

<pallas_src>
import math
import numpy as np
import jax
import jax.numpy as jnp
from jax.experimental import pallas as pl
from jax.experimental.pallas import tpu as pltpu


OUT_ROWS = 8   # head rows padded 2 -> 8 so output stores are full (8,128) vregs


# ----------------------------------------------------------------------------
# Pallas kernel: batched GCN layer + MeanStd readout head for TB trees/step
# ----------------------------------------------------------------------------
def gnn_branch_kernel(feat_ref, adj_ref, par_ref,
                      w1_ref, b1_ref, w2_ref, b2_ref, w3t_ref, b3t_ref,
                      out_ref):
    TB, NP, F = feat_ref.shape          # tree-batch, padded node count, feat dim
    H = w1_ref.shape[1]
    N = TB * NP

    x = feat_ref[...]                               # (TB, NP, F)  f32 node embeddings
    adj = adj_ref[...].astype(jnp.float32)          # (TB, NP, NP) bf16 -> f32, D^-1/2(A+I)D^-1/2
    par = par_ref[...].astype(jnp.float32)          # (TB, NP, NP) bf16 -> f32, parent one-hot

    # --- GCN message passing: batched normalized-adjacency gather on the MXU
    agg = jnp.einsum('tnm,tmf->tnf', adj, x,
                     preferred_element_type=jnp.float32)            # (TB, NP, F)

    # --- GCN linear + ELU, flattened so the MXU sees TB*NP rows per push ---
    aggf = agg.reshape(N, F)
    h = jnp.dot(aggf, w1_ref[...], preferred_element_type=jnp.float32) + b1_ref[...]
    h = jnp.where(h > 0, h, jnp.exp(jnp.minimum(h, 0.0)) - 1.0)     # ELU, f32 VPU/EUP
    # NOTE: padded node rows become ELU(b1) != 0; harmless here because the
    # parent one-hot rows for padded branches are zero and the wrapper slices
    # [:B].  Mask explicitly if a second GCN layer / node pooling is added.

    # --- parent-node gather for the readout (one-hot batched matmul) -------
    h3 = h.reshape(TB, NP, H)
    hp = jnp.einsum('tbn,tnh->tbh', par, h3,
                    preferred_element_type=jnp.float32)             # (TB, NP, H)
    hpf = hp.reshape(N, H)

    # --- MeanStd MLP on concat([h_node, h_parent]) --------------------------
    # Two dots against static halves of the single (2H, H) w2 (same math as
    # concat(...) @ w2, avoids an unaligned lane concat).
    mid = (jnp.dot(h, w2_ref[:H, :], preferred_element_type=jnp.float32)
           + jnp.dot(hpf, w2_ref[H:, :], preferred_element_type=jnp.float32)
           + b2_ref[...])
    mid = jnp.where(mid > 0, mid, jnp.exp(jnp.minimum(mid, 0.0)) - 1.0)   # ELU

    # --- transposed head -> lane-dense (OUT_ROWS, TB*NP) output slab --------
    # row 0 = mean, row 1 = log-std, rows 2..7 = zero padding.
    outT = jnp.einsum('ch,nh->cn', w3t_ref[...], mid,
                      preferred_element_type=jnp.float32) + b3t_ref[...]
    out_ref[...] = outT


def gnn_branch_forward(feats, adj, parent_oh, eps, params, *,
                       tree_block=None, vmem_limit_bytes=None):
    """GNN + readout head in Pallas; sampling transform / logq reduction in XLA."""
    T, NP, F = feats.shape
    B = eps.shape[1]                        # number of branches = 2*ntips - 3
    H = params["w1"].shape[1]

    if tree_block is None:
        # As big as possible (grid-overhead amortization, MXU row fill) while
        # keeping >= 2 grid steps so the "parallel" axis shards on v7x megacore.
        tree_block = min(512, max(1, T // 2))
    lane_q = 128 // math.gcd(NP, 128)       # TB*NP must be a multiple of 128
    TB = max(lane_q, (int(tree_block) // lane_q) * lane_q)
    Tp = ((T + TB - 1) // TB) * TB
    if Tp != T:                             # fallback only; prefer T % TB == 0
        pad = ((0, Tp - T), (0, 0), (0, 0))
        feats = jnp.pad(feats, pad)
        adj = jnp.pad(adj, pad)
        parent_oh = jnp.pad(parent_oh, pad)

    def tree_spec(shape):
        return pl.BlockSpec((TB,) + shape, lambda g: (g, 0, 0))

    def weight_spec(shape):
        return pl.BlockSpec(shape, lambda g: (0, 0))

    flops = 2 * Tp * NP * (NP * F + F * H + NP * H + 2 * H * H + OUT_ROWS * H)
    bytes_acc = (feats.size * feats.dtype.itemsize
                 + adj.size * adj.dtype.itemsize
                 + parent_oh.size * parent_oh.dtype.itemsize
                 + OUT_ROWS * Tp * NP * 4)

    raw = pl.pallas_call(
        gnn_branch_kernel,
        out_shape=jax.ShapeDtypeStruct((OUT_ROWS, Tp * NP), jnp.float32),
        grid=(Tp // TB,),
        in_specs=[
            tree_spec((NP, F)),             # node features   (f32, padded)
            tree_spec((NP, NP)),            # normalized A+I  (bf16, host precomputed)
            tree_spec((NP, NP)),            # parent one-hot  (bf16, host precomputed)
            weight_spec((F, H)), weight_spec((1, H)),             # gnn W, b
            weight_spec((2 * H, H)), weight_spec((1, H)),         # readout W, b
            weight_spec((OUT_ROWS, H)), weight_spec((OUT_ROWS, 1)),  # head W^T, b^T (padded)
        ],
        out_specs=pl.BlockSpec((OUT_ROWS, TB * NP), lambda g: (0, g)),
        compiler_params=pltpu.CompilerParams(
            dimension_semantics=("parallel",),
            vmem_limit_bytes=vmem_limit_bytes),
        cost_estimate=pl.CostEstimate(
            flops=int(flops),
            transcendentals=int(2 * Tp * NP * H),
            bytes_accessed=int(bytes_acc)),
    )(feats, adj, parent_oh,
      params["w1"], params["b1"], params["w2"], params["b2"],
      params["w3t"], params["b3t"])

    mean = raw[0].reshape(Tp, NP)[:T, :B]     # (T, B)
    log_std = raw[1].reshape(Tp, NP)[:T, :B]  # (T, B)
    samp_log_branch = eps * jnp.exp(log_std) + mean - 2.0
    logq_branch = (jnp.sum(-0.5 * math.log(2.0 * math.pi) - 0.5 * eps * eps, axis=-1)
                   - jnp.sum(log_std, axis=-1))
    return samp_log_branch, logq_branch


# ----------------------------------------------------------------------------
# Host-side glue: synthetic trees + node_embedding (mirrors the PyTorch code)
# ----------------------------------------------------------------------------
class _Node:
    def __init__(self, name):
        self.name = name
        self.children = []
        self.up = None

    def add_child(self, c):
        c.up = self
        self.children.append(c)

    def is_leaf(self):
        return len(self.children) == 0

    def is_root(self):
        return self.up is None

    def postorder(self):
        for c in self.children:
            yield from c.postorder()
        yield self

    def preorder(self):
        yield self
        for c in self.children:
            yield from c.preorder()


def build_caterpillar(ntips, leaf_names):
    # unrooted binary tree with a trifurcating root; internal names
    # ntips .. 2*ntips-3, root = 2*ntips-3
    leaves = [_Node(int(leaf_names[i])) for i in range(ntips)]
    root = _Node(2 * ntips - 3)
    prev = _Node(ntips)
    prev.add_child(leaves[0])
    prev.add_child(leaves[1])
    for j in range(1, ntips - 3):
        node = _Node(ntips + j)
        node.add_child(leaves[j + 1])
        node.add_child(prev)
        prev = node
    root.add_child(leaves[ntips - 2])
    root.add_child(leaves[ntips - 1])
    root.add_child(prev)
    return root


def node_embedding(root, ntips):
    # TODO(synk): this tree recursion has no clean Pallas equivalent (data-
    # dependent pointer chasing); it is host-side glue matching the PyTorch
    # node_embedding exactly.
    eye = np.eye(ntips, dtype=np.float32)
    for node in root.postorder():
        if node.is_leaf():
            node.c = 0.0
            node.d = eye[node.name].copy()
        else:
            child_c, child_d = 0.0, 0.0
            for child in node.children:
                child_c += child.c
                child_d += child.d
            node.c = 1.0 / (3.0 - child_c)
            node.d = node.c * child_d

    node_features, node_idx_list, edge_index = [], [], []
    for node in root.preorder():
        neigh = []
        if not node.is_root():
            node.d = node.c * node.up.d + node.d
            neigh.append(node.up.name)
            if not node.is_leaf():
                neigh.extend([child.name for child in node.children])
            else:
                neigh.extend([-1, -1])
        else:
            neigh.extend([child.name for child in node.children])
        edge_index.append(neigh)
        node_features.append(node.d)
        node_idx_list.append(node.name)

    order = np.argsort(np.asarray(node_idx_list, dtype=np.int64))
    feats = np.stack(node_features).astype(np.float32)[order]
    edges = np.asarray(edge_index, dtype=np.int32)[order]
    return feats, edges


def build_graph_tensors(feats_list, edges_list, ntips, *, normalize=True):
    """Host precompute: padded features, normalized (A+I), parent one-hot."""
    T = len(feats_list)
    N = 2 * ntips - 2
    B = N - 1
    NP = ((N + 7) // 8) * 8                 # pad node/branch axis to sublane tile
    F = ntips
    feats = np.zeros((T, NP, F), np.float32)
    adj = np.zeros((T, NP, NP), np.float32)
    par = np.zeros((T, NP, NP), np.float32)
    for t in range(T):
        feats[t, :N] = feats_list[t]
        e = edges_list[t]
        a = np.zeros((N, N), np.float32)
        for i in range(N):
            a[i, i] = 1.0                   # self loop (A + I)
            for k in range(3):
                j = int(e[i, k])
                if j >= 0:
                    a[i, j] = 1.0
        if normalize:                       # GCN symmetric degree normalization
            deg = a.sum(1)
            dinv = np.where(deg > 0, 1.0 / np.sqrt(deg), 0.0)
            a = a * dinv[:, None] * dinv[None, :]
        adj[t, :N, :N] = a
        for b in range(B):                  # parent of each non-root node
            par[t, b, int(e[b, 0])] = 1.0
    return feats, adj, par


# ----------------------------------------------------------------------------
if __name__ == "__main__":
    ntips = 8
    hidden_dim = 32
    n_trees = 64                            # divides the auto tree block (32): no hot-path pad
    N = 2 * ntips - 2                       # 14 nodes
    B = 2 * ntips - 3                       # 13 branches

    # deterministic tree topologies (leaf-label rotations)
    feats_list, edges_list = [], []
    for t in range(n_trees):
        perm = list(np.roll(np.arange(ntips), t % ntips))
        root = build_caterpillar(ntips, perm)
        f, e = node_embedding(root, ntips)
        feats_list.append(f)
        edges_list.append(e)

    feats_np, adj_np, par_np = build_graph_tensors(feats_list, edges_list, ntips)
    feats = jnp.asarray(feats_np)                         # (T, 16, 8)  f32
    adj = jnp.asarray(adj_np, dtype=jnp.bfloat16)         # (T, 16, 16) bf16 (host cast)
    parent_oh = jnp.asarray(par_np, dtype=jnp.bfloat16)   # (T, 16, 16) bf16 (host cast)

    # deterministic parameter init (PyTorch Linear-style uniform bounds)
    key = jax.random.PRNGKey(0)
    ks = jax.random.split(key, 8)

    def uinit(k, fan_in, shape):
        b = 1.0 / np.sqrt(fan_in)
        return jax.random.uniform(k, shape, jnp.float32, -b, b)

    # head weights pre-transposed + row-padded 2 -> OUT_ROWS so the kernel's
    # output slab is fully dense (row 0 = mean, row 1 = log-std).
    w3t = jnp.zeros((OUT_ROWS, hidden_dim), jnp.float32).at[:2].set(
        uinit(ks[4], hidden_dim, (2, hidden_dim)))
    b3t = jnp.zeros((OUT_ROWS, 1), jnp.float32).at[:2].set(
        uinit(ks[5], hidden_dim, (2, 1)))

    params = dict(
        w1=uinit(ks[0], ntips, (ntips, hidden_dim)),
        b1=uinit(ks[1], ntips, (1, hidden_dim)),
        w2=uinit(ks[2], 2 * hidden_dim, (2 * hidden_dim, hidden_dim)),
        b2=uinit(ks[3], 2 * hidden_dim, (1, hidden_dim)),
        w3t=w3t, b3t=b3t,
    )

    # base normal samples (torch.randn equivalent, done in glue)
    eps = jax.random.normal(ks[6], (n_trees, B), dtype=jnp.float32)

    fwd = jax.jit(lambda fe, ad, pa, ep: gnn_branch_forward(fe, ad, pa, ep, params))
    samp_log_branch, logq_branch = fwd(feats, adj, parent_oh, eps)
    jax.block_until_ready((samp_log_branch, logq_branch))

    assert samp_log_branch.shape == (n_trees, B)
    assert logq_branch.shape == (n_trees,)
    assert bool(jnp.all(jnp.isfinite(samp_log_branch)))
    assert bool(jnp.all(jnp.isfinite(logq_branch)))
    print("KERNEL_OK")
</pallas_src>

<mosaic_0001>
module attributes {stable_mosaic.version = 11 : i64} {
  func.func @gnn_branch_kernel(%arg0: i32, %arg1: memref<32x16x8xf32, #tpu.memory_space<vmem>>, %arg2: memref<32x16x16xbf16, #tpu.memory_space<vmem>>, %arg3: memref<32x16x16xbf16, #tpu.memory_space<vmem>>, %arg4: memref<8x32xf32, #tpu.memory_space<vmem>>, %arg5: memref<1x32xf32, #tpu.memory_space<vmem>>, %arg6: memref<64x32xf32, #tpu.memory_space<vmem>>, %arg7: memref<1x32xf32, #tpu.memory_space<vmem>>, %arg8: memref<8x32xf32, #tpu.memory_space<vmem>>, %arg9: memref<8x1xf32, #tpu.memory_space<vmem>>, %arg10: memref<8x512xf32, #tpu.memory_space<vmem>>) attributes {dimension_semantics = [#tpu.dimension_semantics<parallel>], iteration_bounds = array<i64: 2>, scalar_prefetch = 0 : i64, scratch_operands = 0 : i64, tpu.core_type = #tpu.core_type<tc>, window_params = [{transform_indices = @transform_0, window_bounds = array<i64: 32, 16, 8>}, {transform_indices = @transform_1, window_bounds = array<i64: 32, 16, 16>}, {transform_indices = @transform_2, window_bounds = array<i64: 32, 16, 16>}, {pipeline_mode = #tpu.pipeline_mode<synchronous>, transform_indices = @transform_3, window_bounds = array<i64: 8, 32>}, {pipeline_mode = #tpu.pipeline_mode<synchronous>, transform_indices = @transform_4, window_bounds = array<i64: 1, 32>}, {pipeline_mode = #tpu.pipeline_mode<synchronous>, transform_indices = @transform_5, window_bounds = array<i64: 64, 32>}, {pipeline_mode = #tpu.pipeline_mode<synchronous>, transform_indices = @transform_6, window_bounds = array<i64: 1, 32>}, {pipeline_mode = #tpu.pipeline_mode<synchronous>, transform_indices = @transform_7, window_bounds = array<i64: 8, 32>}, {pipeline_mode = #tpu.pipeline_mode<synchronous>, transform_indices = @transform_8, window_bounds = array<i64: 8, 1>}, {transform_indices = @transform_9, window_bounds = array<i64: 8, 512>}]} {
    %c0 = arith.constant 0 : index
    %c0_0 = arith.constant 0 : index
    %c0_1 = arith.constant 0 : index
    %0 = vector.load %arg1[%c0, %c0_0, %c0_1] : memref<32x16x8xf32, #tpu.memory_space<vmem>>, vector<32x16x8xf32>
    %c0_2 = arith.constant 0 : index
    %c0_3 = arith.constant 0 : index
    %c0_4 = arith.constant 0 : index
    %1 = vector.load %arg2[%c0_2, %c0_3, %c0_4] : memref<32x16x16xbf16, #tpu.memory_space<vmem>>, vector<32x16x16xbf16>
    %2 = arith.extf %1 : vector<32x16x16xbf16> to vector<32x16x16xf32>
    %c0_5 = arith.constant 0 : index
    %c0_6 = arith.constant 0 : index
    %c0_7 = arith.constant 0 : index
    %3 = vector.load %arg3[%c0_5, %c0_6, %c0_7] : memref<32x16x16xbf16, #tpu.memory_space<vmem>>, vector<32x16x16xbf16>
    %4 = arith.extf %3 : vector<32x16x16xbf16> to vector<32x16x16xf32>
    "tpu.trace_start"() <{level = 10 : i32, message = "tnm,tmf->tnf"}> : () -> ()
    %cst = arith.constant dense<0.000000e+00> : vector<32x16x8xf32>
    %5 = tpu.matmul %2, %0, %cst {dimension_numbers = #tpu.dot_dimension_numbers<[2], [1], [1], [2], [0, 0, 0, 1, 1, 2], [0], [0]>} : vector<32x16x16xf32>, vector<32x16x8xf32>, vector<32x16x8xf32> -> vector<32x16x8xf32>
    "tpu.trace_stop"() : () -> ()
    %6 = vector.shape_cast %5 : vector<32x16x8xf32> to vector<512x8xf32>
    %c0_8 = arith.constant 0 : index
    %c0_9 = arith.constant 0 : index
    %7 = vector.load %arg4[%c0_8, %c0_9] : memref<8x32xf32, #tpu.memory_space<vmem>>, vector<8x32xf32>
    %cst_10 = arith.constant dense<0.000000e+00> : vector<512x32xf32>
    %8 = tpu.matmul %6, %7, %cst_10 {dimension_numbers = #tpu.dot_dimension_numbers<[1], [0], [0], [1], [0, 0, 1, 1], [], []>} : vector<512x8xf32>, vector<8x32xf32>, vector<512x32xf32> -> vector<512x32xf32>
    %c0_11 = arith.constant 0 : index
    %c0_12 = arith.constant 0 : index
    %9 = vector.load %arg5[%c0_11, %c0_12] : memref<1x32xf32, #tpu.memory_space<vmem>>, vector<1x32xf32>
    %10 = vector.broadcast %9 : vector<1x32xf32> to vector<512x32xf32>
    %11 = arith.addf %8, %10 : vector<512x32xf32>
    %cst_13 = arith.constant 0.000000e+00 : f32
    %12 = vector.broadcast %cst_13 : f32 to vector<512x32xf32>
    %13 = arith.cmpf ogt, %11, %12 : vector<512x32xf32>
    %cst_14 = arith.constant 0.000000e+00 : f32
    %14 = vector.broadcast %cst_14 : f32 to vector<512x32xf32>
    %15 = arith.minimumf %11, %14 : vector<512x32xf32>
    %16 = math.exp %15 : vector<512x32xf32>
    %cst_15 = arith.constant 1.000000e+00 : f32
    %17 = vector.broadcast %cst_15 : f32 to vector<512x32xf32>
    %18 = arith.subf %16, %17 : vector<512x32xf32>
    %19 = arith.select %13, %11, %18 : vector<512x32xi1>, vector<512x32xf32>
    %20 = vector.shape_cast %19 : vector<512x32xf32> to vector<32x16x32xf32>
    "tpu.trace_start"() <{level = 10 : i32, message = "tbn,tnh->tbh"}> : () -> ()
    %cst_16 = arith.constant dense<0.000000e+00> : vector<32x16x32xf32>
    %21 = tpu.matmul %4, %20, %cst_16 {dimension_numbers = #tpu.dot_dimension_numbers<[2], [1], [1], [2], [0, 0, 0, 1, 1, 2], [0], [0]>} : vector<32x16x16xf32>, vector<32x16x32xf32>, vector<32x16x32xf32> -> vector<32x16x32xf32>
    "tpu.trace_stop"() : () -> ()
    %22 = vector.shape_cast %21 : vector<32x16x32xf32> to vector<512x32xf32>
    %c0_17 = arith.constant 0 : index
    %c0_18 = arith.constant 0 : index
    %23 = vector.load %arg6[%c0_17, %c0_18] : memref<64x32xf32, #tpu.memory_space<vmem>>, vector<32x32xf32>
    %cst_19 = arith.constant dense<0.000000e+00> : vector<512x32xf32>
    %24 = tpu.matmul %19, %23, %cst_19 {dimension_numbers = #tpu.dot_dimension_numbers<[1], [0], [0], [1], [0, 0, 1, 1], [], []>} : vector<512x32xf32>, vector<32x32xf32>, vector<512x32xf32> -> vector<512x32xf32>
    %c32 = arith.constant 32 : index
    %c0_20 = arith.constant 0 : index
    %25 = vector.load %arg6[%c32, %c0_20] : memref<64x32xf32, #tpu.memory_space<vmem>>, vector<32x32xf32>
    %cst_21 = arith.constant dense<0.000000e+00> : vector<512x32xf32>
    %26 = tpu.matmul %22, %25, %cst_21 {dimension_numbers = #tpu.dot_dimension_numbers<[1], [0], [0], [1], [0, 0, 1, 1], [], []>} : vector<512x32xf32>, vector<32x32xf32>, vector<512x32xf32> -> vector<512x32xf32>
    %27 = arith.addf %24, %26 : vector<512x32xf32>
    %c0_22 = arith.constant 0 : index
    %c0_23 = arith.constant 0 : index
    %28 = vector.load %arg7[%c0_22, %c0_23] : memref<1x32xf32, #tpu.memory_space<vmem>>, vector<1x32xf32>
    %29 = vector.broadcast %28 : vector<1x32xf32> to vector<512x32xf32>
    %30 = arith.addf %27, %29 : vector<512x32xf32>
    %cst_24 = arith.constant 0.000000e+00 : f32
    %31 = vector.broadcast %cst_24 : f32 to vector<512x32xf32>
    %32 = arith.cmpf ogt, %30, %31 : vector<512x32xf32>
    %cst_25 = arith.constant 0.000000e+00 : f32
    %33 = vector.broadcast %cst_25 : f32 to vector<512x32xf32>
    %34 = arith.minimumf %30, %33 : vector<512x32xf32>
    %35 = math.exp %34 : vector<512x32xf32>
    %cst_26 = arith.constant 1.000000e+00 : f32
    %36 = vector.broadcast %cst_26 : f32 to vector<512x32xf32>
    %37 = arith.subf %35, %36 : vector<512x32xf32>
    %38 = arith.select %32, %30, %37 : vector<512x32xi1>, vector<512x32xf32>
    %c0_27 = arith.constant 0 : index
    %c0_28 = arith.constant 0 : index
    %39 = vector.load %arg8[%c0_27, %c0_28] : memref<8x32xf32, #tpu.memory_space<vmem>>, vector<8x32xf32>
    "tpu.trace_start"() <{level = 10 : i32, message = "ch,nh->cn"}> : () -> ()
    %cst_29 = arith.constant dense<0.000000e+00> : vector<8x512xf32>
    %40 = tpu.matmul %39, %38, %cst_29 {dimension_numbers = #tpu.dot_dimension_numbers<[1], [1], [0], [0], [0, 0, 1, 0], [], []>} : vector<8x32xf32>, vector<512x32xf32>, vector<8x512xf32> -> vector<8x512xf32>
    "tpu.trace_stop"() : () -> ()
    %c0_30 = arith.constant 0 : index
    %c0_31 = arith.constant 0 : index
    %41 = vector.load %arg9[%c0_30, %c0_31] : memref<8x1xf32, #tpu.memory_space<vmem>>, vector<8x1xf32>
    %42 = vector.broadcast %41 : vector<8x1xf32> to vector<8x512xf32>
    %43 = arith.addf %40, %42 : vector<8x512xf32>
    %c0_32 = arith.constant 0 : index
    %c0_33 = arith.constant 0 : index
    %44 = vector.load %arg10[%c0_32, %c0_33] : memref<8x512xf32, #tpu.memory_space<vmem>>, vector<8x512xf32>
    tpu.vector_store %arg10[%c0_32, %c0_33], %43 {strides = array<i32>} : memref<8x512xf32, #tpu.memory_space<vmem>>, vector<8x512xf32>,
    return
  }
  func.func @transform_0(%arg0: i32) -> (i32, i32, i32) {
    %c0_i32 = arith.constant 0 : i32
    %c0_i32_0 = arith.constant 0 : i32
    %c0_i32_1 = arith.constant 0 : i32
    return %arg0, %c0_i32, %c0_i32_0 : i32, i32, i32
  }
  func.func @transform_1(%arg0: i32) -> (i32, i32, i32) {
    %c0_i32 = arith.constant 0 : i32
    %c0_i32_0 = arith.constant 0 : i32
    %c0_i32_1 = arith.constant 0 : i32
    return %arg0, %c0_i32, %c0_i32_0 : i32, i32, i32
  }
  func.func @transform_2(%arg0: i32) -> (i32, i32, i32) {
    %c0_i32 = arith.constant 0 : i32
    %c0_i32_0 = arith.constant 0 : i32
    %c0_i32_1 = arith.constant 0 : i32
    return %arg0, %c0_i32, %c0_i32_0 : i32, i32, i32
  }
  func.func @transform_3(%arg0: i32) -> (i32, i32) {
    %c0_i32 = arith.constant 0 : i32
    %c0_i32_0 = arith.constant 0 : i32
    %c0_i32_1 = arith.constant 0 : i32
    return %c0_i32, %c0_i32_0 : i32, i32
  }
  func.func @transform_4(%arg0: i32) -> (i32, i32) {
    %c0_i32 = arith.constant 0 : i32
    %c0_i32_0 = arith.constant 0 : i32
    %c0_i32_1 = arith.constant 0 : i32
    return %c0_i32, %c0_i32_0 : i32, i32
  }
  func.func @transform_5(%arg0: i32) -> (i32, i32) {
    %c0_i32 = arith.constant 0 : i32
    %c0_i32_0 = arith.constant 0 : i32
    %c0_i32_1 = arith.constant 0 : i32
    return %c0_i32, %c0_i32_0 : i32, i32
  }
  func.func @transform_6(%arg0: i32) -> (i32, i32) {
    %c0_i32 = arith.constant 0 : i32
    %c0_i32_0 = arith.constant 0 : i32
    %c0_i32_1 = arith.constant 0 : i32
    return %c0_i32, %c0_i32_0 : i32, i32
  }
  func.func @transform_7(%arg0: i32) -> (i32, i32) {
    %c0_i32 = arith.constant 0 : i32
    %c0_i32_0 = arith.constant 0 : i32
    %c0_i32_1 = arith.constant 0 : i32
    return %c0_i32, %c0_i32_0 : i32, i32
  }
  func.func @transform_8(%arg0: i32) -> (i32, i32) {
    %c0_i32 = arith.constant 0 : i32
    %c0_i32_0 = arith.constant 0 : i32
    %c0_i32_1 = arith.constant 0 : i32
    return %c0_i32, %c0_i32_0 : i32, i32
  }
  func.func @transform_9(%arg0: i32) -> (i32, i32) {
    %c0_i32 = arith.constant 0 : i32
    %c0_i32_0 = arith.constant 0 : i32
    return %c0_i32, %arg0 : i32, i32
  }
}

</mosaic_0001>

<bundles_post_ra>
// kernel: squeeze.2
= control target key start
LH: loop header
LB: loop body
LE: loop exit
PB: predicated region body
PF: predicated region fallthrough
CT: control target
= control target key end

     0   :  { %vm3_vm0 = vcmask 130048   ;;  %s84_s8 = smov 80   ;;  %s85_s13 = smov 96   ;;  %s167_s0 = inlined_call_operand.vmem [shape: f32[1024], index: 0, kind: input, shape index: {}]   ;;  %s168_s1 = inlined_call_operand.vmem [shape: f32[64,16], index: 1, kind: output, shape index: {}]  }
   0x1   :  { %v6_v0 = vld [vmem:[%s167_s0] sm:$0xff]   ;;  %s83_s0 = smov 112   ;;  %s86_s14 = smov 64  }
   0x2   :  { %7 = vrot.lane.b32.xlu0 %v6_v0, %s83_s0  ;;  %23 = vrot.lane.b32.xlu1 %v6_v0, %s84_s8  ;;  %4 = vst.msk [vmem:[%s168_s1] ss:$8 sm:$0xf] %vm3_vm0, %v6_v0   ;;  %5 = vst.msk [vmem:[%s168_s1] ss:$8 sm:$0xf0] %vm3_vm0, %v6_v0  }
   0x3   :  { %s87_s15 = smov 48   ;;  %s88_s16 = smov 32  }
   0x4   :  { %s89_s17 = smov 16  }
   0x6   :  { %15 = vrot.lane.b32.xlu0 %v6_v0, %s85_s13  ;;  %31 = vrot.lane.b32.xlu1 %v6_v0, %s86_s14 }
   0xa   :  { %39 = vrot.lane.b32.xlu0 %v6_v0, %s87_s15  ;;  %47 = vrot.lane.b32.xlu1 %v6_v0, %s88_s16 }
   0xe   :  { %55 = vrot.lane.b32.xlu0 %v6_v0, %s89_s17 }
  0x74   :  { %v8_v1 = vpop.permute.xlu0 %7   ;;  %v24_v2 = vpop.permute.xlu1 %23  }
  0x75   :  { %62 = vst.msk [vmem:[%s168_s1 + $0x1] ss:$8 sm:$0xf] %vm3_vm0, %v8_v1   ;;  %63 = vst.msk [vmem:[%s168_s1 + $0x1] ss:$8 sm:$0xf0] %vm3_vm0, %v8_v1  }
  0x76   :  { %66 = vst.msk [vmem:[%s168_s1 + $0x3] ss:$8 sm:$0xf] %vm3_vm0, %v24_v2   ;;  %67 = vst.msk [vmem:[%s168_s1 + $0x3] ss:$8 sm:$0xf0] %vm3_vm0, %v24_v2  }
  0x78   :  { %v16_v3 = vpop.permute.xlu0 %15   ;;  %v32_v4 = vpop.permute.xlu1 %31  }
  0x79   :  { %64 = vst.msk [vmem:[%s168_s1 + $0x2] ss:$8 sm:$0xf] %vm3_vm0, %v16_v3   ;;  %65 = vst.msk [vmem:[%s168_s1 + $0x2] ss:$8 sm:$0xf0] %vm3_vm0, %v16_v3  }
  0x7a   :  { %68 = vst.msk [vmem:[%s168_s1 + $0x4] ss:$8 sm:$0xf] %vm3_vm0, %v32_v4   ;;  %69 = vst.msk [vmem:[%s168_s1 + $0x4] ss:$8 sm:$0xf0] %vm3_vm0, %v32_v4  }
  0x7c   :  { %v40_v5 = vpop.permute.xlu0 %39   ;;  %v48_v6 = vpop.permute.xlu1 %47  }
  0x7d   :  { %70 = vst.msk [vmem:[%s168_s1 + $0x5] ss:$8 sm:$0xf] %vm3_vm0, %v40_v5   ;;  %71 = vst.msk [vmem:[%s168_s1 + $0x5] ss:$8 sm:$0xf0] %vm3_vm0, %v40_v5  }
  0x7e   :  { %72 = vst.msk [vmem:[%s168_s1 + $0x6] ss:$8 sm:$0xf] %vm3_vm0, %v48_v6   ;;  %73 = vst.msk [vmem:[%s168_s1 + $0x6] ss:$8 sm:$0xf0] %vm3_vm0, %v48_v6  }
  0x80   :  { %v56_v7 = vpop.permute.xlu0 %55  }
  0x81   :  { %74 = vst.msk [vmem:[%s168_s1 + $0x7] ss:$8 sm:$0xf] %vm3_vm0, %v56_v7   ;;  %75 = vst.msk [vmem:[%s168_s1 + $0x7] ss:$8 sm:$0xf0] %vm3_vm0, %v56_v7  }

// kernel: sub.9
= control target key start
LH: loop header
LB: loop body
LE: loop exit
PB: predicated region body
PF: predicated region fallthrough
CT: control target
= control target key end

     0   :  { %3 = vsyncpa [#allocation1], 0  ;;  %s80_s0 = inlined_call_operand.vmem [shape: f32[64], index: 0, kind: input, shape index: {}]   ;;  %s81_s1 = inlined_call_operand.vmem [shape: f32[64], index: 1, kind: input, shape index: {}]   ;;  %s82_s2 = inlined_call_operand.hbm [shape: f32[64], index: 2, kind: output, shape index: {}]  }
   0x1   :  { %v4_v0 = vld [vmem:[%s80_s0] sm:$0x1] }
   0x2   :  { %v5_v1 = vld [vmem:[%s81_s1] sm:$0x1]  ;;  %s46_s1 = smov [#allocation0]  }
   0x3   :  { %v8_v2 = vsub.f32 %v4_v0, %v5_v1  ;;  %s15_s12 = sshll.u32 %s46_s1, 4  ;;  %s16_s12 = int_to_ptr.vmem [resolvable:$true] %s15_s12 }
   0x4   :  { %s22_s13 = scalar_lea.vmem %s16_s12, 16  ;;  %s26_s14 = scalar_lea.vmem %s16_s12, 32 }
   0x5   :  { %10 = vst [vmem:[#allocation0] sm:$0x1] %v8_v2  ;;  %p23_p0 = scmp.ne.s32.totalorder %s16_s12, %s22_s13  ;;  %p27_p1 = scmp.lt.s32.totalorder %s16_s12, %s16_s12 }
   0x6   :  { %p28_p2 = scmp.lt.s32.totalorder %s26_s14, %s22_s13 }
   0x8   :  { %p29_p3 = por %p28_p2, %p27_p1 }
   0xa   :  { %p30_p4 = pnand %p29_p3, %p23_p0 }
   0xc   :  { %33 = shalt.err (!%p30_p4)
}
   0xd   :  { %s34_s17 = scalar_lea.hbm %s82_s2, 16 }
   0xe   :  { %p35_p5 = scmp.ne.s32.totalorder %s82_s2, %s34_s17  ;;  %p38_p6 = scmp.lt.u32.totalorder %s34_s17, %s82_s2 }
  0x10   :  { %p40_p7 = pnand %p38_p6, %p35_p5 }
  0x12   :  { %43 = shalt.err (!%p40_p7)
}
  0x13   :  { %18 = dma.vmem_to_hbm [thread:$0]  %s16_s12, 16, %s82_s2, [#allocation1]  }
  0x14   :  { %44 = dma.done.wait [#allocation1], 16  }
  0x15   :  { %45 = vsyncadd [#allocation1], 4294967280 }
  0x16   :  { %20 = vsyncpa [#allocation1], 1 }

// kernel: _lambda_.1
= control target key start
LH: loop header
LB: loop body
LE: loop exit
PB: predicated region body
PF: predicated region fallthrough
CT: control target
= control target key end

     0   :  { %s11808_s30 = smov 0   ;;  %s14089_s0 = inlined_call_operand.vmem [shape: f32[64,16,8], index: 0, kind: input, shape index: {}]   ;;  %s14090_s1 = inlined_call_operand.vmem [shape: bf16[64,16,16], index: 1, kind: input, shape index: {}]   ;;  %s14091_s2 = inlined_call_operand.vmem [shape: bf16[64,16,16], index: 2, kind: input, shape index: {}]   ;;  %s14092_s3 = inlined_call_operand.vmem [shape: f32[8,32], index: 3, kind: input, shape index: {}]   ;;  %s14093_s4 = inlined_call_operand.vmem [shape: f32[1,32], index: 4, kind: input, shape index: {}]   ;;  %s14094_s5 = inlined_call_operand.vmem [shape: f32[64,32], index: 5, kind: input, shape index: {}]   ;;  %s14095_s6 = inlined_call_operand.vmem [shape: f32[1,32], index: 6, kind: input, shape index: {}]   ;;  %s14096_s7 = inlined_call_operand.vmem [shape: f32[8,32], index: 7, kind: input, shape index: {}]   ;;  %s14097_s8 = inlined_call_operand.vmem [shape: f32[8,1], index: 8, kind: input, shape index: {}]   ;;  %s14098_s9 = inlined_call_operand.vmem [shape: f32[8,1024], index: 9, kind: output, shape index: {}]  }
   0x1 LB: > { %s8910_s10 = sadd.s32 4294967295, %s11755_s30   ;;  %p8914_p0 = scmp.ge.s32.totalorder %s11755_s30, 1  ;;  %s11755_s30 = sphi %s11808_s30, %s19_s30  }
   0x2   : > { %p313_p1 = scmp.lt.s32.totalorder %s11755_s30, 3 }
   0x4   : > { %p314_p2 = pnand %p8914_p0, %p313_p1 }
   0x6   : > { %317 = sbr.rel (%p314_p2) target bundleno = 1347 (0x543), region = 56 }
   0xd   : > { %s8915_s11 = sshll.u32 %s8910_s10, 5  ;;  %vm709_vm0 = vcmask 130048   ;;  %vm3310_vm1 = vcmask 64512   ;;  %s8924_s17 = sshll.u32 %s8910_s10, 2 }
   0xe   : > { %p363_p3 = scmp.lt.s32.totalorder %s8915_s11, 63  ;;  %p384_p4 = scmp.lt.s32.totalorder %s8924_s17, 7 }
  0x10   : > { %s14211_s11 = smov (!%p363_p3, %s8915_s11), 63  ;;  %s14213_s17 = smov (!%p384_p4, %s8924_s17), 7 }
  0x11   : > { %s9444_s12 = sshll.u32 %s14211_s11, 4  ;;  %s9445_s13 = sshll.u32 %s14211_s11, 3 }
  0x12   : > { %s11825_s16 = scalar_lea.vmem %s14089_s0, %s9444_s12  ;;  %s11832_s19 = scalar_lea.vmem %s14090_s1, %s9445_s13 }
  0x13   : > { %v389_v0 = vld [vmem:[%s11825_s16] sm:$0xff]  ;;  %v390_v1 = vld [vmem:[%s11825_s16 + $0x8] sm:$0xff]  ;;  %v391_v5 = vld [vmem:[%s11825_s16 + $0x10] sm:$0xff]  ;;  %s12055_s24 = scalar_lea.vmem %s14091_s2, %s9445_s13  ;;  %s8925_s18 = sshll.u32 %s14213_s17, 3 }
  0x14   : > { %v9448_v2 = vld [vmem:[%s11832_s19] sm:$0xff]   ;;  %v11044_v3 = vpack.c.bf16 %v390_v1, %v389_v0  ;;  %v392_v6 = vld [vmem:[%s11825_s16 + $0x18] sm:$0xff]  ;;  %v9703_v7 = vld [vmem:[%s11832_s19 + $0x8] sm:$0xff]   ;;  %s387_s21 = scalar_lea.vmem %s14098_s9, %s8925_s18 }
  0x15   : > { %v9449_v4 = vunpack.c.l.bf16 %v9448_v2  ;;  %v11048_v8 = vpack.c.bf16 %v392_v6, %v391_v5  ;;  %v9453_v9 = vunpack.c.l.bf16 %v9703_v7  ;;  %v393_v10 = vld [vmem:[%s11825_s16 + $0x20] sm:$0xff]  ;;  %v394_v11 = vld [vmem:[%s11825_s16 + $0x28] sm:$0xff]  ;;  %v9704_v12 = vld [vmem:[%s11832_s19 + $0x10] sm:$0xff]   ;;  %v9450_v13 = vunpack.c.h.bf16 %v9448_v2 }
  0x16   : > { %11045 = vmatprep.subr.bf16.mxu0 %v11044_v3  ;;  %v11052_v14 = vpack.c.bf16 %v394_v11, %v393_v10  ;;  %v395_v15 = vld [vmem:[%s11825_s16 + $0x30] sm:$0xff]  ;;  %v396_v16 = vld [vmem:[%s11825_s16 + $0x38] sm:$0xff]  ;;  %v9454_v18 = vunpack.c.h.bf16 %v9703_v7  ;;  %v397_v20 = vld [vmem:[%s11825_s16 + $0x40] sm:$0xff]  ;;  %v9457_v22 = vunpack.c.l.bf16 %v9704_v12  ;;  %v9458_v28 = vunpack.c.h.bf16 %v9704_v12 }
  0x17   : > { %10294 = vmatprep.mubr.msk.f32.mxu0 %vm709_vm0, %v9449_v4  ;;  %v9705_v17 = vld [vmem:[%s11832_s19 + $0x18] sm:$0xff]   ;;  %11047 = vmatpush3.bf16.msra.mxu0 %v11044_v3  ;;  %v11056_v19 = vpack.c.bf16 %v396_v16, %v395_v15  ;;  %v398_v21 = vld [vmem:[%s11825_s16 + $0x48] sm:$0xff]  ;;  %v399_v23 = vld [vmem:[%s11825_s16 + $0x50] sm:$0xff] }
  0x18   : > { %11049 = vmatprep.subr.bf16.mxu1 %v11048_v8  ;;  %10301 = vmatprep.mubr.msk.f32.mxu1 %vm709_vm0, %v9453_v9  ;;  %v400_v24 = vld [vmem:[%s11825_s16 + $0x58] sm:$0xff]  ;;  %v9461_v25 = vunpack.c.l.bf16 %v9705_v17  ;;  %v11060_v26 = vpack.c.bf16 %v398_v21, %v397_v20  ;;  %v9706_v27 = vld [vmem:[%s11832_s19 + $0x20] sm:$0xff]   ;;  %v9707_v30 = vld [vmem:[%s11832_s19 + $0x28] sm:$0xff]   ;;  %v9462_v33 = vunpack.c.h.bf16 %v9705_v17 }
  0x19   : > { %11051 = vmatpush3.bf16.msra.mxu1 %v11048_v8  ;;  %11053 = vmatprep.subr.bf16.mxu0 %v11052_v14  ;;  %v11064_v29 = vpack.c.bf16 %v400_v24, %v399_v23  ;;  %v401_v31 = vld [vmem:[%s11825_s16 + $0x60] sm:$0xff]  ;;  %v402_v32 = vld [vmem:[%s11825_s16 + $0x68] sm:$0xff]  ;;  %v403_v34 = vld [vmem:[%s11825_s16 + $0x70] sm:$0xff]  ;;  %v9465_v36 = vunpack.c.l.bf16 %v9706_v27  ;;  %v9469_v37 = vunpack.c.l.bf16 %v9707_v30  ;;  %v9466_v40 = vunpack.c.h.bf16 %v9706_v27 }
  0x1a   : > { %11057 = vmatprep.subr.bf16.mxu1 %v11056_v19  ;;  %10295 = vmatmul.mubr.msk.f32.vlgmr.msra.gmra.mrb[0].mxu0 %vm709_vm0, %v9450_v13  ;;  %v404_v35 = vld [vmem:[%s11825_s16 + $0x78] sm:$0xff]  ;;  %v11068_v38 = vpack.c.bf16 %v402_v32, %v401_v31  ;;  %v9708_v39 = vld [vmem:[%s11832_s19 + $0x30] sm:$0xff]   ;;  %v405_v43 = vld [vmem:[%s11825_s16 + $0x80] sm:$0xff]  ;;  %v9470_v45 = vunpack.c.h.bf16 %v9707_v30 }
  0x1b   : > { %11055 = vmatpush3.bf16.msra.mxu0 %v11052_v14  ;;  %10308 = vmatprep.mubr.msk.f32.mxu0 %vm709_vm0, %v9457_v22  ;;  %v11072_v41 = vpack.c.bf16 %v404_v35, %v403_v34  ;;  %v9709_v42 = vld [vmem:[%s11832_s19 + $0x38] sm:$0xff]   ;;  %v406_v44 = vld [vmem:[%s11825_s16 + $0x88] sm:$0xff]  ;;  %v407_v46 = vld [vmem:[%s11825_s16 + $0x90] sm:$0xff]  ;;  %v9473_v48 = vunpack.c.l.bf16 %v9708_v39  ;;  %v9474_v52 = vunpack.c.h.bf16 %v9708_v39 }
  0x1c   : > { %10302 = vmatmul.mubr.msk.f32.vlgmr.msra.gmra.mrb[0].mxu1 %vm709_vm0, %v9454_v18  ;;  %11061 = vmatprep.subr.bf16.mxu0 %v11060_v26  ;;  %v408_v47 = vld [vmem:[%s11825_s16 + $0x98] sm:$0xff]  ;;  %v9477_v49 = vunpack.c.l.bf16 %v9709_v42  ;;  %v11076_v50 = vpack.c.bf16 %v406_v44, %v405_v43  ;;  %v9710_v51 = vld [vmem:[%s11832_s19 + $0x40] sm:$0xff]   ;;  %v9711_v54 = vld [vmem:[%s11832_s19 + $0x48] sm:$0xff]   ;;  %v9478_v57 = vunpack.c.h.bf16 %v9709_v42 }
  0x1d   : > { %11059 = vmatpush3.bf16.msra.mxu1 %v11056_v19  ;;  %10315 = vmatprep.mubr.msk.f32.mxu1 %vm709_vm0, %v9461_v25  ;;  %v11080_v53 = vpack.c.bf16 %v408_v47, %v407_v46  ;;  %v409_v55 = vld [vmem:[%s11825_s16 + $0xa0] sm:$0xff]  ;;  %v410_v56 = vld [vmem:[%s11825_s16 + $0xa8] sm:$0xff]  ;;  %v411_v58 = vld [vmem:[%s11825_s16 + $0xb0] sm:$0xff]  ;;  %v9481_v60 = vunpack.c.l.bf16 %v9710_v51  ;;  %v9485_v61 = vunpack.c.l.bf16 %v9711_v54  ;;  %v9482_v0 = vunpack.c.h.bf16 %v9710_v51 }
  0x1e   : > { %10309 = vmatmul.mubr.msk.f32.vlgmr.msra.gmra.mrb[2].mxu0 %vm709_vm0, %v9458_v28  ;;  %11065 = vmatprep.subr.bf16.mxu1 %v11064_v29  ;;  %v412_v59 = vld [vmem:[%s11825_s16 + $0xb8] sm:$0xff]  ;;  %v11084_v62 = vpack.c.bf16 %v410_v56, %v409_v55  ;;  %v9712_v63 = vld [vmem:[%s11832_s19 + $0x50] sm:$0xff]   ;;  %v413_v3 = vld [vmem:[%s11825_s16 + $0xc0] sm:$0xff]  ;;  %v9486_v5 = vunpack.c.h.bf16 %v9711_v54 }
  0x1f   : > { %11063 = vmatpush3.bf16.msra.mxu0 %v11060_v26  ;;  %10322 = vmatprep.mubr.msk.f32.mxu0 %vm709_vm0, %v9465_v36  ;;  %v11088_v1 = vpack.c.bf16 %v412_v59, %v411_v58  ;;  %v9713_v2 = vld [vmem:[%s11832_s19 + $0x58] sm:$0xff]   ;;  %v414_v4 = vld [vmem:[%s11825_s16 + $0xc8] sm:$0xff]  ;;  %v415_v6 = vld [vmem:[%s11825_s16 + $0xd0] sm:$0xff]  ;;  %v9489_v8 = vunpack.c.l.bf16 %v9712_v63  ;;  %v9490_v12 = vunpack.c.h.bf16 %v9712_v63 }
  0x20   : > { %10316 = vmatmul.mubr.msk.f32.vlgmr.msra.gmra.mrb[2].mxu1 %vm709_vm0, %v9462_v33  ;;  %11069 = vmatprep.subr.bf16.mxu0 %v11068_v38  ;;  %v416_v7 = vld [vmem:[%s11825_s16 + $0xd8] sm:$0xff]  ;;  %v9493_v9 = vunpack.c.l.bf16 %v9713_v2  ;;  %v11092_v10 = vpack.c.bf16 %v414_v4, %v413_v3  ;;  %v9714_v11 = vld [vmem:[%s11832_s19 + $0x60] sm:$0xff]   ;;  %v9715_v14 = vld [vmem:[%s11832_s19 + $0x68] sm:$0xff]   ;;  %v9494_v17 = vunpack.c.h.bf16 %v9713_v2 }
  0x21   : > { %11067 = vmatpush3.bf16.msra.mxu1 %v11064_v29  ;;  %10329 = vmatprep.mubr.msk.f32.mxu1 %vm709_vm0, %v9469_v37  ;;  %v11096_v13 = vpack.c.bf16 %v416_v7, %v415_v6  ;;  %v417_v15 = vld [vmem:[%s11825_s16 + $0xe0] sm:$0xff]  ;;  %v418_v16 = vld [vmem:[%s11825_s16 + $0xe8] sm:$0xff]  ;;  %v419_v18 = vld [vmem:[%s11825_s16 + $0xf0] sm:$0xff]  ;;  %v9497_v20 = vunpack.c.l.bf16 %v9714_v11  ;;  %v9501_v21 = vunpack.c.l.bf16 %v9715_v14  ;;  %v9498_v24 = vunpack.c.h.bf16 %v9714_v11 }
  0x22   : > { %10323 = vmatmul.mubr.msk.f32.vlgmr.msra.gmra.mrb[4].mxu0 %vm709_vm0, %v9466_v40  ;;  %11073 = vmatprep.subr.bf16.mxu1 %v11072_v41  ;;  %v420_v19 = vld [vmem:[%s11825_s16 + $0xf8] sm:$0xff]  ;;  %v11100_v22 = vpack.c.bf16 %v418_v16, %v417_v15  ;;  %v9716_v23 = vld [vmem:[%s11832_s19 + $0x70] sm:$0xff]   ;;  %v421_v27 = vld [vmem:[%s11825_s16 + $0x100] sm:$0xff]  ;;  %v9502_v29 = vunpack.c.h.bf16 %v9715_v14 }
  0x23   : > { %11071 = vmatpush3.bf16.msra.mxu0 %v11068_v38  ;;  %10336 = vmatprep.mubr.msk.f32.mxu0 %vm709_vm0, %v9473_v48  ;;  %v11104_v25 = vpack.c.bf16 %v420_v19, %v419_v18  ;;  %v9717_v26 = vld [vmem:[%s11832_s19 + $0x78] sm:$0xff]   ;;  %v422_v28 = vld [vmem:[%s11825_s16 + $0x108] sm:$0xff]  ;;  %v423_v30 = vld [vmem:[%s11825_s16 + $0x110] sm:$0xff]  ;;  %v9505_v32 = vunpack.c.l.bf16 %v9716_v23  ;;  %v9506_v36 = vunpack.c.h.bf16 %v9716_v23 }
  0x24   : > { %10330 = vmatmul.mubr.msk.f32.vlgmr.msra.gmra.mrb[4].mxu1 %vm709_vm0, %v9470_v45  ;;  %11077 = vmatprep.subr.bf16.mxu0 %v11076_v50  ;;  %v424_v31 = vld [vmem:[%s11825_s16 + $0x118] sm:$0xff]  ;;  %v9509_v33 = vunpack.c.l.bf16 %v9717_v26  ;;  %v11108_v34 = vpack.c.bf16 %v422_v28, %v421_v27  ;;  %v9718_v35 = vld [vmem:[%s11832_s19 + $0x80] sm:$0xff]   ;;  %v9719_v38 = vld [vmem:[%s11832_s19 + $0x88] sm:$0xff]  }
  0x25   : > { %11075 = vmatpush3.bf16.msra.mxu1 %v11072_v41  ;;  %10343 = vmatprep.mubr.msk.f32.mxu1 %vm709_vm0, %v9477_v49  ;;  %v11112_v37 = vpack.c.bf16 %v424_v31, %v423_v30  ;;  %v425_v39 = vld [vmem:[%s11825_s16 + $0x120] sm:$0xff]  ;;  %v426_v40 = vld [vmem:[%s11825_s16 + $0x128] sm:$0xff]  ;;  %v9510_v41 = vunpack.c.h.bf16 %v9717_v26  ;;  %v427_v42 = vld [vmem:[%s11825_s16 + $0x130] sm:$0xff]  ;;  %v9513_v44 = vunpack.c.l.bf16 %v9718_v35  ;;  %v9517_v45 = vunpack.c.l.bf16 %v9719_v38 }
  0x26   : > { %10337 = vmatmul.mubr.msk.f32.vlgmr.msra.gmra.mrb[6].mxu0 %vm709_vm0, %v9474_v52  ;;  %11081 = vmatprep.subr.bf16.mxu1 %v11080_v53  ;;  %v428_v43 = vld [vmem:[%s11825_s16 + $0x138] sm:$0xff]  ;;  %v11116_v46 = vpack.c.bf16 %v426_v40, %v425_v39  ;;  %v9720_v47 = vld [vmem:[%s11832_s19 + $0x90] sm:$0xff]   ;;  %v9514_v48 = vunpack.c.h.bf16 %v9718_v35  ;;  %v429_v51 = vld [vmem:[%s11825_s16 + $0x140] sm:$0xff] }
  0x27   : > { %11079 = vmatpush3.bf16.msra.mxu0 %v11076_v50  ;;  %10350 = vmatprep.mubr.msk.f32.mxu0 %vm709_vm0, %v9481_v60  ;;  %v11120_v49 = vpack.c.bf16 %v428_v43, %v427_v42  ;;  %v9721_v50 = vld [vmem:[%s11832_s19 + $0x98] sm:$0xff]   ;;  %v430_v52 = vld [vmem:[%s11825_s16 + $0x148] sm:$0xff]  ;;  %v431_v54 = vld [vmem:[%s11825_s16 + $0x150] sm:$0xff]  ;;  %v9521_v56 = vunpack.c.l.bf16 %v9720_v47  ;;  %v9522_v60 = vunpack.c.h.bf16 %v9720_v47 }
  0x28   : > { %10344 = vmatmul.mubr.msk.f32.vlgmr.msra.gmra.mrb[6].mxu1 %vm709_vm0, %v9478_v57  ;;  %11085 = vmatprep.subr.bf16.mxu0 %v11084_v62  ;;  %v432_v55 = vld [vmem:[%s11825_s16 + $0x158] sm:$0xff]  ;;  %v9525_v57 = vunpack.c.l.bf16 %v9721_v50  ;;  %v11124_v58 = vpack.c.bf16 %v430_v52, %v429_v51  ;;  %v9722_v59 = vld [vmem:[%s11832_s19 + $0xa0] sm:$0xff]   ;;  %v435_v2 = vld [vmem:[%s11825_s16 + $0x170] sm:$0xff] }
  0x29   : > { %11083 = vmatpush3.bf16.msra.mxu1 %v11080_v53  ;;  %10357 = vmatprep.mubr.msk.f32.mxu1 %vm709_vm0, %v9485_v61  ;;  %v9518_v53 = vunpack.c.h.bf16 %v9719_v38  ;;  %v11128_v61 = vpack.c.bf16 %v432_v55, %v431_v54  ;;  %v433_v63 = vld [vmem:[%s11825_s16 + $0x160] sm:$0xff]  ;;  %v436_v3 = vld [vmem:[%s11825_s16 + $0x178] sm:$0xff]  ;;  %v9529_v4 = vunpack.c.l.bf16 %v9722_v59  ;;  %v9724_v7 = vld [vmem:[%s11832_s19 + $0xb0] sm:$0xff]  }
  0x2a   : > { %10351 = vmatmul.mubr.msk.f32.vlgmr.msra.gmra.mrb[8].mxu0 %vm709_vm0, %v9482_v0  ;;  %11089 = vmatprep.subr.bf16.mxu1 %v11088_v1  ;;  %v434_v0 = vld [vmem:[%s11825_s16 + $0x168] sm:$0xff]  ;;  %v437_v11 = vld [vmem:[%s11825_s16 + $0x180] sm:$0xff]  ;;  %v439_v14 = vld [vmem:[%s11825_s16 + $0x190] sm:$0xff]  ;;  %v9537_v16 = vunpack.c.l.bf16 %v9724_v7 }
  0x2b   : > { %11087 = vmatpush3.bf16.msra.mxu0 %v11084_v62  ;;  %10364 = vmatprep.mubr.msk.f32.mxu0 %vm709_vm0, %v9489_v8  ;;  %v9723_v62 = vld [vmem:[%s11832_s19 + $0xa8] sm:$0xff]   ;;  %v11132_v6 = vpack.c.bf16 %v434_v0, %v433_v63  ;;  %v9530_v8 = vunpack.c.h.bf16 %v9722_v59  ;;  %v440_v15 = vld [vmem:[%s11825_s16 + $0x198] sm:$0xff]  ;;  %v9726_v19 = vld [vmem:[%s11832_s19 + $0xc0] sm:$0xff]  }
  0x2c   : > { %10358 = vmatmul.mubr.msk.f32.vlgmr.msra.gmra.mrb[8].mxu1 %vm709_vm0, %v9486_v5  ;;  %11093 = vmatprep.subr.bf16.mxu0 %v11092_v10  ;;  %v9533_v5 = vunpack.c.l.bf16 %v9723_v62  ;;  %v441_v23 = vld [vmem:[%s11825_s16 + $0x1a0] sm:$0xff]  ;;  %v443_v26 = vld [vmem:[%s11825_s16 + $0x1b0] sm:$0xff]  ;;  %v444_v27 = vld [vmem:[%s11825_s16 + $0x1b8] sm:$0xff]  ;;  %v9545_v28 = vunpack.c.l.bf16 %v9726_v19 }
  0x2d   : > { %11091 = vmatpush3.bf16.msra.mxu1 %v11088_v1  ;;  %10371 = vmatprep.mubr.msk.f32.mxu1 %vm709_vm0, %v9493_v9  ;;  %v9526_v1 = vunpack.c.h.bf16 %v9721_v50  ;;  %v11136_v9 = vpack.c.bf16 %v436_v3, %v435_v2  ;;  %v9728_v31 = vld [vmem:[%s11832_s19 + $0xd0] sm:$0xff]   ;;  %v445_v35 = vld [vmem:[%s11825_s16 + $0x1c0] sm:$0xff]  ;;  %v448_v39 = vld [vmem:[%s11825_s16 + $0x1d8] sm:$0xff] }
  0x2e   : > { %10365 = vmatmul.mubr.msk.f32.vlgmr.msra.gmra.mrb[10].mxu0 %vm709_vm0, %v9490_v12  ;;  %11097 = vmatprep.subr.bf16.mxu1 %v11096_v13  ;;  %v438_v12 = vld [vmem:[%s11825_s16 + $0x188] sm:$0xff]  ;;  %v447_v38 = vld [vmem:[%s11825_s16 + $0x1d0] sm:$0xff]  ;;  %v9553_v40 = vunpack.c.l.bf16 %v9728_v31  ;;  %v9730_v43 = vld [vmem:[%s11832_s19 + $0xe0] sm:$0xff]  }
  0x2f   : > { %11095 = vmatpush3.bf16.msra.mxu0 %v11092_v10  ;;  %10378 = vmatprep.mubr.msk.f32.mxu0 %vm709_vm0, %v9497_v20  ;;  %v9725_v10 = vld [vmem:[%s11832_s19 + $0xb8] sm:$0xff]   ;;  %v11140_v18 = vpack.c.bf16 %v438_v12, %v437_v11  ;;  %v9538_v20 = vunpack.c.h.bf16 %v9724_v7  ;;  %v449_v47 = vld [vmem:[%s11825_s16 + $0x1e0] sm:$0xff]  ;;  %v451_v50 = vld [vmem:[%s11825_s16 + $0x1f0] sm:$0xff]  ;;  %v9561_v52 = vunpack.c.l.bf16 %v9730_v43 }
  0x30   : > { %10372 = vmatmul.mubr.msk.f32.vlgmr.msra.gmra.mrb[10].mxu1 %vm709_vm0, %v9494_v17  ;;  %11101 = vmatprep.subr.bf16.mxu0 %v11100_v22  ;;  %v9541_v17 = vunpack.c.l.bf16 %v9725_v10  ;;  %v452_v51 = vld [vmem:[%s11825_s16 + $0x1f8] sm:$0xff]  ;;  %v9732_v55 = vld [vmem:[%s11832_s19 + $0xf0] sm:$0xff]   ;;  %v3302_v0 = vld [vmem:[%s14092_s3] sm:$0xff] }
  0x31   : > { %11099 = vmatpush3.bf16.msra.mxu1 %v11096_v13  ;;  %10385 = vmatprep.mubr.msk.f32.mxu1 %vm709_vm0, %v9501_v21  ;;  %v9534_v13 = vunpack.c.h.bf16 %v9723_v62  ;;  %v11144_v21 = vpack.c.bf16 %v440_v15, %v439_v14  ;;  %v9570_v62 = vunpack.c.h.bf16 %v9732_v55 }
  0x32   : > { %10379 = vmatmul.mubr.msk.f32.vlgmr.msra.gmra.mrb[12].mxu0 %vm709_vm0, %v9498_v24  ;;  %11105 = vmatprep.subr.bf16.mxu1 %v11104_v25  ;;  %v442_v24 = vld [vmem:[%s11825_s16 + $0x1a8] sm:$0xff] }
  0x33   : > { %11103 = vmatpush3.bf16.msra.mxu0 %v11100_v22  ;;  %10392 = vmatprep.mubr.msk.f32.mxu0 %vm709_vm0, %v9505_v32  ;;  %v9727_v22 = vld [vmem:[%s11832_s19 + $0xc8] sm:$0xff]   ;;  %v11148_v30 = vpack.c.bf16 %v442_v24, %v441_v23  ;;  %v9546_v32 = vunpack.c.h.bf16 %v9726_v19 }
  0x34   : > { %10386 = vmatmul.mubr.msk.f32.vlgmr.msra.gmra.mrb[12].mxu1 %vm709_vm0, %v9502_v29  ;;  %11109 = vmatprep.subr.bf16.mxu0 %v11108_v34  ;;  %v9549_v29 = vunpack.c.l.bf16 %v9727_v22 }
  0x35   : > { %11107 = vmatpush3.bf16.msra.mxu1 %v11104_v25  ;;  %10399 = vmatprep.mubr.msk.f32.mxu1 %vm709_vm0, %v9509_v33  ;;  %v9542_v25 = vunpack.c.h.bf16 %v9725_v10  ;;  %v11152_v33 = vpack.c.bf16 %v444_v27, %v443_v26 }
  0x36   : > { %10393 = vmatmul.mubr.msk.f32.vlgmr.msra.gmra.mrb[14].mxu0 %vm709_vm0, %v9506_v36  ;;  %11113 = vmatprep.subr.bf16.mxu1 %v11112_v37  ;;  %v446_v36 = vld [vmem:[%s11825_s16 + $0x1c8] sm:$0xff] }
  0x37   : > { %11111 = vmatpush3.bf16.msra.mxu0 %v11108_v34  ;;  %10406 = vmatprep.mubr.msk.f32.mxu0 %vm709_vm0, %v9513_v44  ;;  %v9729_v34 = vld [vmem:[%s11832_s19 + $0xd8] sm:$0xff]   ;;  %v11156_v42 = vpack.c.bf16 %v446_v36, %v445_v35  ;;  %v9554_v44 = vunpack.c.h.bf16 %v9728_v31 }
  0x38   : > { %10400 = vmatmul.mubr.msk.f32.vlgmr.msra.gmra.mrb[14].mxu1 %vm709_vm0, %v9510_v41  ;;  %11117 = vmatprep.subr.bf16.mxu0 %v11116_v46  ;;  %v9557_v41 = vunpack.c.l.bf16 %v9729_v34 }
  0x39   : > { %11115 = vmatpush3.bf16.msra.mxu1 %v11112_v37  ;;  %10413 = vmatprep.mubr.msk.f32.mxu1 %vm709_vm0, %v9517_v45  ;;  %v9550_v37 = vunpack.c.h.bf16 %v9727_v22  ;;  %v11160_v45 = vpack.c.bf16 %v448_v39, %v447_v38 }
  0x3a   : > { %10407 = vmatmul.mubr.msk.f32.vlgmr.msra.gmra.mrb[16].mxu0 %vm709_vm0, %v9514_v48  ;;  %11121 = vmatprep.subr.bf16.mxu1 %v11120_v49  ;;  %v450_v48 = vld [vmem:[%s11825_s16 + $0x1e8] sm:$0xff] }
  0x3b   : > { %11119 = vmatpush3.bf16.msra.mxu0 %v11116_v46  ;;  %10420 = vmatprep.mubr.msk.f32.mxu0 %vm709_vm0, %v9521_v56  ;;  %v9731_v46 = vld [vmem:[%s11832_s19 + $0xe8] sm:$0xff]   ;;  %v11164_v54 = vpack.c.bf16 %v450_v48, %v449_v47  ;;  %v9562_v56 = vunpack.c.h.bf16 %v9730_v43 }
  0x3c   : > { %10414 = vmatmul.mubr.msk.f32.vlgmr.msra.gmra.mrb[16].mxu1 %vm709_vm0, %v9518_v53  ;;  %11125 = vmatprep.subr.bf16.mxu0 %v11124_v58  ;;  %v9565_v53 = vunpack.c.l.bf16 %v9731_v46  ;;  %v9566_v59 = vunpack.c.h.bf16 %v9731_v46 }
  0x3d   : > { %11123 = vmatpush3.bf16.msra.mxu1 %v11120_v49  ;;  %10427 = vmatprep.mubr.msk.f32.mxu1 %vm709_vm0, %v9525_v57  ;;  %v9558_v49 = vunpack.c.h.bf16 %v9729_v34  ;;  %v11168_v57 = vpack.c.bf16 %v452_v51, %v451_v50 }
  0x3e   : > { %10421 = vmatmul.mubr.msk.f32.vlgmr.msra.gmra.mrb[18].mxu0 %vm709_vm0, %v9522_v60  ;;  %11129 = vmatprep.subr.bf16.mxu1 %v11128_v61  ;;  %v9569_v60 = vunpack.c.l.bf16 %v9732_v55 }
  0x3f   : > { %11127 = vmatpush3.bf16.msra.mxu0 %v11124_v58  ;;  %10434 = vmatprep.mubr.msk.f32.mxu0 %vm709_vm0, %v9529_v4  ;;  %v9733_v58 = vld [vmem:[%s11832_s19 + $0xf8] sm:$0xff]  }
  0x40   : > { %10428 = vmatmul.mubr.msk.f32.vlgmr.msra.gmra.mrb[18].mxu1 %vm709_vm0, %v9526_v1  ;;  %11133 = vmatprep.subr.bf16.mxu0 %v11132_v6  ;;  %v9574_v63 = vunpack.c.h.bf16 %v9733_v58 }
  0x41   : > { %11131 = vmatpush3.bf16.msra.mxu1 %v11128_v61  ;;  %10441 = vmatprep.mubr.msk.f32.mxu1 %vm709_vm0, %v9533_v5  ;;  %v9573_v61 = vunpack.c.l.bf16 %v9733_v58 }
  0x42   : > { %10435 = vmatmul.mubr.msk.f32.vlgmr.msra.gmra.mrb[20].mxu0 %vm709_vm0, %v9530_v8  ;;  %11137 = vmatprep.subr.bf16.mxu1 %v11136_v9 }
  0x43   : > { %11135 = vmatpush3.bf16.msra.mxu0 %v11132_v6  ;;  %10448 = vmatprep.mubr.msk.f32.mxu0 %vm709_vm0, %v9537_v16 }
  0x44   : > { %10442 = vmatmul.mubr.msk.f32.vlgmr.msra.gmra.mrb[20].mxu1 %vm709_vm0, %v9534_v13  ;;  %11141 = vmatprep.subr.bf16.mxu0 %v11140_v18 }
  0x45   : > { %11139 = vmatpush3.bf16.msra.mxu1 %v11136_v9  ;;  %10455 = vmatprep.mubr.msk.f32.mxu1 %vm709_vm0, %v9541_v17 }
  0x46   : > { %10449 = vmatmul.mubr.msk.f32.vlgmr.msra.gmra.mrb[22].mxu0 %vm709_vm0, %v9538_v20  ;;  %11145 = vmatprep.subr.bf16.mxu1 %v11144_v21 }
  0x47   : > { %11143 = vmatpush3.bf16.msra.mxu0 %v11140_v18  ;;  %10462 = vmatprep.mubr.msk.f32.mxu0 %vm709_vm0, %v9545_v28 }
  0x48   : > { %10456 = vmatmul.mubr.msk.f32.vlgmr.msra.gmra.mrb[22].mxu1 %vm709_vm0, %v9542_v25  ;;  %11149 = vmatprep.subr.bf16.mxu0 %v11148_v30 }
  0x49   : > { %11147 = vmatpush3.bf16.msra.mxu1 %v11144_v21  ;;  %10469 = vmatprep.mubr.msk.f32.mxu1 %vm709_vm0, %v9549_v29 }
  0x4a   : > { %10463 = vmatmul.mubr.msk.f32.vlgmr.msra.gmra.mrb[24].mxu0 %vm709_vm0, %v9546_v32  ;;  %11153 = vmatprep.subr.bf16.mxu1 %v11152_v33 }
  0x4b   : > { %11151 = vmatpush3.bf16.msra.mxu0 %v11148_v30  ;;  %10476 = vmatprep.mubr.msk.f32.mxu0 %vm709_vm0, %v9553_v40 }
  0x4c   : > { %10470 = vmatmul.mubr.msk.f32.vlgmr.msra.gmra.mrb[24].mxu1 %vm709_vm0, %v9550_v37  ;;  %11157 = vmatprep.subr.bf16.mxu0 %v11156_v42 }
  0x4d   : > { %11155 = vmatpush3.bf16.msra.mxu1 %v11152_v33  ;;  %10483 = vmatprep.mubr.msk.f32.mxu1 %vm709_vm0, %v9557_v41 }
  0x4e   : > { %10477 = vmatmul.mubr.msk.f32.vlgmr.msra.gmra.mrb[26].mxu0 %vm709_vm0, %v9554_v44  ;;  %11161 = vmatprep.subr.bf16.mxu1 %v11160_v45 }
  0x4f   : > { %11159 = vmatpush3.bf16.msra.mxu0 %v11156_v42  ;;  %10490 = vmatprep.mubr.msk.f32.mxu0 %vm709_vm0, %v9561_v52 }
  0x50   : > { %10484 = vmatmul.mubr.msk.f32.vlgmr.msra.gmra.mrb[26].mxu1 %vm709_vm0, %v9558_v49  ;;  %11165 = vmatprep.subr.bf16.mxu0 %v11164_v54 }
  0x51   : > { %11163 = vmatpush3.bf16.msra.mxu1 %v11160_v45  ;;  %10497 = vmatprep.mubr.msk.f32.mxu1 %vm709_vm0, %v9565_v53 }
  0x52   : > { %10491 = vmatmul.mubr.msk.f32.vlgmr.msra.gmra.mrb[28].mxu0 %vm709_vm0, %v9562_v56  ;;  %11169 = vmatprep.subr.bf16.mxu1 %v11168_v57 }
  0x53   : > { %11167 = vmatpush3.bf16.msra.mxu0 %v11164_v54  ;;  %10504 = vmatprep.mubr.msk.f32.mxu0 %vm709_vm0, %v9569_v60 }
  0x54   : > { %10498 = vmatmul.mubr.msk.f32.vlgmr.msra.gmra.mrb[28].mxu1 %vm709_vm0, %v9566_v59  ;;  %10514 = vmatprep.subr.mxu0 %v3302_v0 }
  0x55   : > { %11171 = vmatpush3.bf16.msra.mxu1 %v11168_v57  ;;  %10511 = vmatprep.mubr.msk.f32.mxu1 %vm709_vm0, %v9573_v61 }
  0x56   : > { %10505 = vmatmul.mubr.msk.f32.vlgmr.msra.gmra.mrb[30].mxu0 %vm709_vm0, %v9570_v62 }
  0x57   : > { %10515 = vmatpush3.msra.mxu0 %v3302_v0 }
  0x58   : > { %10512 = vmatmul.mubr.msk.f32.vlgmr.msra.gmra.mrb[30].mxu1 %vm709_vm0, %v9574_v63 }
  0xed   : > { %v10296_v1 = vpop.f32.mrb[0].mxu0 }
  0xee   : > { %v782_v2 = vpop.f32.mrb[1].mxu0 }
  0xef   : > { %v10303_v3 = vpop.f32.mrb[0].mxu1  ;;  %10516 = vmatprep.mubr.msk.f32.mxu0 %vm3310_vm1, %v782_v2 }
  0xf0   : > { %v863_v4 = vpop.f32.mrb[1].mxu1  ;;  %10517 = vmatmul.mubr.msk.f32.vlgmr.msra.gmra.mrb[32].mxu0 %vm3310_vm1, %v10296_v1  ;;  %v12060_v1 = vld [vmem:[%s12055_s24] sm:$0xff]  }
  0xf1   : > { %10519 = vmatprep.mubr.msk.f32.mxu0 %vm3310_vm1, %v863_v4  ;;  %v10310_v5 = vpop.f32.mrb[2].mxu0  ;;  %v9577_v2 = vunpack.c.l.bf16 %v12060_v1  ;;  %v6869_v4 = vld [vmem:[%s14094_s5 + $0x28] sm:$0xff] }
  0xf2   : > { %v944_v6 = vpop.f32.mrb[3].mxu0 }
  0xf3   : > { %v10317_v7 = vpop.f32.mrb[2].mxu1  ;;  %10616 = vmatprep.mubr.msk.f32.mxu1 %vm709_vm0, %v9577_v2 }
  0xf4   : > { %v1025_v8 = vpop.f32.mrb[3].mxu1  ;;  %10520 = vmatmul.mubr.msk.f32.gmra.mrb[34].mxu0 %vm3310_vm1, %v10303_v3  ;;  %v6868_v3 = vld [vmem:[%s14094_s5 + $0x20] sm:$0xff] }
  0xf5   : > { %10522 = vmatprep.mubr.msk.f32.mxu0 %vm3310_vm1, %v944_v6  ;;  %v10324_v9 = vpop.f32.mrb[4].mxu0  ;;  %v12086_v6 = vld [vmem:[%s14093_s4] ss:$0 sm:$0xff] }
  0xf6   : > { %v1106_v10 = vpop.f32.mrb[5].mxu0 }
  0xf7   : > { %v10331_v11 = vpop.f32.mrb[4].mxu1 }
  0xf8   : > { %v1187_v12 = vpop.f32.mrb[5].mxu1  ;;  %10523 = vmatmul.mubr.msk.f32.gmra.mrb[36].mxu0 %vm3310_vm1, %v10310_v5  ;;  %v12079_v5 = vpack.c.bf16 %v6869_v4, %v6868_v3 }
  0xf9   : > { %10525 = vmatprep.mubr.msk.f32.mxu0 %vm3310_vm1, %v1025_v8  ;;  %v10338_v13 = vpop.f32.mrb[6].mxu0 }
  0xfa   : > { %v1268_v14 = vpop.f32.mrb[7].mxu0  ;;  %11301 = vmatprep.subr.bf16.mxu0 %v12079_v5 }
  0xfb   : > { %v10345_v15 = vpop.f32.mrb[6].mxu1  ;;  %11303 = vmatpush3.bf16.msra.mxu0 %v12079_v5 }
  0xfc   : > { %v1349_v16 = vpop.f32.mrb[7].mxu1  ;;  %10526 = vmatmul.mubr.msk.f32.gmra.mrb[38].mxu0 %vm3310_vm1, %v10317_v7 }
  0xfd   : > { %10528 = vmatprep.mubr.msk.f32.mxu0 %vm3310_vm1, %v1106_v10  ;;  %v10352_v17 = vpop.f32.mrb[8].mxu0 }
  0xfe   : > { %v1430_v18 = vpop.f32.mrb[9].mxu0 }
  0xff   : > { %v10359_v19 = vpop.f32.mrb[8].mxu1 }
 0x100   : > { %v1511_v20 = vpop.f32.mrb[9].mxu1  ;;  %10529 = vmatmul.mubr.msk.f32.gmra.mrb[40].mxu0 %vm3310_vm1, %v10324_v9 }
 0x101   : > { %10531 = vmatprep.mubr.msk.f32.mxu0 %vm3310_vm1, %v1187_v12  ;;  %v10366_v21 = vpop.f32.mrb[10].mxu0 }
 0x102   : > { %v1592_v22 = vpop.f32.mrb[11].mxu0 }
 0x103   : > { %v10373_v23 = vpop.f32.mrb[10].mxu1 }
 0x104   : > { %v1673_v24 = vpop.f32.mrb[11].mxu1  ;;  %10532 = vmatmul.mubr.msk.f32.gmra.mrb[42].mxu0 %vm3310_vm1, %v10331_v11  ;;  %v12095_v11 = vld [vmem:[%s12055_s24 + $0x8] sm:$0xff]  }
 0x105   : > { %10534 = vmatprep.mubr.msk.f32.mxu0 %vm3310_vm1, %v1268_v14  ;;  %v10380_v25 = vpop.f32.mrb[12].mxu0 }
 0x106   : > { %v1754_v26 = vpop.f32.mrb[13].mxu0 }
 0x107   : > { %v10387_v27 = vpop.f32.mrb[12].mxu1 }
 0x108   : > { %v1835_v28 = vpop.f32.mrb[13].mxu1  ;;  %10535 = vmatmul.mubr.msk.f32.gmra.mrb[44].mxu0 %vm3310_vm1, %v10338_v13  ;;  %v12099_v13 = vld [vmem:[%s12055_s24 + $0x10] sm:$0xff]  }
 0x109   : > { %10537 = vmatprep.mubr.msk.f32.mxu0 %vm3310_vm1, %v1349_v16  ;;  %v10394_v29 = vpop.f32.mrb[14].mxu0  ;;  %v9578_v16 = vunpack.c.h.bf16 %v12060_v1 }
 0x10a   : > { %v1916_v30 = vpop.f32.mrb[15].mxu0 }
 0x10b   : > { %v10401_v31 = vpop.f32.mrb[14].mxu1 }
 0x10c   : > { %v1997_v32 = vpop.f32.mrb[15].mxu1  ;;  %10538 = vmatmul.mubr.msk.f32.gmra.mrb[46].mxu0 %vm3310_vm1, %v10345_v15 }
 0x10d   : > { %10540 = vmatprep.mubr.msk.f32.mxu0 %vm3310_vm1, %v1430_v18  ;;  %v10408_v33 = vpop.f32.mrb[16].mxu0 }
 0x10e   : > { %v2078_v34 = vpop.f32.mrb[17].mxu0 }
 0x10f   : > { %v10415_v35 = vpop.f32.mrb[16].mxu1 }
 0x110   : > { %v2159_v36 = vpop.f32.mrb[17].mxu1  ;;  %10541 = vmatmul.mubr.msk.f32.gmra.mrb[48].mxu0 %vm3310_vm1, %v10352_v17  ;;  %v12104_v17 = vld [vmem:[%s12055_s24 + $0x18] sm:$0xff]  }
 0x111   : > { %10543 = vmatprep.mubr.msk.f32.mxu0 %vm3310_vm1, %v1511_v20  ;;  %v10422_v37 = vpop.f32.mrb[18].mxu0 }
 0x112   : > { %v2240_v38 = vpop.f32.mrb[19].mxu0 }
 0x113   : > { %v10429_v39 = vpop.f32.mrb[18].mxu1 }
 0x114   : > { %v2321_v40 = vpop.f32.mrb[19].mxu1  ;;  %10544 = vmatmul.mubr.msk.f32.gmra.mrb[50].mxu0 %vm3310_vm1, %v10359_v19 }
 0x115   : > { %10546 = vmatprep.mubr.msk.f32.mxu0 %vm3310_vm1, %v1592_v22  ;;  %v10436_v41 = vpop.f32.mrb[20].mxu0  ;;  %v9582_v22 = vunpack.c.h.bf16 %v12095_v11 }
 0x116   : > { %v2402_v42 = vpop.f32.mrb[21].mxu0 }
 0x117   : > { %v10443_v43 = vpop.f32.mrb[20].mxu1 }
 0x118   : > { %v2483_v44 = vpop.f32.mrb[21].mxu1  ;;  %10547 = vmatmul.mubr.msk.f32.gmra.mrb[52].mxu0 %vm3310_vm1, %v10366_v21  ;;  %v9581_v21 = vunpack.c.l.bf16 %v12095_v11 }
 0x119   : > { %10549 = vmatprep.mubr.msk.f32.mxu0 %vm3310_vm1, %v1673_v24  ;;  %v10450_v45 = vpop.f32.mrb[22].mxu0 }
 0x11a   : > { %v2564_v46 = vpop.f32.mrb[23].mxu0 }
 0x11b   : > { %v10457_v47 = vpop.f32.mrb[22].mxu1 }
 0x11c   : > { %v2645_v48 = vpop.f32.mrb[23].mxu1  ;;  %10550 = vmatmul.mubr.msk.f32.gmra.mrb[54].mxu0 %vm3310_vm1, %v10373_v23  ;;  %v12112_v23 = vld [vmem:[%s12055_s24 + $0x20] sm:$0xff]  }
 0x11d   : > { %10552 = vmatprep.mubr.msk.f32.mxu0 %vm3310_vm1, %v1754_v26  ;;  %v10464_v49 = vpop.f32.mrb[24].mxu0  ;;  %v9585_v26 = vunpack.c.l.bf16 %v12099_v13 }
 0x11e   : > { %v2726_v50 = vpop.f32.mrb[25].mxu0 }
 0x11f   : > { %v10471_v51 = vpop.f32.mrb[24].mxu1 }
 0x120   : > { %v2807_v52 = vpop.f32.mrb[25].mxu1  ;;  %10553 = vmatmul.mubr.msk.f32.gmra.mrb[56].mxu0 %vm3310_vm1, %v10380_v25 }
 0x121   : > { %10555 = vmatprep.mubr.msk.f32.mxu0 %vm3310_vm1, %v1835_v28  ;;  %v10478_v53 = vpop.f32.mrb[26].mxu0  ;;  %v12120_v28 = vld [vmem:[%s12055_s24 + $0x28] sm:$0xff]  }
 0x122   : > { %v2888_v54 = vpop.f32.mrb[27].mxu0 }
 0x123   : > { %v10485_v55 = vpop.f32.mrb[26].mxu1 }
 0x124   : > { %v2969_v56 = vpop.f32.mrb[27].mxu1  ;;  %10556 = vmatmul.mubr.msk.f32.gmra.mrb[58].mxu0 %vm3310_vm1, %v10387_v27  ;;  %v9586_v27 = vunpack.c.h.bf16 %v12099_v13 }
 0x125   : > { %10558 = vmatprep.mubr.msk.f32.mxu0 %vm3310_vm1, %v1916_v30  ;;  %v10492_v57 = vpop.f32.mrb[28].mxu0  ;;  %v9589_v30 = vunpack.c.l.bf16 %v12104_v17 }
 0x126   : > { %v3050_v58 = vpop.f32.mrb[29].mxu0 }
 0x127   : > { %v10499_v59 = vpop.f32.mrb[28].mxu1 }
 0x128   : > { %v3131_v60 = vpop.f32.mrb[29].mxu1  ;;  %10559 = vmatmul.mubr.msk.f32.gmra.mrb[60].mxu0 %vm3310_vm1, %v10394_v29 }
 0x129   : > { %10561 = vmatprep.mubr.msk.f32.mxu0 %vm3310_vm1, %v1997_v32  ;;  %v10506_v61 = vpop.f32.mrb[30].mxu0  ;;  %v12126_v32 = vld [vmem:[%s12055_s24 + $0x30] sm:$0xff]  }
 0x12a   : > { %v3212_v62 = vpop.f32.mrb[31].mxu0 }
 0x12b   : > { %v10513_v63 = vpop.f32.mrb[30].mxu1 }
 0x12c   : > { %v3293_v0 = vpop.f32.mrb[31].mxu1  ;;  %10562 = vmatmul.mubr.msk.f32.gmra.mrb[62].mxu0 %vm3310_vm1, %v10401_v31  ;;  %v9590_v31 = vunpack.c.h.bf16 %v12104_v17 }
 0x12d   : > { %10564 = vmatprep.mubr.msk.f32.mxu0 %vm3310_vm1, %v2078_v34 }
 0x130   : > { %10565 = vmatmul.mubr.msk.f32.gmra.mrb[64].mxu0 %vm3310_vm1, %v10408_v33 }
 0x131   : > { %10567 = vmatprep.mubr.msk.f32.mxu0 %vm3310_vm1, %v2159_v36  ;;  %v9594_v36 = vunpack.c.h.bf16 %v12112_v23 }
 0x134   : > { %10568 = vmatmul.mubr.msk.f32.gmra.mrb[66].mxu0 %vm3310_vm1, %v10415_v35  ;;  %v9593_v35 = vunpack.c.l.bf16 %v12112_v23 }
 0x135   : > { %10570 = vmatprep.mubr.msk.f32.mxu0 %vm3310_vm1, %v2240_v38 }
 0x138   : > { %10571 = vmatmul.mubr.msk.f32.gmra.mrb[68].mxu0 %vm3310_vm1, %v10422_v37  ;;  %v12132_v37 = vld [vmem:[%s12055_s24 + $0x38] sm:$0xff]  }
 0x139   : > { %10573 = vmatprep.mubr.msk.f32.mxu0 %vm3310_vm1, %v2321_v40 }
 0x13c   : > { %10574 = vmatmul.mubr.msk.f32.gmra.mrb[70].mxu0 %vm3310_vm1, %v10429_v39 }
 0x13d   : > { %10576 = vmatprep.mubr.msk.f32.mxu0 %vm3310_vm1, %v2402_v42  ;;  %v9598_v42 = vunpack.c.h.bf16 %v12120_v28 }
 0x140   : > { %10577 = vmatmul.mubr.msk.f32.gmra.mrb[72].mxu0 %vm3310_vm1, %v10436_v41  ;;  %v9597_v41 = vunpack.c.l.bf16 %v12120_v28 }
 0x141   : > { %10579 = vmatprep.mubr.msk.f32.mxu0 %vm3310_vm1, %v2483_v44 }
 0x144   : > { %10580 = vmatmul.mubr.msk.f32.gmra.mrb[74].mxu0 %vm3310_vm1, %v10443_v43  ;;  %v12140_v43 = vld [vmem:[%s12055_s24 + $0x40] sm:$0xff]  }
 0x145   : > { %10582 = vmatprep.mubr.msk.f32.mxu0 %vm3310_vm1, %v2564_v46  ;;  %v9601_v46 = vunpack.c.l.bf16 %v12126_v32 }
 0x148   : > { %10583 = vmatmul.mubr.msk.f32.gmra.mrb[76].mxu0 %vm3310_vm1, %v10450_v45 }
 0x149   : > { %10585 = vmatprep.mubr.msk.f32.mxu0 %vm3310_vm1, %v2645_v48  ;;  %v12148_v48 = vld [vmem:[%s12055_s24 + $0x48] sm:$0xff]  }
 0x14c   : > { %10586 = vmatmul.mubr.msk.f32.gmra.mrb[78].mxu0 %vm3310_vm1, %v10457_v47  ;;  %v9602_v47 = vunpack.c.h.bf16 %v12126_v32 }
 0x14d   : > { %10588 = vmatprep.mubr.msk.f32.mxu0 %vm3310_vm1, %v2726_v50  ;;  %v9605_v50 = vunpack.c.l.bf16 %v12132_v37 }
 0x150   : > { %10589 = vmatmul.mubr.msk.f32.gmra.mrb[80].mxu0 %vm3310_vm1, %v10464_v49 }
 0x151   : > { %10591 = vmatprep.mubr.msk.f32.mxu0 %vm3310_vm1, %v2807_v52  ;;  %v12154_v52 = vld [vmem:[%s12055_s24 + $0x50] sm:$0xff]  }
 0x154   : > { %10592 = vmatmul.mubr.msk.f32.gmra.mrb[82].mxu0 %vm3310_vm1, %v10471_v51  ;;  %v9606_v51 = vunpack.c.h.bf16 %v12132_v37 }
 0x155   : > { %10594 = vmatprep.mubr.msk.f32.mxu0 %vm3310_vm1, %v2888_v54 }
 0x158   : > { %10595 = vmatmul.mubr.msk.f32.gmra.mrb[84].mxu0 %vm3310_vm1, %v10478_v53 }
 0x159   : > { %10597 = vmatprep.mubr.msk.f32.mxu0 %vm3310_vm1, %v2969_v56  ;;  %v9610_v56 = vunpack.c.h.bf16 %v12140_v43 }
 0x15c   : > { %10598 = vmatmul.mubr.msk.f32.gmra.mrb[86].mxu0 %vm3310_vm1, %v10485_v55  ;;  %v9609_v55 = vunpack.c.l.bf16 %v12140_v43 }
 0x15d   : > { %10600 = vmatprep.mubr.msk.f32.mxu0 %vm3310_vm1, %v3050_v58 }
 0x160   : > { %10601 = vmatmul.mubr.msk.f32.gmra.mrb[88].mxu0 %vm3310_vm1, %v10492_v57  ;;  %v12160_v57 = vld [vmem:[%s12055_s24 + $0x58] sm:$0xff]  }
 0x161   : > { %10603 = vmatprep.mubr.msk.f32.mxu0 %vm3310_vm1, %v3131_v60 }
 0x164   : > { %10604 = vmatmul.mubr.msk.f32.gmra.mrb[90].mxu0 %vm3310_vm1, %v10499_v59 }
 0x165   : > { %10606 = vmatprep.mubr.msk.f32.mxu0 %vm3310_vm1, %v3212_v62 }
 0x168   : > { %10607 = vmatmul.mubr.msk.f32.gmra.mrb[92].mxu0 %vm3310_vm1, %v10506_v61 }
 0x169   : > { %10609 = vmatprep.mubr.msk.f32.mxu0 %vm3310_vm1, %v3293_v0 }
 0x16c   : > { %10610 = vmatmul.mubr.msk.f32.gmra.mrb[94].mxu0 %vm3310_vm1, %v10513_v63  ;;  %v12168_v63 = vld [vmem:[%s12055_s24 + $0x60] sm:$0xff]  }
 0x1c3   : > { %v10518_v7 = vpop.f32.mrb[32].mxu0 }
 0x1c4   : > { %v12089_v8 = vadd.f32 %v10518_v7, %v12086_v6  ;;  %v3569_v9 = vpop.f32.mrb[33].mxu0  ;;  %v12176_v7 = vld [vmem:[%s12055_s24 + $0x68] sm:$0xff]  }
 0x1c5   : > { %v12092_v10 = vadd.f32 %v12086_v6, %v3569_v9 }
 0x1c6   : > { %v3953_v12 = vmin.f32 %v12089_v8, 0.0  ;;  %vm3889_vm2 = vcmp.gt.f32.partialorder %v12089_v8, 0.0 }
 0x1c7   : > { %v3952_v14 = vmin.f32 %v12092_v10, 0.0  ;;  %v10521_v15 = vpop.f32.mrb[34].mxu0  ;;  %vm3888_vm3 = vcmp.gt.f32.partialorder %v12092_v10, 0.0 }
 0x1c8   : > { %v4018_v18 = vmul.f32 1.442695, %v3953_v12  ;;  %v12107_v19 = vadd.f32 %v10521_v15, %v12086_v6  ;;  %v3579_v20 = vpop.f32.mrb[35].mxu0  ;;  %v12182_v15 = vld [vmem:[%s12055_s24 + $0x70] sm:$0xff]  }
 0x1c9   : > { %v4016_v24 = vmul.f32 1.442695, %v3952_v14  ;;  %v12115_v25 = vadd.f32 %v12086_v6, %v3579_v20 }
 0x1ca   : > { %11490 = vpow2.f32 %v4018_v18  ;;  %v3955_v29 = vmin.f32 %v12107_v19, 0.0  ;;  %vm3891_vm4 = vcmp.gt.f32.partialorder %v12107_v19, 0.0 }
 0x1cb   : > { %11492 = vpow2.f32 %v4016_v24  ;;  %v3954_v33 = vmin.f32 %v12115_v25, 0.0  ;;  %v10524_v34 = vpop.f32.mrb[36].mxu0  ;;  %vm3890_vm5 = vcmp.gt.f32.partialorder %v12115_v25, 0.0 }
 0x1cc   : > { %v4022_v38 = vmul.f32 1.442695, %v3955_v29  ;;  %v12135_v39 = vadd.f32 %v10524_v34, %v12086_v6  ;;  %v3589_v40 = vpop.f32.mrb[37].mxu0 }
 0x1cd   : > { %v4020_v44 = vmul.f32 1.442695, %v3954_v33  ;;  %v12143_v45 = vadd.f32 %v12086_v6, %v3589_v40 }
 0x1ce   : > { %11494 = vpow2.f32 %v4022_v38  ;;  %v3957_v49 = vmin.f32 %v12135_v39, 0.0  ;;  %vm3893_vm6 = vcmp.gt.f32.partialorder %v12135_v39, 0.0 }
 0x1cf   : > { %11496 = vpow2.f32 %v4020_v44  ;;  %v3956_v53 = vmin.f32 %v12143_v45, 0.0  ;;  %v10527_v54 = vpop.f32.mrb[38].mxu0  ;;  %vm3892_vm7 = vcmp.gt.f32.partialorder %v12143_v45, 0.0 }
 0x1d0   : > { %v4026_v58 = vmul.f32 1.442695, %v3957_v49  ;;  %v12163_v59 = vadd.f32 %v10527_v54, %v12086_v6  ;;  %v3599_v60 = vpop.f32.mrb[39].mxu0 }
 0x1d1   : > { %v4024_v0 = vmul.f32 1.442695, %v3956_v53  ;;  %v12171_v2 = vadd.f32 %v12086_v6, %v3599_v60 }
 0x1d2   : > { %11498 = vpow2.f32 %v4026_v58  ;;  %v3959_v9 = vmin.f32 %v12163_v59, 0.0  ;;  %vm3895_vm8 = vcmp.gt.f32.partialorder %v12163_v59, 0.0 }
 0x1d3   : > { %11500 = vpow2.f32 %v4024_v0  ;;  %v3958_v18 = vmin.f32 %v12171_v2, 0.0  ;;  %v10530_v20 = vpop.f32.mrb[40].mxu0  ;;  %vm3894_vm9 = vcmp.gt.f32.partialorder %v12171_v2, 0.0 }
 0x1d4   : > { %v11491_v33 = vpop.eup %11490  ;;  %v4030_v34 = vmul.f32 1.442695, %v3959_v9  ;;  %v12188_v38 = vadd.f32 %v10530_v20, %v12086_v6  ;;  %v3609_v40 = vpop.f32.mrb[41].mxu0 }
 0x1d5   : > { %v11493_v53 = vpop.eup %11492  ;;  %v9056_v54 = vadd.f32 -1.0, %v11491_v33  ;;  %v4028_v58 = vmul.f32 1.442695, %v3958_v18  ;;  %v12193_v60 = vadd.f32 %v12086_v6, %v3609_v40 }
 0x1d6   : > { %v9055_v29 = vadd.f32 -1.0, %v11493_v53  ;;  %11502 = vpow2.f32 %v4030_v34  ;;  %v3961_v9 = vmin.f32 %v12188_v38, 0.0  ;;  %vm3897_vm10 = vcmp.gt.f32.partialorder %v12188_v38, 0.0 }
 0x1d7   : > { %11504 = vpow2.f32 %v4028_v58  ;;  %v3960_v20 = vmin.f32 %v12193_v60, 0.0  ;;  %v10533_v49 = vpop.f32.mrb[42].mxu0  ;;  %v12201_v18 = vsel %vm3889_vm2, %v12089_v8, %v9056_v54  ;;  %v12216_v54 = vld [vmem:[%s12055_s24 + $0x78] sm:$0xff]   ;;  %vm3896_vm11 = vcmp.gt.f32.partialorder %v12193_v60, 0.0 }
 0x1d8   : > { %v11495_v33 = vpop.eup %11494  ;;  %v4034_v40 = vmul.f32 1.442695, %v3961_v9  ;;  %v12204_v0 = vadd.f32 %v10533_v49, %v12086_v6  ;;  %v3619_v44 = vpop.f32.mrb[43].mxu0  ;;  %v12207_v34 = vsel %vm3888_vm3, %v12092_v10, %v9055_v29 }
 0x1d9   : > { %v11497_v24 = vpop.eup %11496  ;;  %v9058_v14 = vadd.f32 -1.0, %v11495_v33  ;;  %v4032_v58 = vmul.f32 1.442695, %v3960_v20  ;;  %v12211_v12 = vadd.f32 %v12086_v6, %v3619_v44  ;;  %v11172_v8 = vpack.c.bf16 %v12201_v18, %v12207_v34 }
 0x1da   : > { %v9057_v49 = vadd.f32 -1.0, %v11497_v24  ;;  %11506 = vpow2.f32 %v4034_v40  ;;  %v3963_v10 = vmin.f32 %v12204_v0, 0.0  ;;  %vm3899_vm12 = vcmp.gt.f32.partialorder %v12204_v0, 0.0 }
 0x1db   : > { %11508 = vpow2.f32 %v4032_v58  ;;  %v3962_v29 = vmin.f32 %v12211_v12, 0.0  ;;  %v10536_v9 = vpop.f32.mrb[44].mxu0  ;;  %11173 = vmatprep.subr.bf16.mxu1 %v11172_v8  ;;  %v12223_v44 = vsel %vm3891_vm4, %v12107_v19, %v9058_v14  ;;  %vm3898_vm13 = vcmp.gt.f32.partialorder %v12211_v12, 0.0 }
 0x1dc   : > { %v11499_v20 = vpop.eup %11498  ;;  %v4038_v33 = vmul.f32 1.442695, %v3963_v10  ;;  %v12226_v53 = vadd.f32 %v10536_v9, %v12086_v6  ;;  %v3629_v4 = vpop.f32.mrb[45].mxu0  ;;  %11175 = vmatpush3.bf16.msra.mxu1 %v11172_v8  ;;  %v12229_v24 = vsel %vm3890_vm5, %v12115_v25, %v9057_v49 }
 0x1dd   : > { %v11501_v58 = vpop.eup %11500  ;;  %v9060_v3 = vadd.f32 -1.0, %v11499_v20  ;;  %v4036_v62 = vmul.f32 1.442695, %v3962_v29  ;;  %v12233_v61 = vadd.f32 %v12086_v6, %v3629_v4  ;;  %v11176_v19 = vpack.c.bf16 %v12223_v44, %v12229_v24 }
 0x1de   : > { %v9059_v14 = vadd.f32 -1.0, %v11501_v58  ;;  %11510 = vpow2.f32 %v4038_v33  ;;  %v3965_v8 = vmin.f32 %v12226_v53, 0.0  ;;  %vm3901_vm14 = vcmp.gt.f32.partialorder %v12226_v53, 0.0 }
 0x1df   : > { %11512 = vpow2.f32 %v4036_v62  ;;  %v3964_v25 = vmin.f32 %v12233_v61, 0.0  ;;  %v10539_v49 = vpop.f32.mrb[46].mxu0  ;;  %10617 = vmatmul.mubr.msk.f32.vlgmr.msra.gmra.mrb[32].mxu1 %vm709_vm0, %v9578_v16  ;;  %11177 = vmatprep.subr.bf16.mxu1 %v11176_v19  ;;  %v12245_v4 = vsel %vm3893_vm6, %v12135_v39, %v9060_v3  ;;  %vm3900_vm15 = vcmp.gt.f32.partialorder %v12233_v61, 0.0 }
 0x1e0   : > { %v11503_v10 = vpop.eup %11502  ;;  %v4042_v29 = vmul.f32 1.442695, %v3965_v8  ;;  %v12248_v9 = vadd.f32 %v10539_v49, %v12086_v6  ;;  %v3639_v20 = vpop.f32.mrb[47].mxu0  ;;  %11179 = vmatpush3.bf16.msra.mxu1 %v11176_v19  ;;  %10623 = vmatprep.mubr.msk.f32.mxu1 %vm709_vm0, %v9581_v21  ;;  %v12254_v1 = vsel %vm3892_vm7, %v12143_v45, %v9059_v14  ;;  %v12263_v8 = vld [vmem:[%s12055_s24 + $0x80] sm:$0xff]  }
 0x1e1   : > { %v11505_v62 = vpop.eup %11504  ;;  %v9062_v33 = vadd.f32 -1.0, %v11503_v10  ;;  %v4040_v39 = vmul.f32 1.442695, %v3964_v25  ;;  %v12258_v3 = vadd.f32 %v12086_v6, %v3639_v20  ;;  %v11180_v58 = vpack.c.bf16 %v12245_v4, %v12254_v1 }
 0x1e2   : > { %v9061_v19 = vadd.f32 -1.0, %v11505_v62  ;;  %11514 = vpow2.f32 %v4042_v29  ;;  %v3967_v21 = vmin.f32 %v12248_v9, 0.0  ;;  %vm3903_vm1 = vcmp.gt.f32.partialorder %v12248_v9, 0.0 }
 0x1e3   : > { %11516 = vpow2.f32 %v4040_v39  ;;  %v3966_v45 = vmin.f32 %v12258_v3, 0.0  ;;  %v10542_v14 = vpop.f32.mrb[48].mxu0  ;;  %10624 = vmatmul.mubr.msk.f32.vlgmr.msra.gmra.mrb[34].mxu1 %vm709_vm0, %v9582_v22  ;;  %11181 = vmatprep.subr.bf16.mxu1 %v11180_v58  ;;  %v12273_v25 = vsel %vm3895_vm8, %v12163_v59, %v9062_v33  ;;  %vm3902_vm2 = vcmp.gt.f32.partialorder %v12258_v3, 0.0 }
 0x1e4   : > { %v11507_v49 = vpop.eup %11506  ;;  %v4046_v10 = vmul.f32 1.442695, %v3967_v21  ;;  %v12276_v29 = vadd.f32 %v10542_v14, %v12086_v6  ;;  %v3649_v20 = vpop.f32.mrb[49].mxu0  ;;  %11183 = vmatpush3.bf16.msra.mxu1 %v11180_v58  ;;  %10630 = vmatprep.mubr.msk.f32.mxu1 %vm709_vm0, %v9585_v26  ;;  %v12282_v62 = vsel %vm3894_vm9, %v12171_v2, %v9061_v19 }
 0x1e5   : > { %v11509_v22 = vpop.eup %11508  ;;  %v9064_v39 = vadd.f32 -1.0, %v11507_v49  ;;  %v4044_v59 = vmul.f32 1.442695, %v3966_v45  ;;  %v12286_v33 = vadd.f32 %v12086_v6, %v3649_v20  ;;  %v11184_v21 = vpack.c.bf16 %v12273_v25, %v12282_v62 }
 0x1e6   : > { %v9063_v58 = vadd.f32 -1.0, %v11509_v22  ;;  %11518 = vpow2.f32 %v4046_v10  ;;  %v3969_v26 = vmin.f32 %v12276_v29, 0.0  ;;  %vm3905_vm3 = vcmp.gt.f32.partialorder %v12276_v29, 0.0 }
 0x1e7   : > { %11520 = vpow2.f32 %v4044_v59  ;;  %v3968_v2 = vmin.f32 %v12286_v33, 0.0  ;;  %10631 = vmatmul.mubr.msk.f32.vlgmr.msra.gmra.mrb[36].mxu1 %vm709_vm0, %v9586_v27  ;;  %11185 = vmatprep.subr.bf16.mxu1 %v11184_v21  ;;  %v12298_v19 = vsel %vm3897_vm10, %v12188_v38, %v9064_v39  ;;  %v10545_v45 = vpop.f32.mrb[50].mxu0  ;;  %vm3904_vm4 = vcmp.gt.f32.partialorder %v12286_v33, 0.0 }
 0x1e8   : > { %v11511_v14 = vpop.eup %11510  ;;  %v4050_v49 = vmul.f32 1.442695, %v3969_v26  ;;  %11187 = vmatpush3.bf16.msra.mxu1 %v11184_v21  ;;  %10637 = vmatprep.mubr.msk.f32.mxu1 %vm709_vm0, %v9589_v30  ;;  %v12304_v10 = vsel %vm3896_vm11, %v12193_v60, %v9063_v58  ;;  %v12307_v13 = vadd.f32 %v10545_v45, %v12086_v6  ;;  %v3659_v27 = vpop.f32.mrb[51].mxu0  ;;  %v12316_v26 = vld [vmem:[%s12055_s24 + $0x88] sm:$0xff]  }
 0x1e9   : > { %v11513_v22 = vpop.eup %11512  ;;  %v9066_v38 = vadd.f32 -1.0, %v11511_v14  ;;  %v4048_v39 = vmul.f32 1.442695, %v3968_v2  ;;  %v11188_v59 = vpack.c.bf16 %v12298_v19, %v12304_v10  ;;  %v12313_v21 = vadd.f32 %v12086_v6, %v3659_v27 }
 0x1ea   : > { %v9065_v30 = vadd.f32 -1.0, %v11513_v22  ;;  %11522 = vpow2.f32 %v4050_v49  ;;  %v3971_v60 = vmin.f32 %v12307_v13, 0.0  ;;  %vm3907_vm5 = vcmp.gt.f32.partialorder %v12307_v13, 0.0 }
 0x1eb   : > { %11524 = vpow2.f32 %v4048_v39  ;;  %10638 = vmatmul.mubr.msk.f32.vlgmr.msra.gmra.mrb[38].mxu1 %vm709_vm0, %v9590_v31  ;;  %11189 = vmatprep.subr.bf16.mxu1 %v11188_v59  ;;  %v12325_v58 = vsel %vm3899_vm12, %v12204_v0, %v9066_v38  ;;  %v3970_v2 = vmin.f32 %v12313_v21, 0.0  ;;  %v10548_v45 = vpop.f32.mrb[52].mxu0  ;;  %vm3906_vm6 = vcmp.gt.f32.partialorder %v12313_v21, 0.0 }
 0x1ec   : > { %v11515_v14 = vpop.eup %11514  ;;  %11191 = vmatpush3.bf16.msra.mxu1 %v11188_v59  ;;  %10644 = vmatprep.mubr.msk.f32.mxu1 %vm709_vm0, %v9593_v35  ;;  %v12332_v49 = vsel %vm3898_vm13, %v12211_v12, %v9065_v30  ;;  %v4054_v27 = vmul.f32 1.442695, %v3971_v60  ;;  %v12335_v17 = vadd.f32 %v10548_v45, %v12086_v6  ;;  %v3669_v31 = vpop.f32.mrb[53].mxu0 }
 0x1ed   : > { %v11517_v22 = vpop.eup %11516  ;;  %v9068_v38 = vadd.f32 -1.0, %v11515_v14  ;;  %v11192_v39 = vpack.c.bf16 %v12325_v58, %v12332_v49  ;;  %v4052_v59 = vmul.f32 1.442695, %v3970_v2  ;;  %v12341_v20 = vadd.f32 %v12086_v6, %v3669_v31 }
 0x1ee   : > { %v9067_v35 = vadd.f32 -1.0, %v11517_v22  ;;  %11526 = vpow2.f32 %v4054_v27  ;;  %v3973_v12 = vmin.f32 %v12335_v17, 0.0  ;;  %vm3909_vm7 = vcmp.gt.f32.partialorder %v12335_v17, 0.0 }
 0x1ef   : > { %10645 = vmatmul.mubr.msk.f32.vlgmr.msra.gmra.mrb[40].mxu1 %vm709_vm0, %v9594_v36  ;;  %11193 = vmatprep.subr.bf16.mxu1 %v11192_v39  ;;  %v12350_v30 = vsel %vm3901_vm14, %v12226_v53, %v9068_v38  ;;  %11528 = vpow2.f32 %v4052_v59  ;;  %v3972_v60 = vmin.f32 %v12341_v20, 0.0  ;;  %v10551_v2 = vpop.f32.mrb[54].mxu0  ;;  %vm3908_vm8 = vcmp.gt.f32.partialorder %v12341_v20, 0.0 }
 0x1f0   : > { %v11519_v45 = vpop.eup %11518  ;;  %11195 = vmatpush3.bf16.msra.mxu1 %v11192_v39  ;;  %10651 = vmatprep.mubr.msk.f32.mxu1 %vm709_vm0, %v9597_v41  ;;  %v12357_v14 = vsel %vm3900_vm15, %v12233_v61, %v9067_v35  ;;  %v4058_v23 = vmul.f32 1.442695, %v3973_v12  ;;  %v12360_v36 = vadd.f32 %v10551_v2, %v12086_v6  ;;  %v3679_v27 = vpop.f32.mrb[55].mxu0 }
 0x1f1   : > { %v11521_v31 = vpop.eup %11520  ;;  %v9070_v22 = vadd.f32 -1.0, %v11519_v45  ;;  %v11196_v38 = vpack.c.bf16 %v12350_v30, %v12357_v14  ;;  %v4056_v39 = vmul.f32 1.442695, %v3972_v60  ;;  %v12366_v59 = vadd.f32 %v12086_v6, %v3679_v27 }
 0x1f2   : > { %v9069_v41 = vadd.f32 -1.0, %v11521_v31  ;;  %11530 = vpow2.f32 %v4058_v23  ;;  %v3975_v61 = vmin.f32 %v12360_v36, 0.0  ;;  %vm3911_vm9 = vcmp.gt.f32.partialorder %v12360_v36, 0.0 }
 0x1f3   : > { %10652 = vmatmul.mubr.msk.f32.vlgmr.msra.gmra.mrb[42].mxu1 %vm709_vm0, %v9598_v42  ;;  %11197 = vmatprep.subr.bf16.mxu1 %v11196_v38  ;;  %v12375_v35 = vsel %vm3903_vm1, %v12248_v9, %v9070_v22  ;;  %11532 = vpow2.f32 %v4056_v39  ;;  %v3974_v12 = vmin.f32 %v12366_v59, 0.0  ;;  %v10554_v60 = vpop.f32.mrb[56].mxu0  ;;  %vm3910_vm10 = vcmp.gt.f32.partialorder %v12366_v59, 0.0 }
 0x1f4   : > { %v11523_v2 = vpop.eup %11522  ;;  %11199 = vmatpush3.bf16.msra.mxu1 %v11196_v38  ;;  %10658 = vmatprep.mubr.msk.f32.mxu1 %vm709_vm0, %v9601_v46  ;;  %v12383_v28 = vsel %vm3902_vm2, %v12258_v3, %v9069_v41  ;;  %v4062_v42 = vmul.f32 1.442695, %v3975_v61  ;;  %v12386_v45 = vadd.f32 %v10554_v60, %v12086_v6  ;;  %v3689_v9 = vpop.f32.mrb[57].mxu0 }
 0x1f5   : > { %v11525_v23 = vpop.eup %11524  ;;  %v9072_v27 = vadd.f32 -1.0, %v11523_v2  ;;  %v11200_v31 = vpack.c.bf16 %v12375_v35, %v12383_v28  ;;  %v4060_v22 = vmul.f32 1.442695, %v3974_v12  ;;  %v12391_v38 = vadd.f32 %v12086_v6, %v3689_v9  ;;  %v12406_v12 = vld [vmem:[%s12055_s24 + $0x90] sm:$0xff]  }
 0x1f6   : > { %v9071_v46 = vadd.f32 -1.0, %v11525_v23  ;;  %11534 = vpow2.f32 %v4062_v42  ;;  %v3977_v3 = vmin.f32 %v12386_v45, 0.0  ;;  %vm3913_vm11 = vcmp.gt.f32.partialorder %v12386_v45, 0.0 }
 0x1f7   : > { %10659 = vmatmul.mubr.msk.f32.vlgmr.msra.gmra.mrb[44].mxu1 %vm709_vm0, %v9602_v47  ;;  %11201 = vmatprep.subr.bf16.mxu1 %v11200_v31  ;;  %v12401_v39 = vsel %vm3905_vm3, %v12276_v29, %v9072_v27  ;;  %11536 = vpow2.f32 %v4060_v22  ;;  %v3976_v41 = vmin.f32 %v12391_v38, 0.0  ;;  %v10557_v61 = vpop.f32.mrb[58].mxu0  ;;  %vm3912_vm12 = vcmp.gt.f32.partialorder %v12391_v38, 0.0 }
 0x1f8   : > { %v11527_v60 = vpop.eup %11526  ;;  %11203 = vmatpush3.bf16.msra.mxu1 %v11200_v31  ;;  %10665 = vmatprep.mubr.msk.f32.mxu1 %vm709_vm0, %v9605_v50  ;;  %v12412_v32 = vsel %vm3904_vm4, %v12286_v33, %v9071_v46  ;;  %v4066_v47 = vmul.f32 1.442695, %v3977_v3  ;;  %v12416_v29 = vadd.f32 %v10557_v61, %v12086_v6  ;;  %v3699_v2 = vpop.f32.mrb[59].mxu0 }
 0x1f9   : > { %v11529_v42 = vpop.eup %11528  ;;  %v11204_v9 = vpack.c.bf16 %v12401_v39, %v12412_v32  ;;  %v9074_v23 = vadd.f32 -1.0, %v11527_v60  ;;  %v4064_v27 = vmul.f32 1.442695, %v3976_v41  ;;  %v12421_v31 = vadd.f32 %v12086_v6, %v3699_v2 }
 0x1fa   : > { %v9073_v50 = vadd.f32 -1.0, %v11529_v42  ;;  %11538 = vpow2.f32 %v4066_v47  ;;  %v3979_v33 = vmin.f32 %v12416_v29, 0.0  ;;  %vm3915_vm13 = vcmp.gt.f32.partialorder %v12416_v29, 0.0 }
 0x1fb   : > { %10666 = vmatmul.mubr.msk.f32.vlgmr.msra.gmra.mrb[46].mxu1 %vm709_vm0, %v9606_v51  ;;  %11205 = vmatprep.subr.bf16.mxu1 %v11204_v9  ;;  %v12432_v46 = vsel %vm3907_vm5, %v12307_v13, %v9074_v23  ;;  %11540 = vpow2.f32 %v4064_v27  ;;  %v3978_v3 = vmin.f32 %v12421_v31, 0.0  ;;  %v10560_v41 = vpop.f32.mrb[60].mxu0  ;;  %v6870_v23 = vld [vmem:[%s14094_s5 + $0x30] sm:$0xff]  ;;  %vm3914_vm14 = vcmp.gt.f32.partialorder %v12421_v31, 0.0 }
 0x1fc   : > { %v11531_v61 = vpop.eup %11530  ;;  %11207 = vmatpush3.bf16.msra.mxu1 %v11204_v9  ;;  %10672 = vmatprep.mubr.msk.f32.mxu1 %vm709_vm0, %v9609_v55  ;;  %v12442_v37 = vsel %vm3906_vm6, %v12313_v21, %v9073_v50  ;;  %v4070_v51 = vmul.f32 1.442695, %v3979_v33  ;;  %v12445_v13 = vadd.f32 %v10560_v41, %v12086_v6  ;;  %v3709_v60 = vpop.f32.mrb[61].mxu0  ;;  %v6871_v21 = vld [vmem:[%s14094_s5 + $0x38] sm:$0xff] }
 0x1fd   : > { %v11533_v47 = vpop.eup %11532  ;;  %v9076_v2 = vadd.f32 -1.0, %v11531_v61  ;;  %v11208_v42 = vpack.c.bf16 %v12432_v46, %v12442_v37  ;;  %v4068_v9 = vmul.f32 1.442695, %v3978_v3  ;;  %v12450_v55 = vadd.f32 %v12086_v6, %v3709_v60 }
 0x1fe   : > { %v9075_v27 = vadd.f32 -1.0, %v11533_v47  ;;  %11542 = vpow2.f32 %v4070_v51  ;;  %v3981_v50 = vmin.f32 %v12445_v13, 0.0  ;;  %v14122_v60 = vunpack.c.l.bf16 %v12148_v48 }
 0x1ff   : > { %10673 = vmatmul.mubr.msk.f32.vlgmr.msra.gmra.mrb[48].mxu1 %vm709_vm0, %v9610_v56  ;;  %11209 = vmatprep.subr.bf16.mxu1 %v11208_v42  ;;  %11544 = vpow2.f32 %v4068_v9  ;;  %v12467_v33 = vsel %vm3909_vm7, %v12335_v17, %v9076_v2  ;;  %v3980_v3 = vmin.f32 %v12450_v55, 0.0  ;;  %v10563_v41 = vpop.f32.mrb[62].mxu0  ;;  %v12481_v47 = vpack.c.bf16 %v6871_v21, %v6870_v23 }
 0x200   : > { %v11535_v61 = vpop.eup %11534  ;;  %11211 = vmatpush3.bf16.msra.mxu1 %v11208_v42  ;;  %v4074_v51 = vmul.f32 1.442695, %v3981_v50  ;;  %10679 = vmatprep.mubr.msk.f32.mxu1 %vm709_vm0, %v14122_v60  ;;  %v12476_v43 = vsel %vm3908_vm8, %v12341_v20, %v9075_v27  ;;  %v12479_v56 = vadd.f32 %v10563_v41, %v12086_v6  ;;  %v3719_v17 = vpop.f32.mrb[63].mxu0  ;;  %v14123_v23 = vunpack.c.h.bf16 %v12148_v48 }
 0x201   : > { %v11537_v2 = vpop.eup %11536  ;;  %v9078_v9 = vadd.f32 -1.0, %v11535_v61  ;;  %v11212_v42 = vpack.c.bf16 %v12467_v33, %v12476_v43  ;;  %v4072_v50 = vmul.f32 1.442695, %v3980_v3  ;;  %v12486_v60 = vadd.f32 %v12086_v6, %v3719_v17  ;;  %11305 = vmatprep.subr.bf16.mxu0 %v12481_v47  ;;  %v12502_v61 = vld [vmem:[%s12055_s24 + $0x98] sm:$0xff]  }
 0x202   : > { %v9077_v22 = vadd.f32 -1.0, %v11537_v2  ;;  %11546 = vpow2.f32 %v4074_v51  ;;  %v3983_v20 = vmin.f32 %v12479_v56, 0.0  ;;  %11307 = vmatpush3.bf16.msra.mxu0 %v12481_v47  ;;  %vm3917_vm15 = vcmp.gt.f32.partialorder %v12445_v13, 0.0 }
 0x203   : > { %11213 = vmatprep.subr.bf16.mxu1 %v11212_v42  ;;  %11548 = vpow2.f32 %v4072_v50  ;;  %10680 = vmatmul.mubr.msk.f32.vlgmr.msra.gmra.mrb[50].mxu1 %vm709_vm0, %v14123_v23  ;;  %v3982_v21 = vmin.f32 %v12486_v60, 0.0  ;;  %v10566_v3 = vpop.f32.mrb[64].mxu0  ;;  %v12499_v41 = vsel %vm3911_vm9, %v12360_v36, %v9078_v9  ;;  %v14124_v50 = vunpack.c.l.bf16 %v12154_v52 }
 0x204   : > { %v11539_v51 = vpop.eup %11538  ;;  %11215 = vmatpush3.bf16.msra.mxu1 %v11212_v42  ;;  %v4078_v17 = vmul.f32 1.442695, %v3983_v20  ;;  %v12506_v2 = vadd.f32 %v10566_v3, %v12086_v6  ;;  %v3729_v48 = vpop.f32.mrb[65].mxu0  ;;  %v12514_v36 = vsel %vm3910_vm10, %v12366_v59, %v9077_v22  ;;  %vm3916_vm1 = vcmp.gt.f32.partialorder %v12450_v55, 0.0 }
 0x205   : > { %10686 = vmatprep.mubr.msk.f32.mxu1 %vm709_vm0, %v14124_v50  ;;  %v11541_v9 = vpop.eup %11540  ;;  %v9080_v23 = vadd.f32 -1.0, %v11539_v51  ;;  %v4076_v27 = vmul.f32 1.442695, %v3982_v21  ;;  %v12517_v53 = vadd.f32 %v12086_v6, %v3729_v48  ;;  %v11216_v42 = vpack.c.bf16 %v12499_v41, %v12514_v36 }
 0x206   : > { %v9079_v20 = vadd.f32 -1.0, %v11541_v9  ;;  %11550 = vpow2.f32 %v4078_v17  ;;  %v3985_v3 = vmin.f32 %v12506_v2, 0.0  ;;  %v14125_v21 = vunpack.c.h.bf16 %v12154_v52 }
 0x207   : > { %11552 = vpow2.f32 %v4076_v27  ;;  %v3984_v59 = vmin.f32 %v12517_v53, 0.0  ;;  %v10569_v22 = vpop.f32.mrb[66].mxu0  ;;  %11217 = vmatprep.subr.bf16.mxu1 %v11216_v42  ;;  %v12532_v51 = vsel %vm3913_vm11, %v12386_v45, %v9080_v23  ;;  %v14126_v50 = vunpack.c.l.bf16 %v12160_v57 }
 0x208   : > { %10687 = vmatmul.mubr.msk.f32.vlgmr.msra.gmra.mrb[52].mxu1 %vm709_vm0, %v14125_v21  ;;  %v11543_v17 = vpop.eup %11542  ;;  %v4082_v48 = vmul.f32 1.442695, %v3985_v3  ;;  %v12536_v9 = vadd.f32 %v10569_v22, %v12086_v6  ;;  %v3739_v27 = vpop.f32.mrb[67].mxu0  ;;  %v12544_v52 = vsel %vm3912_vm12, %v12391_v38, %v9079_v20  ;;  %vm3919_vm2 = vcmp.gt.f32.partialorder %v12479_v56, 0.0 }
 0x209   : > { %11219 = vmatpush3.bf16.msra.mxu1 %v11216_v42  ;;  %10693 = vmatprep.mubr.msk.f32.mxu1 %vm709_vm0, %v14126_v50  ;;  %v11545_v45 = vpop.eup %11544  ;;  %v9082_v23 = vadd.f32 -1.0, %v11543_v17  ;;  %v4080_v21 = vmul.f32 1.442695, %v3984_v59  ;;  %v12547_v3 = vadd.f32 %v12086_v6, %v3739_v27  ;;  %v11220_v22 = vpack.c.bf16 %v12532_v51, %v12544_v52 }
 0x20a   : > { %v9081_v42 = vadd.f32 -1.0, %v11545_v45  ;;  %11554 = vpow2.f32 %v4082_v48  ;;  %v3987_v0 = vmin.f32 %v12536_v9, 0.0  ;;  %v14127_v59 = vunpack.c.h.bf16 %v12160_v57  ;;  %v12564_v48 = vld [vmem:[%s12055_s24 + $0xa0] sm:$0xff]  }
 0x20b   : > { %11556 = vpow2.f32 %v4080_v21  ;;  %v3986_v38 = vmin.f32 %v12547_v3, 0.0  ;;  %v10572_v20 = vpop.f32.mrb[68].mxu0  ;;  %11221 = vmatprep.subr.bf16.mxu1 %v11220_v22  ;;  %v12561_v17 = vsel %vm3915_vm13, %v12416_v29, %v9082_v23  ;;  %v14128_v57 = vunpack.c.l.bf16 %v12168_v63 }
 0x20c   : > { %10694 = vmatmul.mubr.msk.f32.vlgmr.msra.gmra.mrb[54].mxu1 %vm709_vm0, %v14127_v59  ;;  %v11547_v27 = vpop.eup %11546  ;;  %v4086_v45 = vmul.f32 1.442695, %v3987_v0  ;;  %v12568_v21 = vadd.f32 %v10572_v20, %v12086_v6  ;;  %v3749_v50 = vpop.f32.mrb[69].mxu0  ;;  %v12576_v29 = vsel %vm3914_vm14, %v12421_v31, %v9081_v42  ;;  %vm3918_vm3 = vcmp.gt.f32.partialorder %v12486_v60, 0.0 }
 0x20d   : > { %11223 = vmatpush3.bf16.msra.mxu1 %v11220_v22  ;;  %10700 = vmatprep.mubr.msk.f32.mxu1 %vm709_vm0, %v14128_v57  ;;  %v11549_v23 = vpop.eup %11548  ;;  %v9084_v59 = vadd.f32 -1.0, %v11547_v27  ;;  %v4084_v11 = vmul.f32 1.442695, %v3986_v38  ;;  %v12579_v16 = vadd.f32 %v12086_v6, %v3749_v50  ;;  %v11224_v0 = vpack.c.bf16 %v12561_v17, %v12576_v29 }
 0x20e   : > { %v9083_v20 = vadd.f32 -1.0, %v11549_v23  ;;  %11558 = vpow2.f32 %v4086_v45  ;;  %v3989_v22 = vmin.f32 %v12568_v21, 0.0  ;;  %v14129_v38 = vunpack.c.h.bf16 %v12168_v63 }
 0x20f   : > { %11560 = vpow2.f32 %v4084_v11  ;;  %v3988_v31 = vmin.f32 %v12579_v16, 0.0  ;;  %v10575_v42 = vpop.f32.mrb[70].mxu0  ;;  %11225 = vmatprep.subr.bf16.mxu1 %v11224_v0  ;;  %v12593_v50 = vsel %vm3917_vm15, %v12445_v13, %v9084_v59  ;;  %v14131_v57 = vunpack.c.l.bf16 %v12176_v7 }
 0x210   : > { %10701 = vmatmul.mubr.msk.f32.vlgmr.msra.gmra.mrb[56].mxu1 %vm709_vm0, %v14129_v38  ;;  %14130 = vst [vmem:[#allocation2_spill] sm:$0xff] %v12593_v50  ;;  %v11551_v27 = vpop.eup %11550  ;;  %v4090_v45 = vmul.f32 1.442695, %v3989_v22  ;;  %v12597_v23 = vadd.f32 %v10575_v42, %v12086_v6  ;;  %v3759_v11 = vpop.f32.mrb[71].mxu0  ;;  %v12605_v63 = vsel %vm3916_vm1, %v12450_v55, %v9083_v20  ;;  %vm3921_vm4 = vcmp.gt.f32.partialorder %v12506_v2, 0.0 }
 0x211   : > { %11227 = vmatpush3.bf16.msra.mxu1 %v11224_v0  ;;  %10707 = vmatprep.mubr.msk.f32.mxu1 %vm709_vm0, %v14131_v57  ;;  %14132 = vst [vmem:[#allocation3_spill] sm:$0xff] %v12605_v63  ;;  %v11553_v13 = vpop.eup %11552  ;;  %v9086_v59 = vadd.f32 -1.0, %v11551_v27  ;;  %v4088_v38 = vmul.f32 1.442695, %v3988_v31  ;;  %v12608_v22 = vadd.f32 %v12086_v6, %v3759_v11  ;;  %v11228_v42 = vpack.c.bf16 %v12593_v50, %v12605_v63 }
 0x212   : > { %v9085_v0 = vadd.f32 -1.0, %v11553_v13  ;;  %11562 = vpow2.f32 %v4090_v45  ;;  %v3991_v40 = vmin.f32 %v12597_v23, 0.0  ;;  %v14133_v31 = vunpack.c.h.bf16 %v12176_v7  ;;  %v12625_v45 = vld [vmem:[%s12055_s24 + $0xa8] sm:$0xff]  }
 0x213   : > { %11564 = vpow2.f32 %v4088_v38  ;;  %v3990_v55 = vmin.f32 %v12608_v22, 0.0  ;;  %v10578_v20 = vpop.f32.mrb[72].mxu0  ;;  %11229 = vmatprep.subr.bf16.mxu1 %v11228_v42  ;;  %v12622_v27 = vsel %vm3919_vm2, %v12479_v56, %v9086_v59  ;;  %vm3920_vm5 = vcmp.gt.f32.partialorder %v12517_v53, 0.0 }
 0x214   : > { %10708 = vmatmul.mubr.msk.f32.vlgmr.msra.gmra.mrb[58].mxu1 %vm709_vm0, %v14133_v31  ;;  %14134 = vst [vmem:[#allocation4_spill] sm:$0xff] %v12622_v27  ;;  %v11555_v11 = vpop.eup %11554  ;;  %v4094_v13 = vmul.f32 1.442695, %v3991_v40  ;;  %v12629_v38 = vadd.f32 %v10578_v20, %v12086_v6  ;;  %v3769_v57 = vpop.f32.mrb[73].mxu0  ;;  %v14135_v7 = vunpack.c.l.bf16 %v12182_v15  ;;  %v12637_v56 = vsel %vm3918_vm3, %v12486_v60, %v9085_v0 }
 0x215   : > { %11231 = vmatpush3.bf16.msra.mxu1 %v11228_v42  ;;  %v11557_v59 = vpop.eup %11556  ;;  %v9088_v31 = vadd.f32 -1.0, %v11555_v11  ;;  %v4092_v50 = vmul.f32 1.442695, %v3990_v55  ;;  %v12640_v63 = vadd.f32 %v12086_v6, %v3769_v57  ;;  %v11232_v40 = vpack.c.bf16 %v12622_v27, %v12637_v56 }
 0x216   : > { %10714 = vmatprep.mubr.msk.f32.mxu1 %vm709_vm0, %v14135_v7  ;;  %v9087_v20 = vadd.f32 -1.0, %v11557_v59  ;;  %11566 = vpow2.f32 %v4094_v13  ;;  %v3993_v42 = vmin.f32 %v12629_v38, 0.0  ;;  %vm3923_vm6 = vcmp.gt.f32.partialorder %v12536_v9, 0.0 }
 0x217   : > { %11568 = vpow2.f32 %v4092_v50  ;;  %v3992_v60 = vmin.f32 %v12640_v63, 0.0  ;;  %v10581_v0 = vpop.f32.mrb[74].mxu0  ;;  %v14136_v55 = vunpack.c.h.bf16 %v12182_v15  ;;  %11233 = vmatprep.subr.bf16.mxu1 %v11232_v40  ;;  %v12654_v57 = vsel %vm3921_vm4, %v12506_v2, %v9088_v31 }
 0x218   : > { %14137 = vst [vmem:[#allocation5_spill] sm:$0xff] %v12654_v57  ;;  %v11559_v11 = vpop.eup %11558  ;;  %vm3922_vm7 = vcmp.gt.f32.partialorder %v12547_v3, 0.0  ;;  %v4098_v13 = vmul.f32 1.442695, %v3993_v42  ;;  %v12658_v59 = vadd.f32 %v10581_v0, %v12086_v6  ;;  %v3779_v50 = vpop.f32.mrb[75].mxu0  ;;  %v14138_v7 = vunpack.c.l.bf16 %v12216_v54 }
 0x219   : > { %10715 = vmatmul.mubr.msk.f32.vlgmr.msra.gmra.mrb[60].mxu1 %vm709_vm0, %v14136_v55  ;;  %v12666_v15 = vsel %vm3920_vm5, %v12517_v53, %v9087_v20  ;;  %v11561_v2 = vpop.eup %11560  ;;  %v9090_v31 = vadd.f32 -1.0, %v11559_v11  ;;  %v4096_v55 = vmul.f32 1.442695, %v3992_v60  ;;  %v12669_v42 = vadd.f32 %v12086_v6, %v3779_v50  ;;  %v12686_v11 = vld [vmem:[%s12055_s24 + $0xb0] sm:$0xff]  }
 0x21a   : > { %11235 = vmatpush3.bf16.msra.mxu1 %v11232_v40  ;;  %10721 = vmatprep.mubr.msk.f32.mxu1 %vm709_vm0, %v14138_v7  ;;  %14139 = vst [vmem:[#allocation6_spill] sm:$0xff] %v12666_v15  ;;  %v11236_v0 = vpack.c.bf16 %v12654_v57, %v12666_v15  ;;  %v9089_v40 = vadd.f32 -1.0, %v11561_v2  ;;  %11570 = vpow2.f32 %v4098_v13  ;;  %v3995_v27 = vmin.f32 %v12658_v59, 0.0  ;;  %v12692_v2 = vld [vmem:[%s14093_s4] ss:$0 sm:$0xff] }
 0x21b   : > { %vm3925_vm8 = vcmp.gt.f32.partialorder %v12568_v21, 0.0  ;;  %11572 = vpow2.f32 %v4096_v55  ;;  %v3994_v53 = vmin.f32 %v12669_v42, 0.0  ;;  %v10584_v20 = vpop.f32.mrb[76].mxu0  ;;  %v14140_v60 = vunpack.c.h.bf16 %v12216_v54 }
 0x21c   : > { %11237 = vmatprep.subr.bf16.mxu1 %v11236_v0  ;;  %v12683_v6 = vsel %vm3923_vm6, %v12536_v9, %v9090_v31  ;;  %v11563_v13 = vpop.eup %11562  ;;  %vm3924_vm9 = vcmp.gt.f32.partialorder %v12579_v16, 0.0  ;;  %v4102_v50 = vmul.f32 1.442695, %v3995_v27  ;;  %v12695_v54 = vadd.f32 %v12692_v2, %v10584_v20  ;;  %v3789_v55 = vpop.f32.mrb[77].mxu0 }
 0x21d   : > { %10722 = vmatmul.mubr.msk.f32.vlgmr.msra.gmra.mrb[62].mxu1 %vm709_vm0, %v14140_v60  ;;  %14141 = vst [vmem:[#allocation7_spill] sm:$0xff] %v12683_v6  ;;  %v14142_v60 = vunpack.c.l.bf16 %v12263_v8  ;;  %v12703_v9 = vsel %vm3922_vm7, %v12547_v3, %v9089_v40  ;;  %v11565_v27 = vpop.eup %11564  ;;  %v9092_v31 = vadd.f32 -1.0, %v11563_v13  ;;  %v4100_v7 = vmul.f32 1.442695, %v3994_v53 }
 0x21e   : > { %11239 = vmatpush3.bf16.msra.mxu1 %v11236_v0  ;;  %v12706_v57 = vadd.f32 %v12692_v2, %v3789_v55  ;;  %v11240_v20 = vpack.c.bf16 %v12683_v6, %v12703_v9  ;;  %v9091_v15 = vadd.f32 -1.0, %v11565_v27  ;;  %11574 = vpow2.f32 %v4102_v50 }
 0x21f   : > { %10728 = vmatprep.mubr.msk.f32.mxu1 %vm709_vm0, %v14142_v60  ;;  %v3997_v0 = vmin.f32 %v12695_v54, 0.0  ;;  %vm3927_vm10 = vcmp.gt.f32.partialorder %v12597_v23, 0.0  ;;  %11576 = vpow2.f32 %v4100_v7  ;;  %v10587_v40 = vpop.f32.mrb[78].mxu0  ;;  %v14143_v53 = vunpack.c.h.bf16 %v12263_v8 }
 0x220   : > { %v3996_v3 = vmin.f32 %v12706_v57, 0.0  ;;  %11241 = vmatprep.subr.bf16.mxu1 %v11240_v20  ;;  %v12720_v13 = vsel %vm3925_vm8, %v12568_v21, %v9092_v31  ;;  %v11567_v50 = vpop.eup %11566  ;;  %vm3926_vm11 = vcmp.gt.f32.partialorder %v12608_v22, 0.0  ;;  %v12724_v27 = vadd.f32 %v12692_v2, %v10587_v40  ;;  %v3799_v7 = vpop.f32.mrb[79].mxu0 }
 0x221   : > { %10729 = vmatmul.mubr.msk.f32.vlgmr.msra.gmra.mrb[64].mxu1 %vm709_vm0, %v14143_v53  ;;  %14144 = vst [vmem:[#allocation8_spill] sm:$0xff] %v12720_v13  ;;  %v4106_v55 = vmul.f32 1.442695, %v3997_v0  ;;  %v14145_v60 = vunpack.c.l.bf16 %v12316_v26  ;;  %v12732_v8 = vsel %vm3924_vm9, %v12579_v16, %v9091_v15  ;;  %v11569_v21 = vpop.eup %11568  ;;  %v9094_v31 = vadd.f32 -1.0, %v11567_v50 }
 0x222   : > { %11243 = vmatpush3.bf16.msra.mxu1 %v11240_v20  ;;  %14146 = vst [vmem:[#allocation9_spill] sm:$0xff] %v12732_v8  ;;  %v4104_v53 = vmul.f32 1.442695, %v3996_v3  ;;  %v12735_v0 = vadd.f32 %v12692_v2, %v3799_v7  ;;  %v11244_v40 = vpack.c.bf16 %v12720_v13, %v12732_v8  ;;  %v9093_v20 = vadd.f32 -1.0, %v11569_v21 }
 0x223   : > { %10735 = vmatprep.mubr.msk.f32.mxu1 %vm709_vm0, %v14145_v60  ;;  %11578 = vpow2.f32 %v4106_v55  ;;  %v3999_v6 = vmin.f32 %v12724_v27, 0.0  ;;  %vm3929_vm12 = vcmp.gt.f32.partialorder %v12629_v38, 0.0  ;;  %v10590_v15 = vpop.f32.mrb[80].mxu0  ;;  %v14147_v3 = vunpack.c.h.bf16 %v12316_v26  ;;  %v12752_v55 = vld [vmem:[%s12055_s24 + $0xb8] sm:$0xff]  }
 0x224   : > { %11580 = vpow2.f32 %v4104_v53  ;;  %v3998_v16 = vmin.f32 %v12735_v0, 0.0  ;;  %11245 = vmatprep.subr.bf16.mxu1 %v11244_v40  ;;  %v12749_v50 = vsel %vm3927_vm10, %v12597_v23, %v9094_v31  ;;  %v11571_v7 = vpop.eup %11570  ;;  %vm3928_vm13 = vcmp.gt.f32.partialorder %v12640_v63, 0.0  ;;  %v3809_v60 = vpop.f32.mrb[81].mxu0 }
 0x225   : > { %10736 = vmatmul.mubr.msk.f32.vlgmr.msra.gmra.mrb[66].mxu1 %vm709_vm0, %v14147_v3  ;;  %14148 = vst [vmem:[#allocation10_spill] sm:$0xff] %v12749_v50  ;;  %v4110_v21 = vmul.f32 1.442695, %v3999_v6  ;;  %v12756_v53 = vadd.f32 %v12692_v2, %v10590_v15  ;;  %v14149_v26 = vunpack.c.l.bf16 %v12406_v12  ;;  %v12764_v23 = vsel %vm3926_vm11, %v12608_v22, %v9093_v20  ;;  %v11573_v31 = vpop.eup %11572 }
 0x226   : > { %11247 = vmatpush3.bf16.msra.mxu1 %v11244_v40  ;;  %v9096_v3 = vadd.f32 -1.0, %v11571_v7  ;;  %v4108_v13 = vmul.f32 1.442695, %v3998_v16  ;;  %v12767_v8 = vadd.f32 %v12692_v2, %v3809_v60  ;;  %v11248_v6 = vpack.c.bf16 %v12749_v50, %v12764_v23 }
 0x227   : > { %10742 = vmatprep.mubr.msk.f32.mxu1 %vm709_vm0, %v14149_v26  ;;  %v9095_v15 = vadd.f32 -1.0, %v11573_v31  ;;  %11582 = vpow2.f32 %v4110_v21  ;;  %v4001_v40 = vmin.f32 %v12756_v53, 0.0  ;;  %vm3931_vm14 = vcmp.gt.f32.partialorder %v12658_v59, 0.0  ;;  %v10593_v20 = vpop.f32.mrb[82].mxu0 }
 0x228   : > { %11584 = vpow2.f32 %v4108_v13  ;;  %v4000_v22 = vmin.f32 %v12767_v8, 0.0  ;;  %v14150_v16 = vunpack.c.h.bf16 %v12406_v12  ;;  %11249 = vmatprep.subr.bf16.mxu1 %v11248_v6  ;;  %v12781_v60 = vsel %vm3929_vm12, %v12629_v38, %v9096_v3  ;;  %v11575_v7 = vpop.eup %11574  ;;  %v3819_v13 = vpop.f32.mrb[83].mxu0 }
 0x229   : > { %14151 = vst [vmem:[#allocation11_spill] sm:$0xff] %v12781_v60  ;;  %vm3930_vm15 = vcmp.gt.f32.partialorder %v12669_v42, 0.0  ;;  %v4114_v21 = vmul.f32 1.442695, %v4001_v40  ;;  %v12785_v31 = vadd.f32 %v12692_v2, %v10593_v20  ;;  %v14152_v26 = vunpack.c.l.bf16 %v12502_v61  ;;  %v11577_v38 = vpop.eup %11576 }
 0x22a   : > { %10743 = vmatmul.mubr.msk.f32.vlgmr.msra.gmra.mrb[68].mxu1 %vm709_vm0, %v14150_v16  ;;  %v12793_v12 = vsel %vm3928_vm13, %v12640_v63, %v9095_v15  ;;  %v9098_v3 = vadd.f32 -1.0, %v11575_v7  ;;  %v4112_v16 = vmul.f32 1.442695, %v4000_v22  ;;  %v12796_v40 = vadd.f32 %v12692_v2, %v3819_v13 }
 0x22b   : > { %11251 = vmatpush3.bf16.msra.mxu1 %v11248_v6  ;;  %10749 = vmatprep.mubr.msk.f32.mxu1 %vm709_vm0, %v14152_v26  ;;  %14153 = vst [vmem:[#allocation12_spill] sm:$0xff] %v12793_v12  ;;  %v11252_v20 = vpack.c.bf16 %v12781_v60, %v12793_v12  ;;  %v9097_v6 = vadd.f32 -1.0, %v11577_v38  ;;  %11586 = vpow2.f32 %v4114_v21  ;;  %v4003_v50 = vmin.f32 %v12785_v31, 0.0  ;;  %v10596_v15 = vpop.f32.mrb[84].mxu0  ;;  %v12813_v21 = vld [vmem:[%s12055_s24 + $0xc0] sm:$0xff]  }
 0x22c   : > { %vm3933_vm1 = vcmp.gt.f32.partialorder %v12695_v54, 0.0  ;;  %11588 = vpow2.f32 %v4112_v16  ;;  %v4002_v63 = vmin.f32 %v12796_v40, 0.0  ;;  %v14154_v22 = vunpack.c.h.bf16 %v12502_v61  ;;  %v3829_v26 = vpop.f32.mrb[85].mxu0 }
 0x22d   : > { %11253 = vmatprep.subr.bf16.mxu1 %v11252_v20  ;;  %v12810_v7 = vsel %vm3931_vm14, %v12658_v59, %v9098_v3  ;;  %v11579_v13 = vpop.eup %11578  ;;  %vm3932_vm2 = vcmp.gt.f32.partialorder %v12706_v57, 0.0  ;;  %v4118_v38 = vmul.f32 1.442695, %v4003_v50  ;;  %v12817_v16 = vadd.f32 %v12692_v2, %v10596_v15 }
 0x22e   : > { %10750 = vmatmul.mubr.msk.f32.vlgmr.msra.gmra.mrb[70].mxu1 %vm709_vm0, %v14154_v22  ;;  %14155 = vst [vmem:[#allocation13_spill] sm:$0xff] %v12810_v7  ;;  %v14156_v61 = vunpack.c.l.bf16 %v12564_v48  ;;  %v12825_v59 = vsel %vm3930_vm15, %v12669_v42, %v9097_v6  ;;  %v11581_v3 = vpop.eup %11580  ;;  %v9100_v22 = vadd.f32 -1.0, %v11579_v13  ;;  %v4116_v60 = vmul.f32 1.442695, %v4002_v63 }
 0x22f   : > { %11255 = vmatpush3.bf16.msra.mxu1 %v11252_v20  ;;  %v12828_v12 = vadd.f32 %v12692_v2, %v3829_v26  ;;  %v11256_v50 = vpack.c.bf16 %v12810_v7, %v12825_v59  ;;  %v9099_v15 = vadd.f32 -1.0, %v11581_v3  ;;  %11590 = vpow2.f32 %v4118_v38  ;;  %v10599_v6 = vpop.f32.mrb[86].mxu0 }
 0x230   : > { %10756 = vmatprep.mubr.msk.f32.mxu1 %vm709_vm0, %v14156_v61  ;;  %v4005_v20 = vmin.f32 %v12817_v16, 0.0  ;;  %vm3935_vm3 = vcmp.gt.f32.partialorder %v12724_v27, 0.0  ;;  %11592 = vpow2.f32 %v4116_v60  ;;  %v14157_v63 = vunpack.c.h.bf16 %v12564_v48  ;;  %v3839_v60 = vpop.f32.mrb[87].mxu0 }
 0x231   : > { %v4004_v42 = vmin.f32 %v12828_v12, 0.0  ;;  %11257 = vmatprep.subr.bf16.mxu1 %v11256_v50  ;;  %v12842_v26 = vsel %vm3933_vm1, %v12695_v54, %v9100_v22  ;;  %v11583_v13 = vpop.eup %11582  ;;  %vm3934_vm4 = vcmp.gt.f32.partialorder %v12735_v0, 0.0  ;;  %v12846_v3 = vadd.f32 %v12692_v2, %v10599_v6 }
 0x232   : > { %10757 = vmatmul.mubr.msk.f32.vlgmr.msra.gmra.mrb[72].mxu1 %vm709_vm0, %v14157_v63  ;;  %14158 = vst [vmem:[#allocation14_spill] sm:$0xff] %v12842_v26  ;;  %v4122_v38 = vmul.f32 1.442695, %v4005_v20  ;;  %v14159_v61 = vunpack.c.l.bf16 %v12625_v45  ;;  %v12854_v48 = vsel %vm3932_vm2, %v12706_v57, %v9099_v15  ;;  %v11585_v54 = vpop.eup %11584  ;;  %v9102_v22 = vadd.f32 -1.0, %v11583_v13 }
 0x233   : > { %11259 = vmatpush3.bf16.msra.mxu1 %v11256_v50  ;;  %14160 = vst [vmem:[#allocation15_spill] sm:$0xff] %v12854_v48  ;;  %v4120_v63 = vmul.f32 1.442695, %v4004_v42  ;;  %v12857_v20 = vadd.f32 %v12692_v2, %v3839_v60  ;;  %v11260_v6 = vpack.c.bf16 %v12842_v26, %v12854_v48  ;;  %v9101_v50 = vadd.f32 -1.0, %v11585_v54  ;;  %v10602_v15 = vpop.f32.mrb[88].mxu0 }
 0x234   : > { %10763 = vmatprep.mubr.msk.f32.mxu1 %vm709_vm0, %v14159_v61  ;;  %11594 = vpow2.f32 %v4122_v38  ;;  %v4007_v7 = vmin.f32 %v12846_v3, 0.0  ;;  %vm3937_vm5 = vcmp.gt.f32.partialorder %v12756_v53, 0.0  ;;  %v14161_v42 = vunpack.c.h.bf16 %v12625_v45  ;;  %v12874_v38 = vld [vmem:[%s12055_s24 + $0xc8] sm:$0xff]   ;;  %v3849_v61 = vpop.f32.mrb[89].mxu0 }
 0x235   : > { %11596 = vpow2.f32 %v4120_v63  ;;  %v4006_v57 = vmin.f32 %v12857_v20, 0.0  ;;  %11261 = vmatprep.subr.bf16.mxu1 %v11260_v6  ;;  %v12871_v13 = vsel %vm3935_vm3, %v12724_v27, %v9102_v22  ;;  %v11587_v60 = vpop.eup %11586  ;;  %vm3936_vm6 = vcmp.gt.f32.partialorder %v12767_v8, 0.0 }
 0x236   : > { %10764 = vmatmul.mubr.msk.f32.vlgmr.msra.gmra.mrb[74].mxu1 %vm709_vm0, %v14161_v42  ;;  %14162 = vst [vmem:[#allocation16_spill] sm:$0xff] %v12871_v13  ;;  %v4126_v54 = vmul.f32 1.442695, %v4007_v7  ;;  %v12878_v63 = vadd.f32 %v12692_v2, %v10602_v15  ;;  %v14163_v45 = vunpack.c.l.bf16 %v12686_v11  ;;  %v12886_v27 = vsel %vm3934_vm4, %v12735_v0, %v9101_v50  ;;  %v11589_v22 = vpop.eup %11588 }
 0x237   : > { %11263 = vmatpush3.bf16.msra.mxu1 %v11260_v6  ;;  %14164 = vst [vmem:[#allocation17_spill] sm:$0xff] %v12886_v27  ;;  %v9104_v42 = vadd.f32 -1.0, %v11587_v60  ;;  %v4124_v26 = vmul.f32 1.442695, %v4006_v57  ;;  %v12889_v48 = vadd.f32 %v12692_v2, %v3849_v61  ;;  %v11264_v7 = vpack.c.bf16 %v12871_v13, %v12886_v27  ;;  %v10605_v50 = vpop.f32.mrb[90].mxu0 }
 0x238   : > { %10770 = vmatprep.mubr.msk.f32.mxu1 %vm709_vm0, %v14163_v45  ;;  %v9103_v15 = vadd.f32 -1.0, %v11589_v22  ;;  %11598 = vpow2.f32 %v4126_v54  ;;  %v4009_v6 = vmin.f32 %v12878_v63, 0.0  ;;  %vm3939_vm7 = vcmp.gt.f32.partialorder %v12785_v31, 0.0 }
 0x239   : > { %11600 = vpow2.f32 %v4124_v26  ;;  %v4008_v0 = vmin.f32 %v12889_v48, 0.0  ;;  %v14165_v57 = vunpack.c.h.bf16 %v12686_v11  ;;  %11265 = vmatprep.subr.bf16.mxu1 %v11264_v7  ;;  %v12903_v61 = vsel %vm3937_vm5, %v12756_v53, %v9104_v42  ;;  %v11591_v60 = vpop.eup %11590  ;;  %v3859_v26 = vpop.f32.mrb[91].mxu0 }
 0x23a   : > { %14166 = vst [vmem:[#allocation18_spill] sm:$0xff] %v12903_v61  ;;  %vm3938_vm8 = vcmp.gt.f32.partialorder %v12796_v40, 0.0  ;;  %v4130_v54 = vmul.f32 1.442695, %v4009_v6  ;;  %v12907_v22 = vadd.f32 %v12692_v2, %v10605_v50  ;;  %v14167_v45 = vunpack.c.l.bf16 %v12752_v55  ;;  %v11593_v53 = vpop.eup %11592 }
 0x23b   : > { %10771 = vmatmul.mubr.msk.f32.vlgmr.msra.gmra.mrb[76].mxu1 %vm709_vm0, %v14165_v57  ;;  %v12915_v11 = vsel %vm3936_vm6, %v12767_v8, %v9103_v15  ;;  %v9106_v42 = vadd.f32 -1.0, %v11591_v60  ;;  %v4128_v57 = vmul.f32 1.442695, %v4008_v0  ;;  %v12918_v6 = vadd.f32 %v12692_v2, %v3859_v26  ;;  %v10608_v15 = vpop.f32.mrb[92].mxu0 }
 0x23c   : > { %11267 = vmatpush3.bf16.msra.mxu1 %v11264_v7  ;;  %10777 = vmatprep.mubr.msk.f32.mxu1 %vm709_vm0, %v14167_v45  ;;  %14168 = vst [vmem:[#allocation19_spill] sm:$0xff] %v12915_v11  ;;  %v11268_v50 = vpack.c.bf16 %v12903_v61, %v12915_v11  ;;  %v9105_v7 = vadd.f32 -1.0, %v11593_v53  ;;  %11602 = vpow2.f32 %v4130_v54  ;;  %v4011_v13 = vmin.f32 %v12907_v22, 0.0  ;;  %v12935_v54 = vld [vmem:[%s12055_s24 + $0xd0] sm:$0xff]   ;;  %v3869_v61 = vpop.f32.mrb[93].mxu0 }
 0x23d   : > { %v9678_v45 = vunpack.c.h.bf16 %v12874_v38  ;;  %vm3941_vm9 = vcmp.gt.f32.partialorder %v12817_v16, 0.0  ;;  %11604 = vpow2.f32 %v4128_v57  ;;  %v4010_v8 = vmin.f32 %v12918_v6, 0.0 }
 0x23e   : > { %v14169_v0 = vunpack.c.h.bf16 %v12752_v55  ;;  %11269 = vmatprep.subr.bf16.mxu1 %v11268_v50  ;;  %v12932_v60 = vsel %vm3939_vm7, %v12785_v31, %v9106_v42  ;;  %v11595_v26 = vpop.eup %11594  ;;  %vm3940_vm10 = vcmp.gt.f32.partialorder %v12828_v12, 0.0  ;;  %v4134_v53 = vmul.f32 1.442695, %v4011_v13 }
 0x23f   : > { %14170 = vst [vmem:[#allocation20_spill] sm:$0xff] %v12932_v60  ;;  %v12939_v57 = vadd.f32 %v12692_v2, %v10608_v15  ;;  %v14171_v55 = vunpack.c.l.bf16 %v12813_v21  ;;  %v12947_v31 = vsel %vm3938_vm8, %v12796_v40, %v9105_v7  ;;  %v11597_v42 = vpop.eup %11596  ;;  %v4132_v11 = vmul.f32 1.442695, %v4010_v8  ;;  %v10611_v7 = vpop.f32.mrb[94].mxu0 }
 0x240   : > { %10778 = vmatmul.mubr.msk.f32.vlgmr.msra.gmra.mrb[78].mxu1 %vm709_vm0, %v14169_v0  ;;  %14172 = vst [vmem:[#allocation21_spill] sm:$0xff] %v12947_v31  ;;  %v9108_v0 = vadd.f32 -1.0, %v11595_v26  ;;  %v12950_v27 = vadd.f32 %v12692_v2, %v3869_v61  ;;  %v11272_v13 = vpack.c.bf16 %v12932_v60, %v12947_v31  ;;  %v9107_v15 = vadd.f32 -1.0, %v11597_v42  ;;  %v3879_v42 = vpop.f32.mrb[95].mxu0 }
 0x241   : > { %11271 = vmatpush3.bf16.msra.mxu1 %v11268_v50  ;;  %10784 = vmatprep.mubr.msk.f32.mxu1 %vm709_vm0, %v14171_v55  ;;  %11606 = vpow2.f32 %v4134_v53  ;;  %v4013_v50 = vmin.f32 %v12939_v57, 0.0  ;;  %v9681_v55 = vunpack.c.l.bf16 %v12935_v54  ;;  %vm3943_vm11 = vcmp.gt.f32.partialorder %v12846_v3, 0.0 }
 0x242   : > { %11608 = vpow2.f32 %v4132_v11  ;;  %v4012_v40 = vmin.f32 %v12950_v27, 0.0  ;;  %v14173_v8 = vunpack.c.h.bf16 %v12813_v21  ;;  %11273 = vmatprep.subr.bf16.mxu1 %v11272_v13  ;;  %v12964_v61 = vsel %vm3941_vm9, %v12817_v16, %v9108_v0  ;;  %v11599_v26 = vpop.eup %11598 }
 0x243   : > { %vm3942_vm12 = vcmp.gt.f32.partialorder %v12857_v20, 0.0  ;;  %v4138_v53 = vmul.f32 1.442695, %v4013_v50  ;;  %v12968_v11 = vadd.f32 %v12692_v2, %v10611_v7  ;;  %v14174_v21 = vunpack.c.l.bf16 %v12874_v38  ;;  %v11601_v16 = vpop.eup %11600  ;;  %v9760_v7 = vld [vmem:[%s12055_s24 + $0xd8] sm:$0xff]  }
 0x244   : > { %10785 = vmatmul.mubr.msk.f32.vlgmr.msra.gmra.mrb[80].mxu1 %vm709_vm0, %v14173_v8  ;;  %v12976_v8 = vsel %vm3940_vm10, %v12828_v12, %v9107_v15  ;;  %v9110_v0 = vadd.f32 -1.0, %v11599_v26  ;;  %v4136_v60 = vmul.f32 1.442695, %v4012_v40  ;;  %v12979_v31 = vadd.f32 %v12692_v2, %v3879_v42  ;;  %v9761_v42 = vld [vmem:[%s12055_s24 + $0xe0] sm:$0xff]  }
 0x245   : > { %11275 = vmatpush3.bf16.msra.mxu1 %v11272_v13  ;;  %10791 = vmatprep.mubr.msk.f32.mxu1 %vm709_vm0, %v14174_v21  ;;  %v11276_v50 = vpack.c.bf16 %v12964_v61, %v12976_v8  ;;  %v9109_v13 = vadd.f32 -1.0, %v11601_v16  ;;  %11610 = vpow2.f32 %v4138_v53  ;;  %v4015_v38 = vmin.f32 %v12968_v11, 0.0 }
 0x246   : > { %11612 = vpow2.f32 %v4136_v60  ;;  %v4014_v21 = vmin.f32 %v12979_v31, 0.0  ;;  %v9682_v12 = vunpack.c.h.bf16 %v12935_v54  ;;  %v12991_v2 = vsel %vm3943_vm11, %v12846_v3, %v9110_v0  ;;  %v11603_v15 = vpop.eup %11602 }
 0x247   : > { %11277 = vmatprep.subr.bf16.mxu1 %v11276_v50  ;;  %vm3945_vm13 = vcmp.gt.f32.partialorder %v12878_v63, 0.0  ;;  %v4142_v40 = vmul.f32 1.442695, %v4015_v38  ;;  %v9685_v60 = vunpack.c.l.bf16 %v9760_v7  ;;  %v11605_v26 = vpop.eup %11604  ;;  %v9112_v54 = vadd.f32 -1.0, %v11603_v15 }
 0x248   : > { %10792 = vmatmul.mubr.msk.f32.vlgmr.msra.gmra.mrb[82].mxu1 %vm709_vm0, %v9678_v45  ;;  %v12998_v45 = vsel %vm3942_vm12, %v12857_v20, %v9109_v13  ;;  %vm3944_vm14 = vcmp.gt.f32.partialorder %v12889_v48, 0.0  ;;  %v4140_v53 = vmul.f32 1.442695, %v4014_v21  ;;  %v9111_v16 = vadd.f32 -1.0, %v11605_v26 }
 0x249   : > { %11279 = vmatpush3.bf16.msra.mxu1 %v11276_v50  ;;  %10798 = vmatprep.mubr.msk.f32.mxu1 %vm709_vm0, %v9681_v55  ;;  %v11280_v3 = vpack.c.bf16 %v12991_v2, %v12998_v45  ;;  %11614 = vpow2.f32 %v4142_v40  ;;  %v9686_v55 = vunpack.c.h.bf16 %v9760_v7  ;;  %v13008_v20 = vsel %vm3945_vm13, %v12878_v63, %v9112_v54 }
 0x24a   : > { %11616 = vpow2.f32 %v4140_v53  ;;  %vm3947_vm15 = vcmp.gt.f32.partialorder %v12907_v22, 0.0  ;;  %v13013_v50 = vsel %vm3944_vm14, %v12889_v48, %v9111_v16  ;;  %v9689_v13 = vunpack.c.l.bf16 %v9761_v42  ;;  %v6864_v16 = vld [vmem:[%s14094_s5] sm:$0xff] }
 0x24b   : > { %11281 = vmatprep.subr.bf16.mxu1 %v11280_v3  ;;  %v11607_v0 = vpop.eup %11606  ;;  %vm3946_vm1 = vcmp.gt.f32.partialorder %v12918_v6, 0.0  ;;  %v11284_v7 = vpack.c.bf16 %v13008_v20, %v13013_v50  ;;  %v9690_v15 = vunpack.c.h.bf16 %v9761_v42  ;;  %vm3949_vm2 = vcmp.gt.f32.partialorder %v12939_v57, 0.0  ;;  %v9763_v42 = vld [vmem:[%s12055_s24 + $0xf0] sm:$0xff]  }
 0x24c   : > { %10799 = vmatmul.mubr.msk.f32.vlgmr.msra.gmra.mrb[84].mxu1 %vm709_vm0, %v9682_v12  ;;  %v11609_v38 = vpop.eup %11608  ;;  %v9114_v21 = vadd.f32 -1.0, %v11607_v0  ;;  %v9762_v12 = vld [vmem:[%s12055_s24 + $0xe8] sm:$0xff]   ;;  %vm3948_vm3 = vcmp.gt.f32.partialorder %v12950_v27, 0.0  ;;  %vm3951_vm4 = vcmp.gt.f32.partialorder %v12968_v11, 0.0  ;;  %vm3950_vm5 = vcmp.gt.f32.partialorder %v12979_v31, 0.0 }
 0x24d   : > { %11283 = vmatpush3.bf16.msra.mxu1 %v11280_v3  ;;  %10805 = vmatprep.mubr.msk.f32.mxu1 %vm709_vm0, %v9685_v60  ;;  %v9113_v63 = vadd.f32 -1.0, %v11609_v38  ;;  %v9693_v26 = vunpack.c.l.bf16 %v9762_v12  ;;  %vm6872_vm6 = vcmask 261120  }
 0x24e   : > { %11285 = vmatprep.subr.bf16.mxu1 %v11284_v7  ;;  %v13021_v40 = vsel %vm3947_vm15, %v12907_v22, %v9114_v21 }
 0x24f   : > { %v11611_v48 = vpop.eup %11610  ;;  %v13026_v60 = vsel %vm3946_vm1, %v12918_v6, %v9113_v63  ;;  %v9694_v6 = vunpack.c.h.bf16 %v9762_v12 }
 0x250   : > { %10806 = vmatmul.mubr.msk.f32.vlgmr.msra.gmra.mrb[86].mxu1 %vm709_vm0, %v9686_v55  ;;  %v11613_v54 = vpop.eup %11612  ;;  %v9116_v53 = vadd.f32 -1.0, %v11611_v48  ;;  %v11288_v3 = vpack.c.bf16 %v13021_v40, %v13026_v60  ;;  %v6865_v55 = vld [vmem:[%s14094_s5 + $0x8] sm:$0xff] }
 0x251   : > { %11287 = vmatpush3.bf16.msra.mxu1 %v11284_v7  ;;  %10812 = vmatprep.mubr.msk.f32.mxu1 %vm709_vm0, %v9689_v13  ;;  %v9115_v22 = vadd.f32 -1.0, %v11613_v54  ;;  %v11308_v13 = vpack.c.bf16 %v6865_v55, %v6864_v16  ;;  %v9697_v7 = vunpack.c.l.bf16 %v9763_v42  ;;  %v9698_v54 = vunpack.c.h.bf16 %v9763_v42 }
 0x252   : > { %11289 = vmatprep.subr.bf16.mxu1 %v11288_v3  ;;  %v13042_v0 = vsel %vm3949_vm2, %v12939_v57, %v9116_v53  ;;  %v9764_v57 = vld [vmem:[%s12055_s24 + $0xf8] sm:$0xff]  }
 0x253   : > { %v11615_v38 = vpop.eup %11614  ;;  %v13047_v21 = vsel %vm3948_vm3, %v12950_v27, %v9115_v22  ;;  %11309 = vmatprep.subr.bf16.mxu0 %v11308_v13  ;;  %v9701_v53 = vunpack.c.l.bf16 %v9764_v57  ;;  %v9702_v22 = vunpack.c.h.bf16 %v9764_v57 }
 0x254   : > { %10813 = vmatmul.mubr.msk.f32.vlgmr.msra.gmra.mrb[88].mxu1 %vm709_vm0, %v9690_v15  ;;  %v11617_v63 = vpop.eup %11616  ;;  %v9118_v15 = vadd.f32 -1.0, %v11615_v38  ;;  %v11292_v12 = vpack.c.bf16 %v13042_v0, %v13047_v21 }
 0x255   : > { %11291 = vmatpush3.bf16.msra.mxu1 %v11288_v3  ;;  %10819 = vmatprep.mubr.msk.f32.mxu1 %vm709_vm0, %v9693_v26  ;;  %v9117_v48 = vadd.f32 -1.0, %v11617_v63 }
 0x256   : > { %11293 = vmatprep.subr.bf16.mxu1 %v11292_v12  ;;  %v13055_v26 = vsel %vm3951_vm4, %v12968_v11, %v9118_v15  ;;  %v6867_v11 = vld [vmem:[%s14094_s5 + $0x18] sm:$0xff] }
 0x257   : > { %v13059_v27 = vsel %vm3950_vm5, %v12979_v31, %v9117_v48  ;;  %v6866_v31 = vld [vmem:[%s14094_s5 + $0x10] sm:$0xff] }
 0x258   : > { %10820 = vmatmul.mubr.msk.f32.vlgmr.msra.gmra.mrb[90].mxu1 %vm709_vm0, %v9694_v6  ;;  %v11296_v3 = vpack.c.bf16 %v13055_v26, %v13059_v27  ;;  %v11312_v55 = vpack.c.bf16 %v6867_v11, %v6866_v31 }
 0x259   : > { %11295 = vmatpush3.bf16.msra.mxu1 %v11292_v12  ;;  %10826 = vmatprep.mubr.msk.f32.mxu1 %vm709_vm0, %v9697_v7 }
 0x25a   : > { %11297 = vmatprep.subr.bf16.mxu1 %v11296_v3 }
 0x25c   : > { %10827 = vmatmul.mubr.msk.f32.vlgmr.msra.gmra.mrb[92].mxu1 %vm709_vm0, %v9698_v54 }
 0x25d   : > { %11299 = vmatpush3.bf16.msra.mxu1 %v11296_v3  ;;  %10833 = vmatprep.mubr.msk.f32.mxu1 %vm709_vm0, %v9701_v53 }
 0x25e   : > { %11412 = vmatprep.subr.bf16.mxu1 %v12079_v5 }
 0x260   : > { %10834 = vmatmul.mubr.msk.f32.vlgmr.msra.gmra.mrb[94].mxu1 %vm709_vm0, %v9702_v22 }
 0x261   : > { %11414 = vmatpush3.bf16.msra.mxu1 %v12079_v5 }
 0x262   : > { %11413 = vmatprep.subr.bf16.mxu1 %v12481_v47 }
 0x265   : > { %11415 = vmatpush3.bf16.msra.mxu1 %v12481_v47 }
 0x2b2   : > { %v10618_v42 = vpop.f32.mrb[32].mxu1 }
 0x2b3   : > { %v4344_v16 = vpop.f32.mrb[33].mxu1 }
 0x2b4   : > { %10844 = vmatprep.mubr.msk.f32.mxu0 %vm6872_vm6, %v4344_v16 }
 0x2b5   : > { %10845 = vmatmul.mubr.msk.f32.vlgmr.msra.gmra.mrb[96].mxu0 %vm6872_vm6, %v10618_v42 }
 0x2b6   : > { %v10625_v5 = vpop.f32.mrb[34].mxu1  ;;  %11311 = vmatpush3.bf16.msra.mxu0 %v11308_v13 }
 0x2b7   : > { %v4425_v6 = vpop.f32.mrb[35].mxu1  ;;  %11313 = vmatprep.subr.bf16.mxu0 %v11312_v55 }
 0x2b8   : > { %10847 = vmatprep.mubr.msk.f32.mxu0 %vm6872_vm6, %v4425_v6 }
 0x2b9   : > { %10848 = vmatmul.mubr.msk.f32.gmra.mrb[98].mxu0 %vm6872_vm6, %v10625_v5 }
 0x2ba   : > { %v10632_v47 = vpop.f32.mrb[36].mxu1  ;;  %11315 = vmatpush3.bf16.msra.mxu0 %v11312_v55 }
 0x2bb   : > { %v4506_v38 = vpop.f32.mrb[37].mxu1 }
 0x2bc   : > { %10850 = vmatprep.mubr.msk.f32.mxu0 %vm6872_vm6, %v4506_v38  ;;  %v14178_v38 = vld [vmem:[#allocation6_spill] sm:$0xff] }
 0x2bd   : > { %10851 = vmatmul.mubr.msk.f32.gmra.mrb[100].mxu0 %vm6872_vm6, %v10632_v47 }
 0x2be   : > { %v10639_v7 = vpop.f32.mrb[38].mxu1 }
 0x2bf   : > { %v4587_v63 = vpop.f32.mrb[39].mxu1 }
 0x2c0   : > { %10853 = vmatprep.mubr.msk.f32.mxu0 %vm6872_vm6, %v4587_v63 }
 0x2c1   : > { %10854 = vmatmul.mubr.msk.f32.gmra.mrb[102].mxu0 %vm6872_vm6, %v10639_v7 }
 0x2c2   : > { %v10646_v13 = vpop.f32.mrb[40].mxu1 }
 0x2c3   : > { %v4668_v15 = vpop.f32.mrb[41].mxu1 }
 0x2c4   : > { %10856 = vmatprep.mubr.msk.f32.mxu0 %vm6872_vm6, %v4668_v15 }
 0x2c5   : > { %10857 = vmatmul.mubr.msk.f32.gmra.mrb[104].mxu0 %vm6872_vm6, %v10646_v13  ;;  %v14179_v13 = vld [vmem:[#allocation5_spill] sm:$0xff] }
 0x2c6   : > { %v10653_v12 = vpop.f32.mrb[42].mxu1 }
 0x2c7   : > { %v4749_v57 = vpop.f32.mrb[43].mxu1 }
 0x2c8   : > { %10859 = vmatprep.mubr.msk.f32.mxu0 %vm6872_vm6, %v4749_v57  ;;  %v14181_v57 = vld [vmem:[#allocation9_spill] sm:$0xff] }
 0x2c9   : > { %10860 = vmatmul.mubr.msk.f32.gmra.mrb[106].mxu0 %vm6872_vm6, %v10653_v12  ;;  %v14180_v12 = vld [vmem:[#allocation7_spill] sm:$0xff] }
 0x2ca   : > { %v10660_v48 = vpop.f32.mrb[44].mxu1 }
 0x2cb   : > { %v4830_v54 = vpop.f32.mrb[45].mxu1 }
 0x2cc   : > { %10862 = vmatprep.mubr.msk.f32.mxu0 %vm6872_vm6, %v4830_v54 }
 0x2cd   : > { %10863 = vmatmul.mubr.msk.f32.gmra.mrb[108].mxu0 %vm6872_vm6, %v10660_v48 }
 0x2ce   : > { %v10667_v53 = vpop.f32.mrb[46].mxu1 }
 0x2cf   : > { %v4911_v3 = vpop.f32.mrb[47].mxu1 }
 0x2d0   : > { %10865 = vmatprep.mubr.msk.f32.mxu0 %vm6872_vm6, %v4911_v3 }
 0x2d1   : > { %10866 = vmatmul.mubr.msk.f32.gmra.mrb[110].mxu0 %vm6872_vm6, %v10667_v53  ;;  %v14182_v53 = vld [vmem:[#allocation8_spill] sm:$0xff] }
 0x2d2   : > { %v10674_v22 = vpop.f32.mrb[48].mxu1 }
 0x2d3   : > { %v4992_v31 = vpop.f32.mrb[49].mxu1 }
 0x2d4   : > { %10868 = vmatprep.mubr.msk.f32.mxu0 %vm6872_vm6, %v4992_v31  ;;  %v14184_v31 = vld [vmem:[#allocation12_spill] sm:$0xff] }
 0x2d5   : > { %10869 = vmatmul.mubr.msk.f32.gmra.mrb[112].mxu0 %vm6872_vm6, %v10674_v22  ;;  %v14183_v22 = vld [vmem:[#allocation10_spill] sm:$0xff] }
 0x2d6   : > { %10948 = vmatprep.mubr.msk.f32.mxu0 %vm6872_vm6, %v12207_v34  ;;  %v10681_v11 = vpop.f32.mrb[50].mxu1 }
 0x2d7   : > { %v5073_v42 = vpop.f32.mrb[51].mxu1 }
 0x2d8   : > { %10871 = vmatprep.mubr.msk.f32.mxu1 %vm6872_vm6, %v5073_v42 }
 0x2d9   : > { %10949 = vmatmul.mubr.msk.f32.vlgmr.msra.gmra.mrb[96].mxu0 %vm6872_vm6, %v12201_v18  ;;  %10872 = vmatmul.mubr.msk.f32.vlgmr.msra.gmra.mrb[96].mxu1 %vm6872_vm6, %v10681_v11 }
 0x2da   : > { %10951 = vmatprep.mubr.msk.f32.mxu0 %vm6872_vm6, %v12229_v24 }
 0x2db   : > { %v10688_v16 = vpop.f32.mrb[52].mxu1 }
 0x2dc   : > { %v5154_v55 = vpop.f32.mrb[53].mxu1 }
 0x2dd   : > { %10874 = vmatprep.mubr.msk.f32.mxu1 %vm6872_vm6, %v5154_v55  ;;  %10952 = vmatmul.mubr.msk.f32.gmra.mrb[98].mxu0 %vm6872_vm6, %v12223_v44 }
 0x2de   : > { %10875 = vmatmul.mubr.msk.f32.gmra.mrb[98].mxu1 %vm6872_vm6, %v10688_v16  ;;  %10954 = vmatprep.mubr.msk.f32.mxu0 %vm6872_vm6, %v12254_v1  ;;  %v14185_v16 = vld [vmem:[#allocation11_spill] sm:$0xff] }
 0x2df   : > { %v10695_v34 = vpop.f32.mrb[54].mxu1 }
 0x2e0   : > { %v5235_v5 = vpop.f32.mrb[55].mxu1 }
 0x2e1   : > { %10877 = vmatprep.mubr.msk.f32.mxu1 %vm6872_vm6, %v5235_v5  ;;  %10955 = vmatmul.mubr.msk.f32.gmra.mrb[100].mxu0 %vm6872_vm6, %v12245_v4  ;;  %v14187_v5 = vld [vmem:[#allocation15_spill] sm:$0xff] }
 0x2e2   : > { %10878 = vmatmul.mubr.msk.f32.gmra.mrb[100].mxu1 %vm6872_vm6, %v10695_v34  ;;  %10957 = vmatprep.mubr.msk.f32.mxu0 %vm6872_vm6, %v12282_v62  ;;  %v14186_v34 = vld [vmem:[#allocation13_spill] sm:$0xff] }
 0x2e3   : > { %v10702_v18 = vpop.f32.mrb[56].mxu1 }
 0x2e4   : > { %v5316_v24 = vpop.f32.mrb[57].mxu1 }
 0x2e5   : > { %10880 = vmatprep.mubr.msk.f32.mxu1 %vm6872_vm6, %v5316_v24  ;;  %10958 = vmatmul.mubr.msk.f32.gmra.mrb[102].mxu0 %vm6872_vm6, %v12273_v25 }
 0x2e6   : > { %10881 = vmatmul.mubr.msk.f32.gmra.mrb[102].mxu1 %vm6872_vm6, %v10702_v18  ;;  %10960 = vmatprep.mubr.msk.f32.mxu0 %vm6872_vm6, %v12304_v10 }
 0x2e7   : > { %v10709_v44 = vpop.f32.mrb[58].mxu1 }
 0x2e8   : > { %v5397_v1 = vpop.f32.mrb[59].mxu1 }
 0x2e9   : > { %10883 = vmatprep.mubr.msk.f32.mxu1 %vm6872_vm6, %v5397_v1  ;;  %10961 = vmatmul.mubr.msk.f32.gmra.mrb[104].mxu0 %vm6872_vm6, %v12298_v19  ;;  %v14190_v1 = vld [vmem:[#allocation16_spill] sm:$0xff] }
 0x2ea   : > { %10884 = vmatmul.mubr.msk.f32.gmra.mrb[104].mxu1 %vm6872_vm6, %v10709_v44  ;;  %10963 = vmatprep.mubr.msk.f32.mxu0 %vm6872_vm6, %v12332_v49  ;;  %v14188_v44 = vld [vmem:[#allocation14_spill] sm:$0xff] }
 0x2ec   : > { %v10716_v4 = vpop.f32.mrb[60].mxu1 }
 0x2ed   : > { %v5478_v62 = vpop.f32.mrb[61].mxu1  ;;  %10964 = vmatmul.mubr.msk.f32.gmra.mrb[106].mxu0 %vm6872_vm6, %v12325_v58 }
 0x2ee   : > { %10886 = vmatprep.mubr.msk.f32.mxu1 %vm6872_vm6, %v5478_v62  ;;  %10966 = vmatprep.mubr.msk.f32.mxu0 %vm6872_vm6, %v12357_v14  ;;  %v14192_v62 = vld [vmem:[#allocation18_spill] sm:$0xff] }
 0x2ef   : > { %10887 = vmatmul.mubr.msk.f32.gmra.mrb[106].mxu1 %vm6872_vm6, %v10716_v4  ;;  %v14191_v4 = vld [vmem:[#allocation19_spill] sm:$0xff] }
 0x2f0   : > { %v10723_v25 = vpop.f32.mrb[62].mxu1 }
 0x2f1   : > { %v5559_v10 = vpop.f32.mrb[63].mxu1  ;;  %10967 = vmatmul.mubr.msk.f32.gmra.mrb[108].mxu0 %vm6872_vm6, %v12350_v30 }
 0x2f2   : > { %10889 = vmatprep.mubr.msk.f32.mxu1 %vm6872_vm6, %v5559_v10  ;;  %10969 = vmatprep.mubr.msk.f32.mxu0 %vm6872_vm6, %v12383_v28  ;;  %v14194_v10 = vld [vmem:[#allocation20_spill] sm:$0xff] }
 0x2f3   : > { %10890 = vmatmul.mubr.msk.f32.gmra.mrb[108].mxu1 %vm6872_vm6, %v10723_v25  ;;  %v14193_v25 = vld [vmem:[#allocation21_spill] sm:$0xff] }
 0x2f4   : > { %v10730_v19 = vpop.f32.mrb[64].mxu1 }
 0x2f5   : > { %v5640_v49 = vpop.f32.mrb[65].mxu1  ;;  %10970 = vmatmul.mubr.msk.f32.gmra.mrb[110].mxu0 %vm6872_vm6, %v12375_v35 }
 0x2f6   : > { %10892 = vmatprep.mubr.msk.f32.mxu1 %vm6872_vm6, %v5640_v49  ;;  %10972 = vmatprep.mubr.msk.f32.mxu0 %vm6872_vm6, %v12412_v32 }
 0x2f7   : > { %10893 = vmatmul.mubr.msk.f32.gmra.mrb[110].mxu1 %vm6872_vm6, %v10730_v19 }
 0x2f8   : > { %v10737_v58 = vpop.f32.mrb[66].mxu1 }
 0x2f9   : > { %v5721_v14 = vpop.f32.mrb[67].mxu1  ;;  %10973 = vmatmul.mubr.msk.f32.gmra.mrb[112].mxu0 %vm6872_vm6, %v12401_v39 }
 0x2fa   : > { %10895 = vmatprep.mubr.msk.f32.mxu1 %vm6872_vm6, %v5721_v14  ;;  %10975 = vmatprep.mubr.msk.f32.mxu0 %vm6872_vm6, %v12442_v37 }
 0x2fb   : > { %10896 = vmatmul.mubr.msk.f32.gmra.mrb[112].mxu1 %vm6872_vm6, %v10737_v58 }
 0x2fd   : > { %v10744_v30 = vpop.f32.mrb[68].mxu1  ;;  %10976 = vmatmul.mubr.msk.f32.gmra.mrb[114].mxu0 %vm6872_vm6, %v12432_v46 }
 0x2fe   : > { %v5802_v28 = vpop.f32.mrb[69].mxu1  ;;  %10978 = vmatprep.mubr.msk.f32.mxu0 %vm6872_vm6, %v12476_v43 }
 0x2ff   : > { %10898 = vmatprep.mubr.msk.f32.mxu1 %vm6872_vm6, %v5802_v28 }
 0x300   : > { %10899 = vmatmul.mubr.msk.f32.gmra.mrb[114].mxu1 %vm6872_vm6, %v10744_v30 }
 0x301   : > { %v10751_v35 = vpop.f32.mrb[70].mxu1  ;;  %10979 = vmatmul.mubr.msk.f32.gmra.mrb[116].mxu0 %vm6872_vm6, %v12467_v33 }
 0x302   : > { %v5883_v32 = vpop.f32.mrb[71].mxu1  ;;  %10981 = vmatprep.mubr.msk.f32.mxu0 %vm6872_vm6, %v12514_v36 }
 0x303   : > { %10901 = vmatprep.mubr.msk.f32.mxu1 %vm6872_vm6, %v5883_v32 }
 0x304   : > { %10902 = vmatmul.mubr.msk.f32.gmra.mrb[116].mxu1 %vm6872_vm6, %v10751_v35 }
 0x305   : > { %v10758_v39 = vpop.f32.mrb[72].mxu1  ;;  %10982 = vmatmul.mubr.msk.f32.gmra.mrb[118].mxu0 %vm6872_vm6, %v12499_v41  ;;  %v14175_v41 = vld [vmem:[#allocation3_spill] sm:$0xff] }
 0x306   : > { %v5964_v37 = vpop.f32.mrb[73].mxu1  ;;  %10984 = vmatprep.mubr.msk.f32.mxu0 %vm6872_vm6, %v12544_v52 }
 0x307   : > { %10904 = vmatprep.mubr.msk.f32.mxu1 %vm6872_vm6, %v5964_v37 }
 0x308   : > { %10905 = vmatmul.mubr.msk.f32.gmra.mrb[118].mxu1 %vm6872_vm6, %v10758_v39 }
 0x309   : > { %v10765_v46 = vpop.f32.mrb[74].mxu1  ;;  %10985 = vmatmul.mubr.msk.f32.gmra.mrb[120].mxu0 %vm6872_vm6, %v12532_v51  ;;  %v14176_v51 = vld [vmem:[#allocation2_spill] sm:$0xff] }
 0x30a   : > { %v6045_v43 = vpop.f32.mrb[75].mxu1  ;;  %10987 = vmatprep.mubr.msk.f32.mxu0 %vm6872_vm6, %v12576_v29 }
 0x30b   : > { %10907 = vmatprep.mubr.msk.f32.mxu1 %vm6872_vm6, %v6045_v43 }
 0x30c   : > { %10908 = vmatmul.mubr.msk.f32.gmra.mrb[120].mxu1 %vm6872_vm6, %v10765_v46 }
 0x30d   : > { %10988 = vmatmul.mubr.msk.f32.gmra.mrb[122].mxu0 %vm6872_vm6, %v12561_v17  ;;  %v14177_v17 = vld [vmem:[#allocation4_spill] sm:$0xff] }
 0x30e   : > { %v10772_v33 = vpop.f32.mrb[76].mxu1  ;;  %10990 = vmatprep.mubr.msk.f32.mxu0 %vm6872_vm6, %v14175_v41 }
 0x30f   : > { %v6126_v36 = vpop.f32.mrb[77].mxu1 }
 0x310   : > { %10910 = vmatprep.mubr.msk.f32.mxu1 %vm6872_vm6, %v6126_v36 }
 0x311   : > { %10911 = vmatmul.mubr.msk.f32.gmra.mrb[122].mxu1 %vm6872_vm6, %v10772_v33  ;;  %10991 = vmatmul.mubr.msk.f32.gmra.mrb[124].mxu0 %vm6872_vm6, %v14176_v51 }
 0x312   : > { %10993 = vmatprep.mubr.msk.f32.mxu0 %vm6872_vm6, %v12637_v56 }
 0x313   : > { %v10779_v52 = vpop.f32.mrb[78].mxu1 }
 0x314   : > { %v6207_v6 = vpop.f32.mrb[79].mxu1 }
 0x315   : > { %10913 = vmatprep.mubr.msk.f32.mxu1 %vm6872_vm6, %v6207_v6  ;;  %10994 = vmatmul.mubr.msk.f32.gmra.mrb[126].mxu0 %vm6872_vm6, %v14177_v17 }
 0x316   : > { %10914 = vmatmul.mubr.msk.f32.gmra.mrb[124].mxu1 %vm6872_vm6, %v10779_v52  ;;  %10996 = vmatprep.mubr.msk.f32.mxu0 %vm6872_vm6, %v14178_v38 }
 0x317   : > { %v10786_v29 = vpop.f32.mrb[80].mxu1 }
 0x318   : > { %v6288_v47 = vpop.f32.mrb[81].mxu1 }
 0x319   : > { %10916 = vmatprep.mubr.msk.f32.mxu1 %vm6872_vm6, %v6288_v47  ;;  %10997 = vmatmul.mubr.msk.f32.gmra.mrb[128].mxu0 %vm6872_vm6, %v14179_v13 }
 0x31a   : > { %10917 = vmatmul.mubr.msk.f32.gmra.mrb[126].mxu1 %vm6872_vm6, %v10786_v29  ;;  %10999 = vmatprep.mubr.msk.f32.mxu0 %vm6872_vm6, %v12703_v9 }
 0x31b   : > { %v10793_v7 = vpop.f32.mrb[82].mxu1 }
 0x31c   : > { %v6369_v63 = vpop.f32.mrb[83].mxu1 }
 0x31d   : > { %10919 = vmatprep.mubr.msk.f32.mxu1 %vm6872_vm6, %v6369_v63  ;;  %11000 = vmatmul.mubr.msk.f32.gmra.mrb[130].mxu0 %vm6872_vm6, %v14180_v12 }
 0x31e   : > { %10920 = vmatmul.mubr.msk.f32.gmra.mrb[128].mxu1 %vm6872_vm6, %v10793_v7  ;;  %11002 = vmatprep.mubr.msk.f32.mxu0 %vm6872_vm6, %v14181_v57 }
 0x31f   : > { %v10800_v56 = vpop.f32.mrb[84].mxu1 }
 0x320   : > { %v6450_v15 = vpop.f32.mrb[85].mxu1 }
 0x321   : > { %10922 = vmatprep.mubr.msk.f32.mxu1 %vm6872_vm6, %v6450_v15  ;;  %11003 = vmatmul.mubr.msk.f32.gmra.mrb[132].mxu0 %vm6872_vm6, %v14182_v53 }
 0x322   : > { %10923 = vmatmul.mubr.msk.f32.gmra.mrb[130].mxu1 %vm6872_vm6, %v10800_v56  ;;  %11005 = vmatprep.mubr.msk.f32.mxu0 %vm6872_vm6, %v12764_v23 }
 0x323   : > { %v10807_v48 = vpop.f32.mrb[86].mxu1 }
 0x324   : > { %v6531_v54 = vpop.f32.mrb[87].mxu1 }
 0x325   : > { %10925 = vmatprep.mubr.msk.f32.mxu1 %vm6872_vm6, %v6531_v54  ;;  %11006 = vmatmul.mubr.msk.f32.gmra.mrb[134].mxu0 %vm6872_vm6, %v14183_v22 }
 0x326   : > { %10926 = vmatmul.mubr.msk.f32.gmra.mrb[132].mxu1 %vm6872_vm6, %v10807_v48  ;;  %11008 = vmatprep.mubr.msk.f32.mxu0 %vm6872_vm6, %v14184_v31 }
 0x327   : > { %v10814_v9 = vpop.f32.mrb[88].mxu1 }
 0x328   : > { %v6612_v3 = vpop.f32.mrb[89].mxu1 }
 0x329   : > { %10928 = vmatprep.mubr.msk.f32.mxu1 %vm6872_vm6, %v6612_v3  ;;  %11009 = vmatmul.mubr.msk.f32.gmra.mrb[136].mxu0 %vm6872_vm6, %v14185_v16 }
 0x32a   : > { %10929 = vmatmul.mubr.msk.f32.gmra.mrb[134].mxu1 %vm6872_vm6, %v10814_v9  ;;  %11011 = vmatprep.mubr.msk.f32.mxu0 %vm6872_vm6, %v12825_v59  ;;  %v14189_v59 = vld [vmem:[#allocation17_spill] sm:$0xff] }
 0x32b   : > { %v10821_v11 = vpop.f32.mrb[90].mxu1 }
 0x32c   : > { %v6693_v42 = vpop.f32.mrb[91].mxu1 }
 0x32d   : > { %10931 = vmatprep.mubr.msk.f32.mxu1 %vm6872_vm6, %v6693_v42  ;;  %11012 = vmatmul.mubr.msk.f32.gmra.mrb[138].mxu0 %vm6872_vm6, %v14186_v34 }
 0x32e   : > { %10932 = vmatmul.mubr.msk.f32.gmra.mrb[136].mxu1 %vm6872_vm6, %v10821_v11  ;;  %11014 = vmatprep.mubr.msk.f32.mxu0 %vm6872_vm6, %v14187_v5 }
 0x32f   : > { %v10828_v23 = vpop.f32.mrb[92].mxu1 }
 0x330   : > { %v6774_v55 = vpop.f32.mrb[93].mxu1 }
 0x331   : > { %10934 = vmatprep.mubr.msk.f32.mxu1 %vm6872_vm6, %v6774_v55  ;;  %11015 = vmatmul.mubr.msk.f32.gmra.mrb[140].mxu0 %vm6872_vm6, %v14188_v44 }
 0x332   : > { %10935 = vmatmul.mubr.msk.f32.gmra.mrb[138].mxu1 %vm6872_vm6, %v10828_v23  ;;  %11017 = vmatprep.mubr.msk.f32.mxu0 %vm6872_vm6, %v14189_v59 }
 0x333   : > { %v10835_v18 = vpop.f32.mrb[94].mxu1 }
 0x334   : > { %v6855_v24 = vpop.f32.mrb[95].mxu1 }
 0x335   : > { %10937 = vmatprep.mubr.msk.f32.mxu1 %vm6872_vm6, %v6855_v24  ;;  %11018 = vmatmul.mubr.msk.f32.gmra.mrb[142].mxu0 %vm6872_vm6, %v14190_v1  ;;  %v8482_v24 = vld [vmem:[%s14096_s7] sm:$0xff] }
 0x336   : > { %10938 = vmatmul.mubr.msk.f32.gmra.mrb[140].mxu1 %vm6872_vm6, %v10835_v18  ;;  %11020 = vmatprep.mubr.msk.f32.mxu0 %vm6872_vm6, %v14191_v4 }
 0x337   : > { %10254 = vmatprep.mubr.msk.f32.mxu1 %vm6872_vm6, %v8482_v24 }
 0x339   : > { %11021 = vmatmul.mubr.msk.f32.gmra.mrb[144].mxu0 %vm6872_vm6, %v14192_v62 }
 0x33a   : > { %11023 = vmatprep.mubr.msk.f32.mxu0 %vm6872_vm6, %v14193_v25 }
 0x33d   : > { %11024 = vmatmul.mubr.msk.f32.gmra.mrb[146].mxu0 %vm6872_vm6, %v14194_v10 }
 0x33e   : > { %11026 = vmatprep.mubr.msk.f32.mxu0 %vm6872_vm6, %v12976_v8 }
 0x341   : > { %11027 = vmatmul.mubr.msk.f32.gmra.mrb[148].mxu0 %vm6872_vm6, %v12964_v61  ;;  %v13271_v61 = vld [vmem:[%s14095_s6] ss:$0 sm:$0xff] }
 0x342   : > { %11029 = vmatprep.mubr.msk.f32.mxu0 %vm6872_vm6, %v12998_v45 }
 0x345   : > { %11030 = vmatmul.mubr.msk.f32.gmra.mrb[150].mxu0 %vm6872_vm6, %v12991_v2 }
 0x346   : > { %11032 = vmatprep.mubr.msk.f32.mxu0 %vm6872_vm6, %v13013_v50 }
 0x349   : > { %11033 = vmatmul.mubr.msk.f32.gmra.mrb[152].mxu0 %vm6872_vm6, %v13008_v20 }
 0x34a   : > { %11035 = vmatprep.mubr.msk.f32.mxu0 %vm6872_vm6, %v13026_v60 }
 0x34d   : > { %11036 = vmatmul.mubr.msk.f32.gmra.mrb[154].mxu0 %vm6872_vm6, %v13021_v40 }
 0x34e   : > { %11038 = vmatprep.mubr.msk.f32.mxu0 %vm6872_vm6, %v13047_v21 }
 0x351   : > { %11039 = vmatmul.mubr.msk.f32.gmra.mrb[156].mxu0 %vm6872_vm6, %v13042_v0 }
 0x352   : > { %11041 = vmatprep.mubr.msk.f32.mxu0 %vm6872_vm6, %v13059_v27 }
 0x355   : > { %11042 = vmatmul.mubr.msk.f32.gmra.mrb[158].mxu0 %vm6872_vm6, %v13055_v26 }
 0x3ac   : > { %v10950_v8 = vpop.f32.mrb[96].mxu0  ;;  %v13273_v2 = vpop.f32.mrb[96].mxu1 }
 0x3ad   : > { %v8035_v45 = vadd.f32 %v10950_v8, %v13271_v61  ;;  %v7708_v20 = vpop.f32.mrb[97].mxu0  ;;  %v13276_v50 = vpop.f32.mrb[97].mxu1 }
 0x3ae   : > { %v13279_v40 = vadd.f32 %v13271_v61, %v7708_v20 }
 0x3af   : > { %v8163_v60 = vmin.f32 %v8035_v45, 0.0  ;;  %vm8099_vm0 = vcmp.gt.f32.partialorder %v8035_v45, 0.0 }
 0x3b0   : > { %v8162_v0 = vmin.f32 %v13279_v40, 0.0  ;;  %v10953_v21 = vpop.f32.mrb[98].mxu0  ;;  %vm8098_vm7 = vcmp.gt.f32.partialorder %v13279_v40, 0.0 }
 0x3b1   : > { %v13282_v26 = vpop.f32.mrb[98].mxu1  ;;  %v8228_v27 = vmul.f32 1.442695, %v8163_v60  ;;  %v13285_v19 = vadd.f32 %v10953_v21, %v13271_v61  ;;  %v7718_v49 = vpop.f32.mrb[99].mxu0 }
 0x3b2   : > { %v13287_v58 = vpop.f32.mrb[99].mxu1  ;;  %v8226_v14 = vmul.f32 1.442695, %v8162_v0  ;;  %v13290_v30 = vadd.f32 %v13271_v61, %v7718_v49 }
 0x3b3   : > { %11618 = vpow2.f32 %v8228_v27  ;;  %v8165_v28 = vmin.f32 %v13285_v19, 0.0  ;;  %vm8101_vm8 = vcmp.gt.f32.partialorder %v13285_v19, 0.0 }
 0x3b4   : > { %11620 = vpow2.f32 %v8226_v14  ;;  %v8164_v35 = vmin.f32 %v13290_v30, 0.0  ;;  %v10956_v32 = vpop.f32.mrb[100].mxu0  ;;  %vm8100_vm9 = vcmp.gt.f32.partialorder %v13290_v30, 0.0 }
 0x3b5   : > { %v13294_v39 = vpop.f32.mrb[100].mxu1  ;;  %v8232_v37 = vmul.f32 1.442695, %v8165_v28  ;;  %v13297_v46 = vadd.f32 %v10956_v32, %v13271_v61  ;;  %v7728_v43 = vpop.f32.mrb[101].mxu0 }
 0x3b6   : > { %v13299_v33 = vpop.f32.mrb[101].mxu1  ;;  %v8230_v36 = vmul.f32 1.442695, %v8164_v35  ;;  %v13302_v41 = vadd.f32 %v13271_v61, %v7728_v43 }
 0x3b7   : > { %11622 = vpow2.f32 %v8232_v37  ;;  %v8167_v52 = vmin.f32 %v13297_v46, 0.0  ;;  %vm8103_vm10 = vcmp.gt.f32.partialorder %v13297_v46, 0.0 }
 0x3b8   : > { %11624 = vpow2.f32 %v8230_v36  ;;  %v8166_v6 = vmin.f32 %v13302_v41, 0.0  ;;  %v10959_v51 = vpop.f32.mrb[102].mxu0  ;;  %vm8102_vm11 = vcmp.gt.f32.partialorder %v13302_v41, 0.0 }
 0x3b9   : > { %v13306_v29 = vpop.f32.mrb[102].mxu1  ;;  %v8236_v47 = vmul.f32 1.442695, %v8167_v52  ;;  %v13309_v17 = vadd.f32 %v10959_v51, %v13271_v61  ;;  %v7738_v38 = vpop.f32.mrb[103].mxu0 }
 0x3ba   : > { %v13311_v7 = vpop.f32.mrb[103].mxu1  ;;  %v8234_v63 = vmul.f32 1.442695, %v8166_v6  ;;  %v13314_v13 = vadd.f32 %v13271_v61, %v7738_v38 }
 0x3bb   : > { %11626 = vpow2.f32 %v8236_v47  ;;  %v8169_v56 = vmin.f32 %v13309_v17, 0.0  ;;  %vm8105_vm12 = vcmp.gt.f32.partialorder %v13309_v17, 0.0 }
 0x3bc   : > { %11628 = vpow2.f32 %v8234_v63  ;;  %v8168_v15 = vmin.f32 %v13314_v13, 0.0  ;;  %v10962_v12 = vpop.f32.mrb[104].mxu0  ;;  %vm8104_vm13 = vcmp.gt.f32.partialorder %v13314_v13, 0.0 }
 0x3bd   : > { %v13318_v57 = vpop.f32.mrb[104].mxu1  ;;  %v11619_v48 = vpop.eup %11618  ;;  %v8240_v54 = vmul.f32 1.442695, %v8169_v56  ;;  %v13321_v53 = vadd.f32 %v10962_v12, %v13271_v61 }
 0x3be   : > { %v7748_v9 = vpop.f32.mrb[105].mxu0  ;;  %v13323_v3 = vpop.f32.mrb[105].mxu1  ;;  %v9313_v31 = vadd.f32 -1.0, %v11619_v48  ;;  %v8238_v11 = vmul.f32 1.442695, %v8168_v15 }
 0x3bf   : > { %v11621_v22 = vpop.eup %11620  ;;  %v13326_v42 = vadd.f32 %v13271_v61, %v7748_v9  ;;  %11630 = vpow2.f32 %v8240_v54  ;;  %v8171_v23 = vmin.f32 %v13321_v53, 0.0  ;;  %vm8107_vm14 = vcmp.gt.f32.partialorder %v13321_v53, 0.0 }
 0x3c0   : > { %v9312_v16 = vadd.f32 -1.0, %v11621_v22  ;;  %v13329_v55 = vsel %vm8099_vm0, %v8035_v45, %v9313_v31  ;;  %11632 = vpow2.f32 %v8238_v11  ;;  %v10965_v5 = vpop.f32.mrb[106].mxu0 }
 0x3c1   : > { %v8170_v34 = vmin.f32 %v13326_v42, 0.0  ;;  %v11623_v44 = vpop.eup %11622  ;;  %v8244_v1 = vmul.f32 1.442695, %v8171_v23  ;;  %v13342_v4 = vadd.f32 %v10965_v5, %v13271_v61  ;;  %v7758_v62 = vpop.f32.mrb[107].mxu0  ;;  %vm8106_vm15 = vcmp.gt.f32.partialorder %v13326_v42, 0.0 }
 0x3c2   : > { %v13333_v18 = vpop.f32.mrb[106].mxu1  ;;  %v13339_v59 = vsel %vm8098_vm7, %v13279_v40, %v9312_v16  ;;  %v11625_v10 = vpop.eup %11624  ;;  %v9315_v45 = vadd.f32 -1.0, %v11623_v44  ;;  %v13350_v60 = vadd.f32 %v13271_v61, %v7758_v62 }
 0x3c3   : > { %v13344_v25 = vpop.f32.mrb[107].mxu1  ;;  %v11319_v8 = vpack.c.bf16 %v13329_v55, %v13339_v59  ;;  %v8242_v20 = vmul.f32 1.442695, %v8170_v34  ;;  %v9314_v40 = vadd.f32 -1.0, %v11625_v10  ;;  %11634 = vpow2.f32 %v8244_v1 }
 0x3c4   : > { %v8173_v0 = vmin.f32 %v13342_v4, 0.0  ;;  %v13355_v21 = vsel %vm8101_vm8, %v13285_v19, %v9315_v45  ;;  %v8172_v27 = vmin.f32 %v13350_v60, 0.0  ;;  %v10968_v49 = vpop.f32.mrb[108].mxu0  ;;  %vm8109_vm1 = vcmp.gt.f32.partialorder %v13342_v4, 0.0 }
 0x3c5   : > { %11636 = vpow2.f32 %v8242_v20  ;;  %v11627_v28 = vpop.eup %11626  ;;  %v13362_v35 = vsel %vm8100_vm9, %v13290_v30, %v9314_v40  ;;  %v13365_v37 = vadd.f32 %v10968_v49, %v13271_v61  ;;  %v7768_v43 = vpop.f32.mrb[109].mxu0  ;;  %vm8108_vm2 = vcmp.gt.f32.partialorder %v13350_v60, 0.0  ;;  %vm13520_vm9 = vmpackc.low %vm6872_vm6, %vm6872_vm6 }
 0x3c6   : > { %v13359_v14 = vpop.f32.mrb[108].mxu1  ;;  %v8248_v32 = vmul.f32 1.442695, %v8173_v0  ;;  %v11629_v19 = vpop.eup %11628  ;;  %v9317_v6 = vadd.f32 -1.0, %v11627_v28  ;;  %v8246_v51 = vmul.f32 1.442695, %v8172_v27  ;;  %v13372_v47 = vadd.f32 %v13271_v61, %v7768_v43 }
 0x3c7   : > { %v13367_v36 = vpop.f32.mrb[109].mxu1  ;;  %v9316_v30 = vadd.f32 -1.0, %v11629_v19  ;;  %v8175_v38 = vmin.f32 %v13365_v37, 0.0  ;;  %vm8111_vm3 = vcmp.gt.f32.partialorder %v13365_v37, 0.0 }
 0x3c8   : > { %11638 = vpow2.f32 %v8248_v32  ;;  %v13377_v63 = vsel %vm8103_vm10, %v13297_v46, %v9317_v6  ;;  %v8174_v56 = vmin.f32 %v13372_v47, 0.0  ;;  %v10971_v15 = vpop.f32.mrb[110].mxu0  ;;  %vm8110_vm4 = vcmp.gt.f32.partialorder %v13372_v47, 0.0 }
 0x3c9   : > { %11640 = vpow2.f32 %v8246_v51  ;;  %v11631_v48 = vpop.eup %11630  ;;  %v13384_v54 = vsel %vm8102_vm11, %v13302_v41, %v9316_v30  ;;  %v8252_v9 = vmul.f32 1.442695, %v8175_v38  ;;  %v13387_v22 = vadd.f32 %v10971_v15, %v13271_v61  ;;  %v7778_v31 = vpop.f32.mrb[111].mxu0 }
 0x3ca   : > { %v13381_v12 = vpop.f32.mrb[110].mxu1  ;;  %v11633_v46 = vpop.eup %11632  ;;  %v9319_v23 = vadd.f32 -1.0, %v11631_v48  ;;  %v8250_v34 = vmul.f32 1.442695, %v8174_v56  ;;  %v13394_v5 = vadd.f32 %v13271_v61, %v7778_v31 }
 0x3cb   : > { %v13389_v11 = vpop.f32.mrb[111].mxu1  ;;  %v9318_v41 = vadd.f32 -1.0, %v11633_v46  ;;  %11642 = vpow2.f32 %v8252_v9  ;;  %v8177_v24 = vmin.f32 %v13387_v22, 0.0  ;;  %vm8113_vm5 = vcmp.gt.f32.partialorder %v13387_v22, 0.0 }
 0x3cc   : > { %v13399_v44 = vsel %vm8105_vm12, %v13309_v17, %v9319_v23  ;;  %11644 = vpow2.f32 %v8250_v34  ;;  %v8176_v1 = vmin.f32 %v13394_v5, 0.0  ;;  %v10974_v62 = vpop.f32.mrb[112].mxu0  ;;  %vm8112_vm0 = vcmp.gt.f32.partialorder %v13394_v5, 0.0 }
 0x3cd   : > { %v11635_v45 = vpop.eup %11634  ;;  %v13406_v20 = vsel %vm8104_vm13, %v13314_v13, %v9318_v41  ;;  %v8256_v40 = vmul.f32 1.442695, %v8177_v24  ;;  %v13409_v0 = vadd.f32 %v10974_v62, %v13271_v61  ;;  %v7788_v27 = vpop.f32.mrb[113].mxu0 }
 0x3ce   : > { %v13403_v10 = vpop.f32.mrb[112].mxu1  ;;  %v9321_v32 = vadd.f32 -1.0, %v11635_v45  ;;  %v8254_v43 = vmul.f32 1.442695, %v8176_v1  ;;  %v13416_v19 = vadd.f32 %v13271_v61, %v7788_v27 }
 0x3cf   : > { %v13411_v49 = vpop.f32.mrb[113].mxu1  ;;  %v11637_v17 = vpop.eup %11636  ;;  %11646 = vpow2.f32 %v8256_v40  ;;  %v8179_v6 = vmin.f32 %v13409_v0, 0.0  ;;  %vm8115_vm7 = vcmp.gt.f32.partialorder %v13409_v0, 0.0 }
 0x3d0   : > { %v9320_v13 = vadd.f32 -1.0, %v11637_v17  ;;  %v13421_v51 = vsel %vm8107_vm14, %v13321_v53, %v9321_v32  ;;  %11648 = vpow2.f32 %v8254_v43  ;;  %v8178_v30 = vmin.f32 %v13416_v19, 0.0  ;;  %v10977_v38 = vpop.f32.mrb[114].mxu0 }
 0x3d1   : > { %v8260_v9 = vmul.f32 1.442695, %v8179_v6  ;;  %v7804_v31 = vadd.f32 %v10977_v38, %v13273_v2  ;;  %v7798_v46 = vpop.f32.mrb[115].mxu0  ;;  %vm8114_vm8 = vcmp.gt.f32.partialorder %v13416_v19, 0.0 }
 0x3d2   : > { %v11639_v15 = vpop.eup %11638  ;;  %v13428_v48 = vsel %vm8106_vm15, %v13326_v42, %v9320_v13  ;;  %v8258_v24 = vmul.f32 1.442695, %v8178_v30  ;;  %v7799_v1 = vadd.f32 %v7798_v46, %v13276_v50 }
 0x3d3   : > { %v13425_v56 = vpop.f32.mrb[114].mxu1  ;;  %v11641_v53 = vpop.eup %11640  ;;  %v9323_v41 = vadd.f32 -1.0, %v11639_v15  ;;  %11650 = vpow2.f32 %v8260_v9  ;;  %v13438_v42 = vadd.f32 %v13271_v61, %v7804_v31 }
 0x3d4   : > { %v13431_v23 = vpop.f32.mrb[115].mxu1  ;;  %v9322_v62 = vadd.f32 -1.0, %v11641_v53  ;;  %11652 = vpow2.f32 %v8258_v24  ;;  %v13445_v45 = vadd.f32 %v13271_v61, %v7799_v1  ;;  %v10980_v40 = vpop.f32.mrb[116].mxu0 }
 0x3d5   : > { %v13441_v2 = vsel %vm8109_vm1, %v13342_v4, %v9323_v41  ;;  %v11643_v50 = vpop.eup %11642  ;;  %v8181_v32 = vmin.f32 %v13438_v42, 0.0  ;;  %v7814_v43 = vadd.f32 %v10980_v40, %v13282_v26  ;;  %v7808_v13 = vpop.f32.mrb[117].mxu0  ;;  %vm8117_vm10 = vcmp.gt.f32.partialorder %v13438_v42, 0.0 }
 0x3d6   : > { %v13450_v17 = vsel %vm8108_vm2, %v13350_v60, %v9322_v62  ;;  %v11645_v6 = vpop.eup %11644  ;;  %v9325_v38 = vadd.f32 -1.0, %v11643_v50  ;;  %v8180_v15 = vmin.f32 %v13445_v45, 0.0  ;;  %v7809_v46 = vadd.f32 %v7808_v13, %v13287_v58 }
 0x3d7   : > { %v13447_v27 = vpop.f32.mrb[116].mxu1  ;;  %v9324_v9 = vadd.f32 -1.0, %v11645_v6  ;;  %v8264_v31 = vmul.f32 1.442695, %v8181_v32  ;;  %v13461_v60 = vadd.f32 %v13271_v61, %v7814_v43  ;;  %vm8116_vm11 = vcmp.gt.f32.partialorder %v13445_v45, 0.0 }
 0x3d8   : > { %v13454_v4 = vpop.f32.mrb[117].mxu1  ;;  %v13465_v26 = vsel %vm8111_vm3, %v13365_v37, %v9325_v38  ;;  %v8262_v53 = vmul.f32 1.442695, %v8180_v15  ;;  %v10983_v41 = vpop.f32.mrb[118].mxu0  ;;  %v13480_v13 = vadd.f32 %v13271_v61, %v7809_v46 }
 0x3d9   : > { %v11647_v1 = vpop.eup %11646  ;;  %v13471_v62 = vsel %vm8110_vm4, %v13372_v47, %v9324_v9  ;;  %11654 = vpow2.f32 %v8264_v31  ;;  %v8183_v40 = vmin.f32 %v13461_v60, 0.0  ;;  %v7818_v50 = vpop.f32.mrb[119].mxu0  ;;  %v7824_v38 = vadd.f32 %v10983_v41, %v13294_v39 }
 0x3da   : > { %14195 = vst [vmem:[#allocation3_spill] sm:$0xff] %v13471_v62  ;;  %v11649_v37 = vpop.eup %11648  ;;  %v9327_v43 = vadd.f32 -1.0, %v11647_v1  ;;  %11656 = vpow2.f32 %v8262_v53  ;;  %v7819_v15 = vadd.f32 %v7818_v50, %v13299_v33  ;;  %v8182_v31 = vmin.f32 %v13480_v13, 0.0 }
 0x3db   : > { %v13468_v24 = vpop.f32.mrb[118].mxu1  ;;  %v9326_v6 = vadd.f32 -1.0, %v11649_v37  ;;  %v8268_v47 = vmul.f32 1.442695, %v8183_v40  ;;  %v13495_v1 = vadd.f32 %v13271_v61, %v7824_v38  ;;  %vm8119_vm12 = vcmp.gt.f32.partialorder %v13461_v60, 0.0 }
 0x3dc   : > { %v13475_v58 = vpop.f32.mrb[119].mxu1  ;;  %v13485_v9 = vsel %vm8113_vm5, %v13387_v22, %v9327_v43  ;;  %v10986_v30 = vpop.f32.mrb[120].mxu0  ;;  %v13498_v39 = vadd.f32 %v13271_v61, %v7819_v15  ;;  %v8266_v37 = vmul.f32 1.442695, %v8182_v31  ;;  %vm8118_vm13 = vcmp.gt.f32.partialorder %v13480_v13, 0.0 }
 0x3dd   : > { %14196 = vst [vmem:[#allocation2_spill] sm:$0xff] %v13485_v9  ;;  %v11651_v53 = vpop.eup %11650  ;;  %v13492_v46 = vsel %vm8112_vm0, %v13394_v5, %v9326_v6  ;;  %11658 = vpow2.f32 %v8268_v47  ;;  %v7828_v33 = vpop.f32.mrb[121].mxu0  ;;  %v7834_v43 = vadd.f32 %v10986_v30, %v13306_v29  ;;  %v8185_v6 = vmin.f32 %v13495_v1, 0.0 }
 0x3de   : > { %14197 = vst [vmem:[#allocation4_spill] sm:$0xff] %v13492_v46  ;;  %v11653_v41 = vpop.eup %11652  ;;  %v9329_v50 = vadd.f32 -1.0, %v11651_v53  ;;  %11660 = vpow2.f32 %v8266_v37  ;;  %v8184_v38 = vmin.f32 %v13498_v39, 0.0  ;;  %v7829_v31 = vadd.f32 %v7828_v33, %v13311_v7 }
 0x3df   : > { %v13489_v32 = vpop.f32.mrb[120].mxu1  ;;  %v9328_v5 = vadd.f32 -1.0, %v11653_v41  ;;  %v13511_v15 = vadd.f32 %v13271_v61, %v7834_v43  ;;  %v8272_v30 = vmul.f32 1.442695, %v8185_v6  ;;  %vm8121_vm14 = vcmp.gt.f32.partialorder %v13495_v1, 0.0 }
 0x3e0   : > { %v13500_v22 = vpop.f32.mrb[121].mxu1  ;;  %v8435_v47 = vsel %vm8115_vm7, %v13409_v0, %v9329_v50  ;;  %v10989_v40 = vpop.f32.mrb[122].mxu0  ;;  %v8270_v43 = vmul.f32 1.442695, %v8184_v38  ;;  %vm8120_vm15 = vcmp.gt.f32.partialorder %v13498_v39, 0.0 }
 0x3e1   : > { %v8434_v29 = vsel %vm8114_vm8, %v13416_v19, %v9328_v5  ;;  %v7844_v41 = vadd.f32 %v10989_v40, %v13318_v57  ;;  %v7838_v34 = vpop.f32.mrb[123].mxu0  ;;  %v8187_v28 = vmin.f32 %v13511_v15, 0.0  ;;  %11662 = vpow2.f32 %v8272_v30 }
 0x3e2   : > { %v11316_v37 = vpack.c.bf16 %v8435_v47, %v8434_v29  ;;  %v13528_v19 = vadd.f32 %v13271_v61, %v7829_v31  ;;  %v7839_v57 = vadd.f32 %v7838_v34, %v13323_v3  ;;  %11664 = vpow2.f32 %v8270_v43 }
 0x3e3   : > { %v11655_v16 = vpop.eup %11654  ;;  %v13531_v7 = vadd.f32 %v13271_v61, %v7844_v41  ;;  %v8276_v40 = vmul.f32 1.442695, %v8187_v28  ;;  %vm8123_vm1 = vcmp.gt.f32.partialorder %v13511_v15, 0.0 }
 0x3e4   : > { %v13513_v53 = vpop.f32.mrb[122].mxu1  ;;  %v11657_v33 = vpop.eup %11656  ;;  %11318 = vmatprep.subr.msk.bf16.mxu1 %vm13520_vm9, %v11316_v37  ;;  %v8186_v47 = vmin.f32 %v13528_v19, 0.0  ;;  %v9331_v28 = vadd.f32 -1.0, %v11655_v16  ;;  %v13549_v30 = vadd.f32 %v13271_v61, %v7839_v57  ;;  %vm8122_vm2 = vcmp.gt.f32.partialorder %v13528_v19, 0.0 }
 0x3e5   : > { %v13524_v50 = vpop.f32.mrb[123].mxu1  ;;  %v10992_v5 = vpop.f32.mrb[124].mxu0  ;;  %11321 = vmatpush3.bf16.xpose.msk.msra.mxu1 %vm13520_vm9, %v11319_v8  ;;  %v9330_v34 = vadd.f32 -1.0, %v11657_v33  ;;  %v8189_v29 = vmin.f32 %v13531_v7, 0.0  ;;  %11666 = vpow2.f32 %v8276_v40  ;;  %vm8125_vm3 = vcmp.gt.f32.partialorder %v13531_v7, 0.0 }
 0x3e6   : > { %v7848_v38 = vpop.f32.mrb[125].mxu0  ;;  %v8274_v41 = vmul.f32 1.442695, %v8186_v47  ;;  %v7854_v37 = vadd.f32 %v10992_v5, %v13333_v18  ;;  %v8188_v8 = vmin.f32 %v13549_v30, 0.0  ;;  %v8437_v5 = vsel %vm8117_vm10, %v13438_v42, %v9331_v28 }
 0x3e7   : > { %v11659_v31 = vpop.eup %11658  ;;  %v7849_v43 = vadd.f32 %v7848_v38, %v13344_v25  ;;  %v8280_v59 = vmul.f32 1.442695, %v8189_v29  ;;  %v8436_v38 = vsel %vm8116_vm11, %v13445_v45, %v9330_v34  ;;  %vm8124_vm4 = vcmp.gt.f32.partialorder %v13549_v30, 0.0 }
 0x3e8   : > { %v9333_v55 = vadd.f32 -1.0, %v11659_v31  ;;  %v10995_v16 = vpop.f32.mrb[126].mxu0  ;;  %11668 = vpow2.f32 %v8274_v41  ;;  %v13556_v33 = vadd.f32 %v13271_v61, %v7854_v37  ;;  %v11661_v25 = vpop.eup %11660  ;;  %v8278_v29 = vmul.f32 1.442695, %v8188_v8 }
 0x3e9   : > { %v13536_v6 = vpop.f32.mrb[124].mxu1  ;;  %v13559_v57 = vadd.f32 %v13271_v61, %v7849_v43  ;;  %v7864_v40 = vadd.f32 %v10995_v16, %v13359_v14  ;;  %v7858_v47 = vpop.f32.mrb[127].mxu0  ;;  %v9332_v14 = vadd.f32 -1.0, %v11661_v25  ;;  %11670 = vpow2.f32 %v8280_v59 }
 0x3ea   : > { %v13545_v3 = vpop.f32.mrb[125].mxu1  ;;  %v7859_v31 = vadd.f32 %v7858_v47, %v13367_v36  ;;  %v8191_v37 = vmin.f32 %v13556_v33, 0.0  ;;  %v8439_v43 = vsel %vm8119_vm12, %v13461_v60, %v9333_v55  ;;  %v11322_v47 = vpack.c.bf16 %v8437_v5, %v8436_v38 }
 0x3eb   : > { %v8190_v16 = vmin.f32 %v13559_v57, 0.0  ;;  %v13577_v42 = vadd.f32 %v13271_v61, %v7864_v40  ;;  %v11663_v34 = vpop.eup %11662  ;;  %11672 = vpow2.f32 %v8278_v29  ;;  %v14200_v5 = vpack.c.bf16 %v13355_v21, %v13362_v35 }
 0x3ec   : > { %v13580_v45 = vadd.f32 %v13271_v61, %v7859_v31  ;;  %v10998_v36 = vpop.f32.mrb[128].mxu0  ;;  %v8284_v8 = vmul.f32 1.442695, %v8191_v37  ;;  %v11665_v60 = vpop.eup %11664  ;;  %v9335_v55 = vadd.f32 -1.0, %v11663_v34  ;;  %v8438_v31 = vsel %vm8118_vm13, %v13480_v13, %v9332_v14  ;;  %11324 = vmatprep.subr.msk.bf16.mxu1 %vm13520_vm9, %v11322_v47 }
 0x3ed   : > { %v13562_v18 = vpop.f32.mrb[126].mxu1  ;;  %v7874_v25 = vadd.f32 %v10998_v36, %v13381_v12  ;;  %v7868_v52 = vpop.f32.mrb[129].mxu0  ;;  %v8282_v40 = vmul.f32 1.442695, %v8190_v16  ;;  %v8193_v9 = vmin.f32 %v13577_v42, 0.0  ;;  %v9334_v62 = vadd.f32 -1.0, %v11665_v60  ;;  %11327 = vmatpush3.bf16.xpose.msk.msra.mxu1 %vm13520_vm9, %v14200_v5 }
 0x3ee   : > { %v13569_v41 = vpop.f32.mrb[127].mxu1  ;;  %11674 = vpow2.f32 %v8284_v8  ;;  %v8192_v59 = vmin.f32 %v13580_v45, 0.0  ;;  %v8441_v14 = vsel %vm8121_vm14, %v13495_v1, %v9335_v55  ;;  %v7869_v36 = vadd.f32 %v7868_v52, %v13389_v11 }
 0x3ef   : > { %11676 = vpow2.f32 %v8282_v40  ;;  %v13597_v12 = vadd.f32 %v13271_v61, %v7874_v25  ;;  %v11667_v29 = vpop.eup %11666  ;;  %v8440_v37 = vsel %vm8120_vm15, %v13498_v39, %v9334_v62  ;;  %v8288_v16 = vmul.f32 1.442695, %v8193_v9 }
 0x3f0   : > { %v11001_v13 = vpop.f32.mrb[130].mxu0  ;;  %v11328_v21 = vpack.c.bf16 %v8439_v43, %v8438_v31  ;;  %v8286_v25 = vmul.f32 1.442695, %v8192_v59  ;;  %v13614_v60 = vadd.f32 %v13271_v61, %v7869_v36  ;;  %v9337_v55 = vadd.f32 -1.0, %v11667_v29 }
 0x3f1   : > { %v13582_v28 = vpop.f32.mrb[128].mxu1  ;;  %v7878_v34 = vpop.f32.mrb[131].mxu0  ;;  %v8195_v47 = vmin.f32 %v13597_v12, 0.0  ;;  %v7884_v1 = vadd.f32 %v11001_v13, %v13403_v10  ;;  %v11334_v9 = vpack.c.bf16 %v8441_v14, %v8440_v37  ;;  %11678 = vpow2.f32 %v8288_v16 }
 0x3f2   : > { %v13585_v46 = vpop.f32.mrb[129].mxu1  ;;  %v11669_v35 = vpop.eup %11668  ;;  %11330 = vmatprep.subr.msk.bf16.mxu1 %vm13520_vm9, %v11328_v21  ;;  %v7879_v52 = vadd.f32 %v7878_v34, %v13411_v49  ;;  %v8194_v40 = vmin.f32 %v13614_v60, 0.0  ;;  %v8443_v37 = vsel %vm8123_vm1, %v13511_v15, %v9337_v55  ;;  %vm8127_vm5 = vcmp.gt.f32.partialorder %v13556_v33, 0.0 }
 0x3f3   : > { %v8292_v62 = vmul.f32 1.442695, %v8195_v47  ;;  %v9336_v43 = vadd.f32 -1.0, %v11669_v35  ;;  %v13624_v31 = vadd.f32 %v13271_v61, %v7884_v1  ;;  %v11671_v13 = vpop.eup %11670  ;;  %vm8126_vm0 = vcmp.gt.f32.partialorder %v13559_v57, 0.0 }
 0x3f4   : > { %v11004_v11 = vpop.f32.mrb[132].mxu0  ;;  %v13630_v5 = vadd.f32 %v13271_v61, %v7879_v52  ;;  %v8290_v29 = vmul.f32 1.442695, %v8194_v40  ;;  %vm8131_vm7 = vcmp.gt.f32.partialorder %v13597_v12, 0.0  ;;  %vm8130_vm8 = vcmp.gt.f32.partialorder %v13614_v60, 0.0 }
 0x3f5   : > { %v13604_v38 = vpop.f32.mrb[130].mxu1  ;;  %v7888_v59 = vpop.f32.mrb[133].mxu0  ;;  %11680 = vpow2.f32 %v8292_v62  ;;  %v7894_v49 = vadd.f32 %v11004_v11, %v13425_v56  ;;  %v8197_v16 = vmin.f32 %v13624_v31, 0.0  ;;  %v14201_v56 = vpack.c.bf16 %v13377_v63, %v13384_v54 }
 0x3f6   : > { %v13609_v8 = vpop.f32.mrb[131].mxu1  ;;  %11682 = vpow2.f32 %v8286_v25  ;;  %v11673_v14 = vpop.eup %11672  ;;  %v8196_v36 = vmin.f32 %v13630_v5, 0.0  ;;  %v8442_v15 = vsel %vm8122_vm2, %v13528_v19, %v9336_v43  ;;  %v7889_v25 = vadd.f32 %v7888_v59, %v13431_v23 }
 0x3f7   : > { %v13641_v34 = vadd.f32 %v13271_v61, %v7894_v49  ;;  %11333 = vmatpush3.bf16.xpose.msk.msra.mxu1 %vm13520_vm9, %v14201_v56  ;;  %11684 = vpow2.f32 %v8290_v29  ;;  %v9339_v62 = vadd.f32 -1.0, %v11671_v13  ;;  %v8296_v52 = vmul.f32 1.442695, %v8197_v16 }
 0x3f8   : > { %v11007_v47 = vpop.f32.mrb[134].mxu0  ;;  %v11675_v35 = vpop.eup %11674  ;;  %11336 = vmatprep.subr.msk.bf16.mxu1 %vm13520_vm9, %v11334_v9  ;;  %v8294_v11 = vmul.f32 1.442695, %v8196_v36  ;;  %v9338_v40 = vadd.f32 -1.0, %v11673_v14  ;;  %v13662_v43 = vadd.f32 %v13271_v61, %v7889_v25  ;;  %v11340_v49 = vpack.c.bf16 %v8443_v37, %v8442_v15 }
 0x3f9   : > { %v13620_v39 = vpop.f32.mrb[132].mxu1  ;;  %v7904_v1 = vadd.f32 %v11007_v47, %v13447_v27  ;;  %v7898_v63 = vpop.f32.mrb[135].mxu0  ;;  %v8199_v19 = vmin.f32 %v13641_v34, 0.0  ;;  %v9341_v9 = vadd.f32 -1.0, %v11675_v35  ;;  %11686 = vpow2.f32 %v8296_v52 }
 0x3fa   : > { %v13626_v10 = vpop.f32.mrb[133].mxu1  ;;  %v11677_v55 = vpop.eup %11676  ;;  %v7899_v27 = vadd.f32 %v7898_v63, %v13454_v4  ;;  %11688 = vpow2.f32 %v8294_v11  ;;  %v13676_v56 = vsel %vm8125_vm3, %v13531_v7, %v9339_v62  ;;  %v8198_v4 = vmin.f32 %v13662_v43, 0.0 }
 0x3fb   : > { %v13665_v23 = vadd.f32 %v13271_v61, %v7904_v1  ;;  %v9340_v29 = vadd.f32 -1.0, %v11677_v55  ;;  %v8300_v14 = vmul.f32 1.442695, %v8199_v19  ;;  %v11679_v37 = vpop.eup %11678  ;;  %v13684_v47 = vsel %vm8124_vm4, %v13549_v30, %v9338_v40 }
 0x3fc   : > { %v11010_v59 = vpop.f32.mrb[136].mxu0  ;;  %vm8129_vm10 = vcmp.gt.f32.partialorder %v13577_v42, 0.0  ;;  %v13689_v7 = vadd.f32 %v13271_v61, %v7899_v27  ;;  %v13694_v25 = vsel %vm8127_vm5, %v13556_v33, %v9341_v9  ;;  %vm8133_vm11 = vcmp.gt.f32.partialorder %v13624_v31, 0.0 }
 0x3fd   : > { %v13648_v21 = vpop.f32.mrb[134].mxu1  ;;  %v7908_v16 = vpop.f32.mrb[137].mxu0  ;;  %11690 = vpow2.f32 %v8300_v14  ;;  %v8201_v35 = vmin.f32 %v13665_v23, 0.0  ;;  %v8298_v1 = vmul.f32 1.442695, %v8198_v4  ;;  %v7914_v30 = vadd.f32 %v11010_v59, %v13468_v24 }
 0x3fe   : > { %v13657_v54 = vpop.f32.mrb[135].mxu1  ;;  %v7909_v63 = vadd.f32 %v7908_v16, %v13475_v58  ;;  %v14202_v55 = vpack.c.bf16 %v13399_v44, %v13406_v20  ;;  %v13709_v33 = vsel %vm8126_vm0, %v13559_v57, %v9340_v29  ;;  %vm8132_vm12 = vcmp.gt.f32.partialorder %v13630_v5, 0.0 }
 0x3ff   : > { %v11681_v15 = vpop.eup %11680  ;;  %v8304_v24 = vmul.f32 1.442695, %v8201_v35  ;;  %v8200_v58 = vmin.f32 %v13689_v7, 0.0  ;;  %vm8128_vm13 = vcmp.gt.f32.partialorder %v13580_v45, 0.0  ;;  %11692 = vpow2.f32 %v8298_v1 }
 0x400   : > { %11339 = vmatpush3.bf16.xpose.msk.msra.mxu1 %vm13520_vm9, %v14202_v55  ;;  %v11013_v62 = vpop.f32.mrb[138].mxu0  ;;  %v11683_v11 = vpop.eup %11682  ;;  %v9345_v40 = vadd.f32 -1.0, %v11681_v15  ;;  %v13717_v20 = vadd.f32 %v13271_v61, %v7914_v30  ;;  %v13720_v19 = vadd.f32 %v13271_v61, %v7909_v63  ;;  %v9343_v59 = vadd.f32 -1.0, %v11679_v37 }
 0x401   : > { %v13668_v13 = vpop.f32.mrb[136].mxu1  ;;  %11342 = vmatprep.subr.msk.bf16.mxu1 %vm13520_vm9, %v11340_v49  ;;  %v7918_v44 = vpop.f32.mrb[139].mxu0  ;;  %v7924_v57 = vadd.f32 %v11013_v62, %v13489_v32  ;;  %vm8135_vm14 = vcmp.gt.f32.partialorder %v13641_v34, 0.0  ;;  %11694 = vpow2.f32 %v8304_v24  ;;  %v8302_v49 = vmul.f32 1.442695, %v8200_v58 }
 0x402   : > { %v13671_v36 = vpop.f32.mrb[137].mxu1  ;;  %v11685_v27 = vpop.eup %11684  ;;  %v7919_v29 = vadd.f32 %v7918_v44, %v13500_v22  ;;  %v9342_v14 = vadd.f32 -1.0, %v11683_v11  ;;  %v13730_v16 = vsel %vm8131_vm7, %v13597_v12, %v9345_v40  ;;  %v8203_v35 = vmin.f32 %v13717_v20, 0.0 }
 0x403   : > { %v9344_v4 = vadd.f32 -1.0, %v11685_v27  ;;  %11696 = vpow2.f32 %v8302_v49  ;;  %v8202_v37 = vmin.f32 %v13720_v19, 0.0  ;;  %v13737_v1 = vadd.f32 %v13271_v61, %v7924_v57  ;;  %v11687_v12 = vpop.eup %11686 }
 0x404   : > { %v11016_v32 = vpop.f32.mrb[140].mxu0  ;;  %v13740_v22 = vadd.f32 %v13271_v61, %v7919_v29  ;;  %vm8134_vm15 = vcmp.gt.f32.partialorder %v13662_v43, 0.0  ;;  %v8308_v62 = vmul.f32 1.442695, %v8203_v35  ;;  %v11689_v24 = vpop.eup %11688  ;;  %v9347_v44 = vadd.f32 -1.0, %v11687_v12 }
 0x405   : > { %v13704_v52 = vpop.f32.mrb[138].mxu1  ;;  %v7928_v30 = vpop.f32.mrb[141].mxu0  ;;  %v13747_v55 = vsel %vm8130_vm8, %v13614_v60, %v9344_v4  ;;  %v7934_v11 = vadd.f32 %v11016_v32, %v13513_v53  ;;  %vm8137_vm1 = vcmp.gt.f32.partialorder %v13665_v23, 0.0  ;;  %v8306_v57 = vmul.f32 1.442695, %v8202_v37 }
 0x406   : > { %v13723_v9 = vpop.f32.mrb[139].mxu1  ;;  %v7929_v40 = vadd.f32 %v7928_v30, %v13524_v50  ;;  %v11367_v58 = vpack.c.bf16 %v13730_v16, %v13747_v55  ;;  %v13758_v60 = vsel %vm8129_vm10, %v13577_v42, %v9343_v59  ;;  %v9346_v27 = vadd.f32 -1.0, %v11689_v24 }
 0x407   : > { %11698 = vpow2.f32 %v8308_v62  ;;  %v8205_v49 = vmin.f32 %v13737_v1, 0.0  ;;  %v14203_v53 = vpack.c.bf16 %v13421_v51, %v13428_v48  ;;  %v11691_v29 = vpop.eup %11690  ;;  %v13769_v4 = vsel %vm8133_vm11, %v13624_v31, %v9347_v44 }
 0x408   : > { %v11019_v50 = vpop.f32.mrb[142].mxu0  ;;  %11700 = vpow2.f32 %v8306_v57  ;;  %v8204_v42 = vmin.f32 %v13740_v22, 0.0  ;;  %v13773_v59 = vadd.f32 %v13271_v61, %v7934_v11  ;;  %v13778_v51 = vsel %vm8132_vm12, %v13630_v5, %v9346_v27 }
 0x409   : > { %v13733_v15 = vpop.f32.mrb[140].mxu1  ;;  %11345 = vmatpush3.bf16.xpose.msk.msra.mxu1 %vm13520_vm9, %v14203_v53  ;;  %v7938_v35 = vpop.f32.mrb[143].mxu0  ;;  %v9349_v48 = vadd.f32 -1.0, %v11691_v29  ;;  %v8312_v32 = vmul.f32 1.442695, %v8205_v49  ;;  %v13781_v37 = vadd.f32 %v13271_v61, %v7929_v40  ;;  %v13786_v31 = vsel %vm8128_vm13, %v13580_v45, %v9342_v14 }
 0x40a   : > { %v13742_v63 = vpop.f32.mrb[141].mxu1  ;;  %v11373_v30 = vpack.c.bf16 %v13769_v4, %v13778_v51  ;;  %v8310_v12 = vmul.f32 1.442695, %v8204_v42  ;;  %v8207_v62 = vmin.f32 %v13773_v59, 0.0  ;;  %v11693_v11 = vpop.eup %11692  ;;  %vm8136_vm2 = vcmp.gt.f32.partialorder %v13689_v7, 0.0 }
 0x40b   : > { %v13794_v5 = vsel %vm8135_vm14, %v13641_v34, %v9349_v48  ;;  %11702 = vpow2.f32 %v8312_v32  ;;  %v8206_v40 = vmin.f32 %v13781_v37, 0.0  ;;  %v11695_v45 = vpop.eup %11694  ;;  %v9348_v14 = vadd.f32 -1.0, %v11693_v11 }
 0x40c   : > { %v11022_v24 = vpop.f32.mrb[144].mxu0  ;;  %11704 = vpow2.f32 %v8310_v12  ;;  %v8316_v44 = vmul.f32 1.442695, %v8207_v62  ;;  %v11346_v57 = vpack.c.bf16 %v13676_v56, %v13684_v47  ;;  %v9351_v49 = vadd.f32 -1.0, %v11695_v45 }
 0x40d   : > { %v7948_v27 = vpop.f32.mrb[145].mxu0  ;;  %v8314_v53 = vmul.f32 1.442695, %v8206_v40  ;;  %v7944_v29 = vadd.f32 %v11019_v50, %v13536_v6  ;;  %v7939_v34 = vadd.f32 %v7938_v35, %v13545_v3  ;;  %v11697_v42 = vpop.eup %11696  ;;  %v13805_v48 = vsel %vm8134_vm15, %v13662_v43, %v9348_v14 }
 0x40e   : > { %11706 = vpow2.f32 %v8316_v44  ;;  %11348 = vmatprep.subr.msk.bf16.mxu1 %vm13520_vm9, %v11346_v57  ;;  %v7954_v32 = vadd.f32 %v11022_v24, %v13562_v18  ;;  %v7949_v56 = vadd.f32 %v7948_v27, %v13569_v41  ;;  %v11379_v47 = vpack.c.bf16 %v13794_v5, %v13805_v48 }
 0x40f   : > { %v13816_v6 = vsel %vm8137_vm1, %v13665_v23, %v9351_v49  ;;  %v9350_v3 = vadd.f32 -1.0, %v11697_v42  ;;  %11708 = vpow2.f32 %v8314_v53  ;;  %v14204_v43 = vpack.c.bf16 %v13441_v2, %v13450_v17 }
 0x410   : > { %v11025_v50 = vpop.f32.mrb[146].mxu0  ;;  %v13824_v18 = vadd.f32 %v13271_v61, %v7944_v29  ;;  %v13827_v41 = vadd.f32 %v13271_v61, %v7939_v34  ;;  %v13830_v35 = vadd.f32 %v13271_v61, %v7954_v32  ;;  %v13833_v23 = vadd.f32 %v13271_v61, %v7949_v56  ;;  %v13865_v34 = vld [vmem:[%s14095_s6] ss:$0 sm:$0xff] }
 0x411   : > { %11351 = vmatpush3.bf16.xpose.msk.msra.mxu1 %vm13520_vm9, %v14204_v43  ;;  %v7958_v12 = vpop.f32.mrb[147].mxu0  ;;  %v11699_v62 = vpop.eup %11698  ;;  %v13838_v2 = vsel %vm8136_vm2, %v13689_v7, %v9350_v3  ;;  %v11352_v17 = vpack.c.bf16 %v13694_v25, %v13709_v33  ;;  %v7964_v11 = vadd.f32 %v11025_v50, %v13582_v28  ;;  %vm8139_vm3 = vcmp.gt.f32.partialorder %v13717_v20, 0.0  ;;  %v14205_v50 = vld [vmem:[#allocation3_spill] sm:$0xff] }
 0x412   : > { %v7959_v40 = vadd.f32 %v7958_v12, %v13585_v46  ;;  %v11701_v24 = vpop.eup %11700  ;;  %v11385_v45 = vpack.c.bf16 %v13816_v6, %v13838_v2  ;;  %v9353_v61 = vadd.f32 -1.0, %v11699_v62  ;;  %v8209_v14 = vmin.f32 %v13824_v18, 0.0 }
 0x413   : > { %vm8138_vm4 = vcmp.gt.f32.partialorder %v13720_v19, 0.0  ;;  %v9352_v7 = vadd.f32 -1.0, %v11701_v24  ;;  %vm8141_vm5 = vcmp.gt.f32.partialorder %v13737_v1, 0.0  ;;  %v8208_v25 = vmin.f32 %v13827_v41, 0.0  ;;  %11354 = vmatprep.subr.msk.bf16.mxu1 %vm13520_vm9, %v11352_v17 }
 0x414   : > { %v11028_v46 = vpop.f32.mrb[148].mxu0  ;;  %v13854_v28 = vsel %vm8139_vm3, %v13717_v20, %v9353_v61  ;;  %vm8140_vm0 = vcmp.gt.f32.partialorder %v13740_v22, 0.0  ;;  %v8320_v33 = vmul.f32 1.442695, %v8209_v14  ;;  %v8211_v44 = vmin.f32 %v13830_v35, 0.0 }
 0x415   : > { %v7968_v57 = vpop.f32.mrb[149].mxu0  ;;  %v11703_v27 = vpop.eup %11702  ;;  %v13859_v49 = vsel %vm8138_vm4, %v13720_v19, %v9352_v7  ;;  %v8318_v53 = vmul.f32 1.442695, %v8208_v25  ;;  %v8210_v29 = vmin.f32 %v13833_v23, 0.0  ;;  %v13868_v20 = vadd.f32 %v13865_v34, %v7964_v11 }
 0x416   : > { %v11705_v42 = vpop.eup %11704  ;;  %v11391_v32 = vpack.c.bf16 %v13854_v28, %v13859_v49  ;;  %v9355_v56 = vadd.f32 -1.0, %v11703_v27  ;;  %11710 = vpow2.f32 %v8320_v33  ;;  %v8324_v3 = vmul.f32 1.442695, %v8211_v44 }
 0x417   : > { %v9354_v19 = vadd.f32 -1.0, %v11705_v42  ;;  %vm8143_vm7 = vcmp.gt.f32.partialorder %v13773_v59, 0.0  ;;  %11712 = vpow2.f32 %v8318_v53  ;;  %v8322_v43 = vmul.f32 1.442695, %v8210_v29 }
 0x418   : > { %v14206_v12 = vpack.c.bf16 %v13465_v26, %v14205_v50  ;;  %v11031_v62 = vpop.f32.mrb[150].mxu0  ;;  %v11707_v17 = vpop.eup %11706  ;;  %v13881_v11 = vsel %vm8141_vm5, %v13737_v1, %v9355_v56  ;;  %11714 = vpow2.f32 %v8324_v3  ;;  %v8213_v24 = vmin.f32 %v13868_v20, 0.0 }
 0x419   : > { %v13885_v61 = vadd.f32 %v13865_v34, %v7959_v40  ;;  %v7978_v14 = vpop.f32.mrb[151].mxu0  ;;  %v11709_v7 = vpop.eup %11708  ;;  %v13890_v26 = vsel %vm8140_vm0, %v13740_v22, %v9354_v19  ;;  %v9357_v25 = vadd.f32 -1.0, %v11707_v17  ;;  %11716 = vpow2.f32 %v8322_v43 }
 0x41a   : > { %11357 = vmatpush3.bf16.xpose.msk.msra.mxu1 %vm13520_vm9, %v14206_v12  ;;  %v7974_v33 = vadd.f32 %v11028_v46, %v13604_v38  ;;  %v11397_v1 = vpack.c.bf16 %v13881_v11, %v13890_v26  ;;  %vm8142_vm8 = vcmp.gt.f32.partialorder %v13781_v37, 0.0  ;;  %v9356_v44 = vadd.f32 -1.0, %v11709_v7  ;;  %v14207_v12 = vld [vmem:[#allocation2_spill] sm:$0xff] }
 0x41b   : > { %v8328_v27 = vmul.f32 1.442695, %v8213_v24  ;;  %v13899_v40 = vsel %vm8143_vm7, %v13773_v59, %v9357_v25  ;;  %v8212_v53 = vmin.f32 %v13885_v61, 0.0  ;;  %v7969_v29 = vadd.f32 %v7968_v57, %v13609_v8 }
 0x41c   : > { %v13903_v22 = vadd.f32 %v13865_v34, %v7974_v33  ;;  %v11034_v38 = vpop.f32.mrb[152].mxu0  ;;  %v13907_v46 = vsel %vm8142_vm8, %v13781_v37, %v9356_v44  ;;  %v11358_v42 = vpack.c.bf16 %v13758_v60, %v13786_v31  ;;  %v7984_v56 = vadd.f32 %v11031_v62, %v13620_v39  ;;  %v8483_v37 = vld [vmem:[%s14097_s8] sm:$0xff]  ;;  %v14208_v62 = vld [vmem:[#allocation4_spill] sm:$0xff] }
 0x41d   : > { %11718 = vpow2.f32 %v8328_v27  ;;  %v7988_v3 = vpop.f32.mrb[153].mxu0  ;;  %v11403_v59 = vpack.c.bf16 %v13899_v40, %v13907_v46  ;;  %v8326_v19 = vmul.f32 1.442695, %v8212_v53  ;;  %v13916_v50 = vadd.f32 %v13865_v34, %v7969_v29 }
 0x41e   : > { %v8215_v43 = vmin.f32 %v13903_v22, 0.0  ;;  %11360 = vmatprep.subr.msk.bf16.mxu1 %vm13520_vm9, %v11358_v42  ;;  %v13921_v8 = vadd.f32 %v13865_v34, %v7984_v56  ;;  %v7979_v60 = vadd.f32 %v7978_v14, %v13626_v10  ;;  %v7994_v39 = vadd.f32 %v11034_v38, %v13648_v21 }
 0x41f   : > { %11720 = vpow2.f32 %v8326_v19  ;;  %v7989_v57 = vadd.f32 %v7988_v3, %v13657_v54  ;;  %v14209_v17 = vpack.c.bf16 %v14207_v12, %v14208_v62  ;;  %vm8145_vm10 = vcmp.gt.f32.partialorder %v13824_v18, 0.0 }
 0x420   : > { %v8332_v31 = vmul.f32 1.442695, %v8215_v43  ;;  %v11037_v24 = vpop.f32.mrb[154].mxu0  ;;  %v11711_v7 = vpop.eup %11710  ;;  %v8214_v10 = vmin.f32 %v13916_v50, 0.0  ;;  %v8217_v21 = vmin.f32 %v13921_v8, 0.0  ;;  %v11757_v25 = vmov 0  }
 0x421   : > { %v7998_v14 = vpop.f32.mrb[155].mxu0  ;;  %11489 = vset.pattern.permute.xlu0 %v11757_v25  ;;  %v11713_v33 = vpop.eup %11712  ;;  %v9359_v44 = vadd.f32 -1.0, %v11711_v7  ;;  %v13938_v54 = vadd.f32 %v13865_v34, %v7979_v60  ;;  %v13941_v27 = vadd.f32 %v13865_v34, %v7994_v39  ;;  %v13944_v56 = vadd.f32 %v13865_v34, %v7989_v57 }
 0x422   : > { %11363 = vmatpush3.bf16.xpose.msk.msra.mxu1 %vm13520_vm9, %v14209_v17  ;;  %11722 = vpow2.f32 %v8332_v31  ;;  %8486 = vperm.xlu0 %11489, %v8483_v37   ;;  %v11715_v53 = vpop.eup %11714  ;;  %v9358_v29 = vadd.f32 -1.0, %v11713_v33  ;;  %v8330_v38 = vmul.f32 1.442695, %v8214_v10  ;;  %v8336_v42 = vmul.f32 1.442695, %v8217_v21  ;;  %v13967_v21 = vld [vmem:[%s14096_s7] sm:$0xff] }
 0x423   : > { %v11717_v3 = vpop.eup %11716  ;;  %v13949_v19 = vsel %vm8145_vm10, %v13824_v18, %v9359_v44  ;;  %vm8144_vm11 = vcmp.gt.f32.partialorder %v13827_v41, 0.0  ;;  %v9361_v43 = vadd.f32 -1.0, %v11715_v53  ;;  %v8216_v60 = vmin.f32 %v13938_v54, 0.0 }
 0x424   : > { %v11040_v39 = vpop.f32.mrb[156].mxu0  ;;  %v13954_v37 = vsel %vm8144_vm11, %v13827_v41, %v9358_v29  ;;  %vm8147_vm12 = vcmp.gt.f32.partialorder %v13830_v35, 0.0  ;;  %v9360_v31 = vadd.f32 -1.0, %v11717_v3  ;;  %11724 = vpow2.f32 %v8330_v38 }
 0x425   : > { %v8008_v57 = vpop.f32.mrb[157].mxu0  ;;  %v11409_v12 = vpack.c.bf16 %v13949_v19, %v13954_v37  ;;  %vm8146_vm13 = vcmp.gt.f32.partialorder %v13833_v23, 0.0  ;;  %11726 = vpow2.f32 %v8336_v42  ;;  %v8334_v18 = vmul.f32 1.442695, %v8216_v60 }
 0x426   : > { %v8467_v17 = vsel %vm8147_vm12, %v13830_v35, %v9361_v43  ;;  %v8466_v7 = vsel %vm8146_vm13, %v13833_v23, %v9360_v31  ;;  %v8219_v41 = vmin.f32 %v13941_v27, 0.0  ;;  %v8218_v10 = vmin.f32 %v13944_v56, 0.0 }
 0x427   : > { %v11719_v62 = vpop.eup %11718  ;;  %11728 = vpow2.f32 %v8334_v18  ;;  %v8004_v33 = vadd.f32 %v11037_v24, %v13668_v13  ;;  %v7999_v35 = vadd.f32 %v7998_v14, %v13671_v36  ;;  %v8014_v29 = vadd.f32 %v11040_v39, %v13704_v52 }
 0x428   : > { %v9363_v25 = vadd.f32 -1.0, %v11719_v62  ;;  %v11043_v44 = vpop.f32.mrb[158].mxu0  ;;  %v8340_v23 = vmul.f32 1.442695, %v8219_v41  ;;  %v8338_v53 = vmul.f32 1.442695, %v8218_v10  ;;  %v8009_v38 = vadd.f32 %v8008_v57, %v13723_v9 }
 0x429   : > { %10255 = vmatmul.mubr.msk.f32.vlgmr.msra.gmra.mrb[142].mxu1 %vm6872_vm6, %v13967_v21  ;;  %v8018_v42 = vpop.f32.mrb[159].mxu0  ;;  %v11721_v3 = vpop.eup %11720  ;;  %vm8149_vm14 = vcmp.gt.f32.partialorder %v13868_v20, 0.0  ;;  %v13979_v43 = vadd.f32 %v13865_v34, %v8004_v33  ;;  %v13982_v13 = vadd.f32 %v13865_v34, %v7999_v35  ;;  %v11364_v36 = vpack.c.bf16 %v8467_v17, %v8466_v7 }
 0x42a   : > { %10288 = vmatprep.mubr.msk.f32.mxu1 %vm6872_vm6, %v13967_v21  ;;  %v9362_v24 = vadd.f32 -1.0, %v11721_v3  ;;  %11730 = vpow2.f32 %v8340_v23  ;;  %v13985_v14 = vadd.f32 %v13865_v34, %v8014_v29  ;;  %v13988_v52 = vadd.f32 %v13865_v34, %v8009_v38 }
 0x42b   : > { %vm8148_vm15 = vcmp.gt.f32.partialorder %v13885_v61, 0.0  ;;  %vm8151_vm1 = vcmp.gt.f32.partialorder %v13903_v22, 0.0  ;;  %11732 = vpow2.f32 %v8338_v53  ;;  %v8221_v60 = vmin.f32 %v13979_v43, 0.0  ;;  %11366 = vmatprep.subr.msk.bf16.mxu1 %vm13520_vm9, %v11364_v36 }
 0x42c   : > { %v11723_v9 = vpop.eup %11722  ;;  %v8469_v39 = vsel %vm8149_vm14, %v13868_v20, %v9363_v25  ;;  %vm8150_vm2 = vcmp.gt.f32.partialorder %v13916_v50, 0.0  ;;  %v8220_v57 = vmin.f32 %v13982_v13, 0.0  ;;  %11369 = vmatpush3.bf16.xpose.msk.msra.mxu1 %vm13520_vm9, %v11367_v58  ;;  %v8468_v18 = vsel %vm8148_vm15, %v13885_v61, %v9362_v24 }
 0x42d   : > { %v9365_v31 = vadd.f32 -1.0, %v11723_v9  ;;  %v8344_v62 = vmul.f32 1.442695, %v8221_v60  ;;  %v8223_v17 = vmin.f32 %v13985_v14, 0.0  ;;  %v8222_v7 = vmin.f32 %v13988_v52, 0.0 }
 0x42e   : > { %v11725_v41 = vpop.eup %11724  ;;  %v8342_v10 = vmul.f32 1.442695, %v8220_v57  ;;  %v8024_v25 = vadd.f32 %v11043_v44, %v13733_v15  ;;  %v8019_v33 = vadd.f32 %v8018_v42, %v13742_v63  ;;  %vm8153_vm3 = vcmp.gt.f32.partialorder %v13921_v8, 0.0 }
 0x42f   : > { %v8471_v20 = vsel %vm8151_vm1, %v13903_v22, %v9365_v31  ;;  %v11727_v35 = vpop.eup %11726  ;;  %v9364_v16 = vadd.f32 -1.0, %v11725_v41  ;;  %11734 = vpow2.f32 %v8344_v62  ;;  %v8348_v55 = vmul.f32 1.442695, %v8223_v17 }
 0x430   : > { %v8346_v58 = vmul.f32 1.442695, %v8222_v7  ;;  %v9367_v23 = vadd.f32 -1.0, %v11727_v35  ;;  %11736 = vpow2.f32 %v8342_v10  ;;  %v8097_v61 = vadd.f32 %v13865_v34, %v8024_v25 }
 0x431   : > { %v8096_v53 = vadd.f32 %v13865_v34, %v8019_v33  ;;  %v11729_v29 = vpop.eup %11728  ;;  %v8470_v22 = vsel %vm8150_vm2, %v13916_v50, %v9364_v16  ;;  %11738 = vpow2.f32 %v8348_v55  ;;  %v11370_v15 = vpack.c.bf16 %v8469_v39, %v8468_v18 }
 0x432   : > { %v8473_v63 = vsel %vm8153_vm3, %v13921_v8, %v9367_v23  ;;  %v9366_v44 = vadd.f32 -1.0, %v11729_v29  ;;  %11740 = vpow2.f32 %v8346_v58  ;;  %vm8152_vm4 = vcmp.gt.f32.partialorder %v13938_v54, 0.0 }
 0x433   : > { %v8225_v38 = vmin.f32 %v8097_v61, 0.0  ;;  %v8224_v42 = vmin.f32 %v8096_v53, 0.0  ;;  %11372 = vmatprep.subr.msk.bf16.mxu1 %vm13520_vm9, %v11370_v15  ;;  %v11376_v34 = vpack.c.bf16 %v8471_v20, %v8470_v22  ;;  %vm8155_vm5 = vcmp.gt.f32.partialorder %v13941_v27, 0.0 }
 0x434   : > { %v11731_v3 = vpop.eup %11730  ;;  %v8472_v36 = vsel %vm8152_vm4, %v13938_v54, %v9366_v44  ;;  %11375 = vmatpush3.bf16.xpose.msk.msra.mxu1 %vm13520_vm9, %v11373_v30  ;;  %vm8154_vm0 = vcmp.gt.f32.partialorder %v13944_v56, 0.0  ;;  %vm8157_vm7 = vcmp.gt.f32.partialorder %v13979_v43, 0.0  ;;  %vm8156_vm8 = vcmp.gt.f32.partialorder %v13982_v13, 0.0 }
 0x435   : > { %v11733_v50 = vpop.eup %11732  ;;  %v9369_v8 = vadd.f32 -1.0, %v11731_v3  ;;  %v8352_v24 = vmul.f32 1.442695, %v8225_v38  ;;  %v8350_v9 = vmul.f32 1.442695, %v8224_v42  ;;  %11378 = vmatprep.subr.msk.bf16.mxu1 %vm13520_vm9, %v11376_v34  ;;  %v11382_v60 = vpack.c.bf16 %v8473_v63, %v8472_v36 }
 0x436   : > { %v9368_v39 = vadd.f32 -1.0, %v11733_v50  ;;  %vm8159_vm10 = vcmp.gt.f32.partialorder %v13985_v14, 0.0  ;;  %vm8158_vm11 = vcmp.gt.f32.partialorder %v13988_v52, 0.0  ;;  %vm8161_vm12 = vcmp.gt.f32.partialorder %v8097_v61, 0.0 }
 0x437   : > { %v8475_v31 = vsel %vm8155_vm5, %v13941_v27, %v9369_v8  ;;  %11742 = vpow2.f32 %v8352_v24  ;;  %vm8160_vm13 = vcmp.gt.f32.partialorder %v8096_v53, 0.0 }
 0x438   : > { %v8474_v4 = vsel %vm8154_vm0, %v13944_v56, %v9368_v39  ;;  %11744 = vpow2.f32 %v8350_v9 }
 0x439   : > { %v11735_v51 = vpop.eup %11734  ;;  %v11388_v30 = vpack.c.bf16 %v8475_v31, %v8474_v4 }
 0x43a   : > { %v11737_v54 = vpop.eup %11736  ;;  %v9371_v57 = vadd.f32 -1.0, %v11735_v51 }
 0x43b   : > { %v11739_v18 = vpop.eup %11738  ;;  %v9370_v62 = vadd.f32 -1.0, %v11737_v54 }
 0x43c   : > { %v11741_v17 = vpop.eup %11740  ;;  %v8477_v7 = vsel %vm8157_vm7, %v13979_v43, %v9371_v57  ;;  %v9373_v27 = vadd.f32 -1.0, %v11739_v18  ;;  %11381 = vmatpush3.bf16.xpose.msk.msra.mxu1 %vm13520_vm9, %v11379_v47 }
 0x43d   : > { %v8476_v56 = vsel %vm8156_vm8, %v13982_v13, %v9370_v62  ;;  %v9372_v41 = vadd.f32 -1.0, %v11741_v17  ;;  %11384 = vmatprep.subr.msk.bf16.mxu1 %vm13520_vm9, %v11382_v60 }
 0x43e   : > { %v8479_v20 = vsel %vm8159_vm10, %v13985_v14, %v9373_v27  ;;  %v11394_v43 = vpack.c.bf16 %v8477_v7, %v8476_v56 }
 0x43f   : > { %v8478_v10 = vsel %vm8158_vm11, %v13988_v52, %v9372_v41 }
 0x440   : > { %v11400_v25 = vpack.c.bf16 %v8479_v20, %v8478_v10 }
 0x441   : > { %v11743_v5 = vpop.eup %11742 }
 0x442   : > { %v11745_v48 = vpop.eup %11744  ;;  %v9375_v33 = vadd.f32 -1.0, %v11743_v5 }
 0x443   : > { %v9374_v47 = vadd.f32 -1.0, %v11745_v48 }
 0x444   : > { %v8481_v13 = vsel %vm8161_vm12, %v8097_v61, %v9375_v33  ;;  %11387 = vmatpush3.bf16.xpose.msk.msra.mxu1 %vm13520_vm9, %v11385_v45 }
 0x445   : > { %v8480_v14 = vsel %vm8160_vm13, %v8096_v53, %v9374_v47  ;;  %11390 = vmatprep.subr.msk.bf16.mxu1 %vm13520_vm9, %v11388_v30 }
 0x446   : > { %v11406_v52 = vpack.c.bf16 %v8481_v13, %v8480_v14 }
 0x44c   : > { %11393 = vmatpush3.bf16.xpose.msk.msra.mxu1 %vm13520_vm9, %v11391_v32 }
 0x44d   : > { %11396 = vmatprep.subr.msk.bf16.mxu1 %vm13520_vm9, %v11394_v43 }
 0x454   : > { %11399 = vmatpush3.bf16.xpose.msk.msra.mxu1 %vm13520_vm9, %v11397_v1 }
 0x455   : > { %11402 = vmatprep.subr.msk.bf16.mxu1 %vm13520_vm9, %v11400_v25 }
 0x45c   : > { %11405 = vmatpush3.bf16.xpose.msk.msra.mxu1 %vm13520_vm9, %v11403_v59 }
 0x45d   : > { %11408 = vmatprep.subr.msk.bf16.mxu1 %vm13520_vm9, %v11406_v52 }
 0x464   : > { %11411 = vmatpush3.bf16.xpose.msk.msra.mxu1 %vm13520_vm9, %v11409_v12 }
 0x46b   : > { %10289 = vmatmul.mubr.msk.f32.vlgmr.msra.gmra.mrb[144].mxu1 %vm6872_vm6, %v13967_v21 }
 0x4a1   : > { %v8487_v6 = vpop.permute.xlu0 %8486 }
 0x4fc   : > { %v8750_v2 = vpop.f32.mrb[142].mxu1 }
 0x4fd   : > { %v8751_v45 = vadd.f32 %v8750_v2, %v8487_v6  ;;  %v8752_v28 = vpop.f32.mrb[143].mxu1 }
 0x4fe   : > { %v8753_v49 = vadd.f32 %v8752_v28, %v8487_v6 }
 0x4ff   : > { %8826 = vst [vmem:[%s387_s21] sm:$0xff] %v8751_v45 }
 0x500   : > { %8827 = vst [vmem:[%s387_s21 + $0x8] sm:$0xff] %v8753_v49 }
 0x53e   : > { %v8821_v0 = vpop.f32.mrb[144].mxu1 }
 0x53f   : > { %v8822_v32 = vadd.f32 %v8821_v0, %v8487_v6  ;;  %v8823_v11 = vpop.f32.mrb[145].mxu1 }
 0x540   : > { %v8824_v26 = vadd.f32 %v8823_v11, %v8487_v6 }
 0x541   : > { %8828 = vst [vmem:[%s387_s21 + $0x10] sm:$0xff] %v8822_v32 }
 0x542   : > { %8829 = vst [vmem:[%s387_s21 + $0x18] sm:$0xff] %v8824_v26 }
 0x543 PF: > { %s19_s30 = sadd.s32 1, %s11755_s30  }
 0x544   : > { %p16_p5 = scmp.ge.s32.totalorder %s19_s30, 4  }
 0x546   :  { %18 = sbr.rel (!%p16_p5) target bundleno = 1 (0x1), region = 92 }

</bundles_post_ra>
